<compile_context>
chip_gen: v5e
topology: v5e:2x2
jax: 0.10.0
libtpu: 0.0.40
codegen_flags: <defaults>
</compile_context>

<pallas_src>
import functools

import jax
import jax.numpy as jnp
from jax import lax
from jax.experimental import pallas as pl
from jax.experimental.pallas import tpu as pltpu


def _round_up(x, m):
    return (x + m - 1) // m * m


def _lstm_kernel(x_ref, wih_ref, whh_ref, h0_ref, c0_ref,   # inputs
                 y_ref, h_ref, c_ref,                        # outputs
                 xw_ref,                                     # VMEM scratch
                 *, bt, hp, chunk, seq_len):
    """One grid step = `chunk` LSTM time steps for one batch tile.

    x_ref:    (1, 1, chunk*bt, D)  bf16  current time-chunk of inputs
    wih_ref:  (D, 4*hp)            bf16  input->gates weight (gate-lane padded)
    whh_ref:  (hp, 4*hp)           bf16  hidden->gates weight (padded)
    h0/c0:    (1, bt, hp)          f32   initial state for this batch tile
    y_ref:    (1, 1, chunk*bt, hp) f32   per-step hidden outputs (lane dense)
    h_/c_ref: (1, bt, hp)          f32   resident state (constant block index)
    xw_ref:   (chunk*bt, 4*hp)     f32   hoisted input projection
    """
    t = pl.program_id(1)

    # (Re)initialize the resident state at the start of each batch tile.
    @pl.when(t == 0)
    def _():
        h_ref[0] = h0_ref[0]
        c_ref[0] = c0_ref[0]

    # Hoisted input projection: one MXU-efficient matmul per chunk
    # (M = chunk*bt rows) instead of a K=D contraction on the serial path.
    xw_ref[...] = jnp.dot(x_ref[0, 0], wih_ref[...],
                          preferred_element_type=jnp.float32)

    def sigmoid(z):  # one EUP pass (tanh) instead of exp + divide
        return 0.5 * jnp.tanh(0.5 * z) + 0.5

    def step(s, carry):
        h_prev, c_prev = carry
        row = pl.multiple_of(s * bt, bt)

        # Recurrent matmul only: (bt, hp) @ (hp, 4*hp), bf16 operands,
        # f32 accumulation; add the precomputed input projection slice.
        gates = xw_ref[pl.ds(row, bt), :] + jnp.dot(
            h_prev.astype(jnp.bfloat16), whh_ref[...],
            preferred_element_type=jnp.float32)

        # Gate slices are 128-lane aligned (hp is a multiple of 128).
        i_g = sigmoid(gates[:, 0 * hp:1 * hp])
        f_g = sigmoid(gates[:, 1 * hp:2 * hp])
        g_g = jnp.tanh(gates[:, 2 * hp:3 * hp])
        o_g = sigmoid(gates[:, 3 * hp:4 * hp])

        c_new = f_g * c_prev + i_g * g_g
        h_new = o_g * jnp.tanh(c_new)

        if seq_len % chunk != 0:
            # Static branch: only emitted when S was padded up to a multiple
            # of the chunk; freeze the state on the padded tail steps.
            m = (t * chunk + s < seq_len).astype(jnp.float32)
            h_new = h_prev + m * (h_new - h_prev)
            c_new = c_prev + m * (c_new - c_prev)

        y_ref[0, 0, pl.ds(row, bt), :] = h_new.astype(y_ref.dtype)
        return h_new, c_new

    unroll = next(u for u in (8, 4, 2, 1) if chunk % u == 0)
    h_fin, c_fin = lax.fori_loop(0, chunk, step, (h_ref[0], c_ref[0]),
                                 unroll=unroll)

    # Write the resident state once per chunk (not once per step).
    h_ref[0] = h_fin
    c_ref[0] = c_fin


def depth_lstm_forward(x, h0, c0, w_ih, w_hh, *,
                       max_time_chunk=128, batch_tile=None):
    """Pallas equivalent of Depth.forward(x, h, c).

    x:  (S, B, D) float32
    h0: (1, B, H) float32
    c0: (1, B, H) float32
    w_ih: (4H, D)  (PyTorch weight_ih_l0 layout, gate order i, f, g, o)
    w_hh: (4H, H)  (PyTorch weight_hh_l0 layout)
    Returns (y, (hN, cN)) with y: (S, B, H), hN/cN: (1, B, H).
    """
    S, B, D = x.shape
    H = h0.shape[-1]

    f32, bf16 = jnp.float32, jnp.bfloat16

    # --- tiling / padding ----------------------------------------------------
    # Batch tile: multiple of 16 (bf16 sublane packing).  Passing
    # batch_tile ~= ceil(B/2) (rounded to 16) yields 2 tiles -> v7x megacore.
    bt = _round_up(B if batch_tile is None else batch_tile, 16)
    Bp = _round_up(B, bt)
    n_btiles = Bp // bt

    Hp = _round_up(H, 128)               # lane-pad hidden / gate dims only

    T_C = min(S, max_time_chunk)         # time steps per grid iteration
    S_pad = _round_up(S, T_C)            # pad S instead of shrinking T_C
    n_chunks = S_pad // T_C

    # --- weights: transpose, gate-lane pad, cast to bf16 ---------------------
    wih_t = jnp.transpose(w_ih).astype(f32)          # (D, 4H)
    whh_t = jnp.transpose(w_hh).astype(f32)          # (H, 4H)
    wih_p = jnp.zeros((D, 4 * Hp), f32)
    whh_p = jnp.zeros((Hp, 4 * Hp), f32)
    for g in range(4):
        wih_p = wih_p.at[:, g * Hp:g * Hp + H].set(wih_t[:, g * H:(g + 1) * H])
        whh_p = whh_p.at[:H, g * Hp:g * Hp + H].set(whh_t[:, g * H:(g + 1) * H])
    wih_p = wih_p.astype(bf16)
    whh_p = whh_p.astype(bf16)

    # --- x: pad time/batch only (D stays unpadded in HBM), chunk layout ------
    x_p = jnp.pad(x.astype(f32), ((0, S_pad - S), (0, Bp - B), (0, 0)))
    x_p = x_p.reshape(n_chunks, T_C, n_btiles, bt, D)
    x_p = jnp.transpose(x_p, (0, 2, 1, 3, 4)).reshape(
        n_chunks, n_btiles, T_C * bt, D).astype(bf16)

    h0_p = jnp.pad(h0[0].astype(f32), ((0, Bp - B), (0, Hp - H)))
    c0_p = jnp.pad(c0[0].astype(f32), ((0, Bp - B), (0, Hp - H)))
    h0_p = h0_p.reshape(n_btiles, bt, Hp)
    c0_p = c0_p.reshape(n_btiles, bt, Hp)

    kernel = functools.partial(_lstm_kernel, bt=bt, hp=Hp, chunk=T_C,
                               seq_len=S)

    y_p, hN_p, cN_p = pl.pallas_call(
        kernel,
        out_shape=(
            jax.ShapeDtypeStruct((n_chunks, n_btiles, T_C * bt, Hp), x.dtype),
            jax.ShapeDtypeStruct((n_btiles, bt, Hp), f32),
            jax.ShapeDtypeStruct((n_btiles, bt, Hp), f32),
        ),
        grid=(n_btiles, n_chunks),
        in_specs=[
            pl.BlockSpec((1, 1, T_C * bt, D), lambda b, t: (t, b, 0, 0)),
            pl.BlockSpec((D, 4 * Hp), lambda b, t: (0, 0)),
            pl.BlockSpec((Hp, 4 * Hp), lambda b, t: (0, 0)),
            pl.BlockSpec((1, bt, Hp), lambda b, t: (b, 0, 0)),
            pl.BlockSpec((1, bt, Hp), lambda b, t: (b, 0, 0)),
        ],
        out_specs=(
            pl.BlockSpec((1, 1, T_C * bt, Hp), lambda b, t: (t, b, 0, 0)),
            pl.BlockSpec((1, bt, Hp), lambda b, t: (b, 0, 0)),
            pl.BlockSpec((1, bt, Hp), lambda b, t: (b, 0, 0)),
        ),
        scratch_shapes=[pltpu.VMEM((T_C * bt, 4 * Hp), f32)],
        compiler_params=pltpu.CompilerParams(
            # Time recurrence is sequential; batch tiles are independent.
            dimension_semantics=("parallel", "arbitrary"),
            vmem_limit_bytes=64 * 1024 * 1024,
        ),
    )(x_p, wih_p, whh_p, h0_p, c0_p)

    # --- strip padding --------------------------------------------------------
    y = y_p.reshape(n_chunks, n_btiles, T_C, bt, Hp)
    y = jnp.transpose(y, (0, 2, 1, 3, 4)).reshape(S_pad, Bp, Hp)
    y = y[:S, :B, :H].astype(x.dtype)
    hN = hN_p.reshape(Bp, Hp)[:B, :H][None]
    cN = cN_p.reshape(Bp, Hp)[:B, :H][None]
    return y, (hN, cN)


def lstm_reference(x, h0, c0, w_ih, w_hh):
    """Pure-JAX reference (matches torch.nn.LSTM with bias=False)."""
    H = h0.shape[-1]

    def step(carry, x_t):
        h, c = carry
        gates = x_t @ w_ih.T + h @ w_hh.T
        i = jax.nn.sigmoid(gates[:, 0 * H:1 * H])
        f = jax.nn.sigmoid(gates[:, 1 * H:2 * H])
        g = jnp.tanh(gates[:, 2 * H:3 * H])
        o = jax.nn.sigmoid(gates[:, 3 * H:4 * H])
        c_new = f * c + i * g
        h_new = o * jnp.tanh(c_new)
        return (h_new, c_new), h_new

    (hN, cN), ys = lax.scan(step, (h0[0], c0[0]), x)
    return ys, (hN[None], cN[None])


if __name__ == "__main__":
    seq, batch, in_dim, hidden = 8, 4, 16, 32

    key = jax.random.PRNGKey(0)
    kx, kh, kc, kwi, kwh = jax.random.split(key, 5)

    # Same distribution as PyTorch LSTM default: U(-1/sqrt(H), 1/sqrt(H)).
    bound = 1.0 / jnp.sqrt(jnp.float32(hidden))
    w_ih = jax.random.uniform(kwi, (4 * hidden, in_dim), jnp.float32, -bound, bound)
    w_hh = jax.random.uniform(kwh, (4 * hidden, hidden), jnp.float32, -bound, bound)

    x = jax.random.normal(kx, (seq, batch, in_dim), jnp.float32)
    h0 = jax.random.normal(kh, (1, batch, hidden), jnp.float32)
    c0 = jax.random.normal(kc, (1, batch, hidden), jnp.float32)

    y, (hN, cN) = depth_lstm_forward(x, h0, c0, w_ih, w_hh)
    jax.block_until_ready((y, hN, cN))

    y_ref, (hN_ref, cN_ref) = lstm_reference(x, h0, c0, w_ih, w_hh)
    tol = dict(atol=5e-2, rtol=5e-2)   # bf16 matmul operands, f32 accumulation
    assert jnp.allclose(y, y_ref, **tol)
    assert jnp.allclose(hN, hN_ref, **tol)
    assert jnp.allclose(cN, cN_ref, **tol)

    # Exercise the padded / masked time-tail path and multi-chunk residency.
    y2, (hN2, cN2) = depth_lstm_forward(x, h0, c0, w_ih, w_hh, max_time_chunk=3)
    jax.block_until_ready((y2, hN2, cN2))
    assert jnp.allclose(y2, y_ref, **tol)
    assert jnp.allclose(hN2, hN_ref, **tol)
    assert jnp.allclose(cN2, cN_ref, **tol)

    print("KERNEL_OK")
</pallas_src>

<mosaic_0001>
module attributes {stable_mosaic.version = 11 : i64} {
  func.func @_lstm_kernel(%arg0: i32, %arg1: i32, %arg2: memref<1x1x128x16xbf16, #tpu.memory_space<vmem>>, %arg3: memref<16x512xbf16, #tpu.memory_space<vmem>>, %arg4: memref<128x512xbf16, #tpu.memory_space<vmem>>, %arg5: memref<1x16x128xf32, #tpu.memory_space<vmem>>, %arg6: memref<1x16x128xf32, #tpu.memory_space<vmem>>, %arg7: memref<1x1x128x128xf32, #tpu.memory_space<vmem>>, %arg8: memref<1x16x128xf32, #tpu.memory_space<vmem>>, %arg9: memref<1x16x128xf32, #tpu.memory_space<vmem>>, %arg10: memref<128x512xf32, #tpu.memory_space<vmem>>) attributes {dimension_semantics = [#tpu.dimension_semantics<parallel>, #tpu.dimension_semantics<arbitrary>], iteration_bounds = array<i64: 1, 1>, scalar_prefetch = 0 : i64, scratch_operands = 1 : i64, tpu.core_type = #tpu.core_type<tc>, window_params = [{transform_indices = @transform_0, window_bounds = array<i64: 1, 1, 128, 16>}, {pipeline_mode = #tpu.pipeline_mode<synchronous>, transform_indices = @transform_1, window_bounds = array<i64: 16, 512>}, {pipeline_mode = #tpu.pipeline_mode<synchronous>, transform_indices = @transform_2, window_bounds = array<i64: 128, 512>}, {transform_indices = @transform_3, window_bounds = array<i64: 1, 16, 128>}, {transform_indices = @transform_4, window_bounds = array<i64: 1, 16, 128>}, {transform_indices = @transform_5, window_bounds = array<i64: 1, 1, 128, 128>}, {transform_indices = @transform_6, window_bounds = array<i64: 1, 16, 128>}, {transform_indices = @transform_7, window_bounds = array<i64: 1, 16, 128>}]} {
    %c0_i32 = arith.constant 0 : i32
    %0 = arith.cmpi eq, %arg1, %c0_i32 : i32
    %1 = arith.extui %0 : i1 to i32
    %c0_i32_0 = arith.constant 0 : i32
    %2 = arith.cmpi ne, %1, %c0_i32_0 : i32
    scf.if %2 {
      %c0_156 = arith.constant 0 : index
      %c0_157 = arith.constant 0 : index
      %c0_158 = arith.constant 0 : index
      %362 = vector.load %arg5[%c0_156, %c0_157, %c0_158] : memref<1x16x128xf32, #tpu.memory_space<vmem>>, vector<1x16x128xf32>
      %363 = vector.shape_cast %362 : vector<1x16x128xf32> to vector<16x128xf32>
      %c0_159 = arith.constant 0 : index
      %c0_160 = arith.constant 0 : index
      %c0_161 = arith.constant 0 : index
      %364 = vector.load %arg8[%c0_159, %c0_160, %c0_161] : memref<1x16x128xf32, #tpu.memory_space<vmem>>, vector<1x16x128xf32>
      %365 = vector.shape_cast %364 : vector<1x16x128xf32> to vector<16x128xf32>
      %366 = vector.shape_cast %363 : vector<16x128xf32> to vector<1x16x128xf32>
      tpu.vector_store %arg8[%c0_159, %c0_160, %c0_161], %366 {strides = array<i32>} : memref<1x16x128xf32, #tpu.memory_space<vmem>>, vector<1x16x128xf32>,
      %c0_162 = arith.constant 0 : index
      %c0_163 = arith.constant 0 : index
      %c0_164 = arith.constant 0 : index
      %367 = vector.load %arg6[%c0_162, %c0_163, %c0_164] : memref<1x16x128xf32, #tpu.memory_space<vmem>>, vector<1x16x128xf32>
      %368 = vector.shape_cast %367 : vector<1x16x128xf32> to vector<16x128xf32>
      %c0_165 = arith.constant 0 : index
      %c0_166 = arith.constant 0 : index
      %c0_167 = arith.constant 0 : index
      %369 = vector.load %arg9[%c0_165, %c0_166, %c0_167] : memref<1x16x128xf32, #tpu.memory_space<vmem>>, vector<1x16x128xf32>
      %370 = vector.shape_cast %369 : vector<1x16x128xf32> to vector<16x128xf32>
      %371 = vector.shape_cast %368 : vector<16x128xf32> to vector<1x16x128xf32>
      tpu.vector_store %arg9[%c0_165, %c0_166, %c0_167], %371 {strides = array<i32>} : memref<1x16x128xf32, #tpu.memory_space<vmem>>, vector<1x16x128xf32>,
    } else {
    }
    %c0 = arith.constant 0 : index
    %c0_1 = arith.constant 0 : index
    %c0_2 = arith.constant 0 : index
    %c0_3 = arith.constant 0 : index
    %3 = vector.load %arg2[%c0, %c0_1, %c0_2, %c0_3] : memref<1x1x128x16xbf16, #tpu.memory_space<vmem>>, vector<1x1x128x16xbf16>
    %4 = vector.shape_cast %3 : vector<1x1x128x16xbf16> to vector<128x16xbf16>
    %c0_4 = arith.constant 0 : index
    %c0_5 = arith.constant 0 : index
    %5 = vector.load %arg3[%c0_4, %c0_5] : memref<16x512xbf16, #tpu.memory_space<vmem>>, vector<16x512xbf16>
    %cst = arith.constant dense<0.000000e+00> : vector<128x512xf32>
    %6 = tpu.matmul %4, %5, %cst {dimension_numbers = #tpu.dot_dimension_numbers<[1], [0], [0], [1], [0, 0, 1, 1], [], []>} : vector<128x16xbf16>, vector<16x512xbf16>, vector<128x512xf32> -> vector<128x512xf32>
    %c0_6 = arith.constant 0 : index
    %c0_7 = arith.constant 0 : index
    %7 = vector.load %arg10[%c0_6, %c0_7] : memref<128x512xf32, #tpu.memory_space<vmem>>, vector<128x512xf32>
    tpu.vector_store %arg10[%c0_6, %c0_7], %6 {strides = array<i32>} : memref<128x512xf32, #tpu.memory_space<vmem>>, vector<128x512xf32>,
    %c0_8 = arith.constant 0 : index
    %c0_9 = arith.constant 0 : index
    %c0_10 = arith.constant 0 : index
    %8 = vector.load %arg8[%c0_8, %c0_9, %c0_10] : memref<1x16x128xf32, #tpu.memory_space<vmem>>, vector<1x16x128xf32>
    %9 = vector.shape_cast %8 : vector<1x16x128xf32> to vector<16x128xf32>
    %c0_11 = arith.constant 0 : index
    %c0_12 = arith.constant 0 : index
    %c0_13 = arith.constant 0 : index
    %10 = vector.load %arg9[%c0_11, %c0_12, %c0_13] : memref<1x16x128xf32, #tpu.memory_space<vmem>>, vector<1x16x128xf32>
    %11 = vector.shape_cast %10 : vector<1x16x128xf32> to vector<16x128xf32>
    %c0_i32_14 = arith.constant 0 : i32
    %c16_i32 = arith.constant 16 : i32
    %12 = arith.muli %c0_i32_14, %c16_i32 : i32
    %13 = tpu.assume_multiple %12, 16 : i32
    %14 = arith.index_cast %13 : i32 to index
    %c0_15 = arith.constant 0 : index
    %15 = vector.load %arg10[%14, %c0_15] : memref<128x512xf32, #tpu.memory_space<vmem>>, vector<16x512xf32>
    %16 = arith.truncf %9 : vector<16x128xf32> to vector<16x128xbf16>
    %c0_16 = arith.constant 0 : index
    %c0_17 = arith.constant 0 : index
    %17 = vector.load %arg4[%c0_16, %c0_17] : memref<128x512xbf16, #tpu.memory_space<vmem>>, vector<128x512xbf16>
    %cst_18 = arith.constant dense<0.000000e+00> : vector<16x512xf32>
    %18 = tpu.matmul %16, %17, %cst_18 {dimension_numbers = #tpu.dot_dimension_numbers<[1], [0], [0], [1], [0, 0, 1, 1], [], []>} : vector<16x128xbf16>, vector<128x512xbf16>, vector<16x512xf32> -> vector<16x512xf32>
    %19 = arith.addf %15, %18 : vector<16x512xf32>
    %20 = vector.extract_strided_slice %19 {offsets = [0, 0], sizes = [16, 128], strides = [1, 1]} : vector<16x512xf32> to vector<16x128xf32>
    %cst_19 = arith.constant 5.000000e-01 : f32
    %21 = vector.broadcast %cst_19 : f32 to vector<16x128xf32>
    %22 = arith.mulf %21, %20 : vector<16x128xf32>
    %23 = math.tanh %22 : vector<16x128xf32>
    %cst_20 = arith.constant 5.000000e-01 : f32
    %24 = vector.broadcast %cst_20 : f32 to vector<16x128xf32>
    %25 = arith.mulf %24, %23 : vector<16x128xf32>
    %cst_21 = arith.constant 5.000000e-01 : f32
    %26 = vector.broadcast %cst_21 : f32 to vector<16x128xf32>
    %27 = arith.addf %25, %26 : vector<16x128xf32>
    %28 = vector.extract_strided_slice %19 {offsets = [0, 128], sizes = [16, 128], strides = [1, 1]} : vector<16x512xf32> to vector<16x128xf32>
    %cst_22 = arith.constant 5.000000e-01 : f32
    %29 = vector.broadcast %cst_22 : f32 to vector<16x128xf32>
    %30 = arith.mulf %29, %28 : vector<16x128xf32>
    %31 = math.tanh %30 : vector<16x128xf32>
    %cst_23 = arith.constant 5.000000e-01 : f32
    %32 = vector.broadcast %cst_23 : f32 to vector<16x128xf32>
    %33 = arith.mulf %32, %31 : vector<16x128xf32>
    %cst_24 = arith.constant 5.000000e-01 : f32
    %34 = vector.broadcast %cst_24 : f32 to vector<16x128xf32>
    %35 = arith.addf %33, %34 : vector<16x128xf32>
    %36 = vector.extract_strided_slice %19 {offsets = [0, 256], sizes = [16, 128], strides = [1, 1]} : vector<16x512xf32> to vector<16x128xf32>
    %37 = math.tanh %36 : vector<16x128xf32>
    %38 = vector.extract_strided_slice %19 {offsets = [0, 384], sizes = [16, 128], strides = [1, 1]} : vector<16x512xf32> to vector<16x128xf32>
    %cst_25 = arith.constant 5.000000e-01 : f32
    %39 = vector.broadcast %cst_25 : f32 to vector<16x128xf32>
    %40 = arith.mulf %39, %38 : vector<16x128xf32>
    %41 = math.tanh %40 : vector<16x128xf32>
    %cst_26 = arith.constant 5.000000e-01 : f32
    %42 = vector.broadcast %cst_26 : f32 to vector<16x128xf32>
    %43 = arith.mulf %42, %41 : vector<16x128xf32>
    %cst_27 = arith.constant 5.000000e-01 : f32
    %44 = vector.broadcast %cst_27 : f32 to vector<16x128xf32>
    %45 = arith.addf %43, %44 : vector<16x128xf32>
    %46 = arith.mulf %35, %11 : vector<16x128xf32>
    %47 = arith.mulf %27, %37 : vector<16x128xf32>
    %48 = arith.addf %46, %47 : vector<16x128xf32>
    %49 = math.tanh %48 : vector<16x128xf32>
    %50 = arith.mulf %45, %49 : vector<16x128xf32>
    %c0_28 = arith.constant 0 : index
    %c0_29 = arith.constant 0 : index
    %51 = arith.index_cast %13 : i32 to index
    %c0_30 = arith.constant 0 : index
    %52 = vector.load %arg7[%c0_28, %c0_29, %51, %c0_30] : memref<1x1x128x128xf32, #tpu.memory_space<vmem>>, vector<1x1x16x128xf32>
    %53 = vector.shape_cast %52 : vector<1x1x16x128xf32> to vector<16x128xf32>
    %54 = vector.shape_cast %50 : vector<16x128xf32> to vector<1x1x16x128xf32>
    tpu.vector_store %arg7[%c0_28, %c0_29, %51, %c0_30], %54 {strides = array<i32>} : memref<1x1x128x128xf32, #tpu.memory_space<vmem>>, vector<1x1x16x128xf32>,
    %c1_i32 = arith.constant 1 : i32
    %c16_i32_31 = arith.constant 16 : i32
    %55 = arith.muli %c1_i32, %c16_i32_31 : i32
    %56 = tpu.assume_multiple %55, 16 : i32
    %57 = arith.index_cast %56 : i32 to index
    %c0_32 = arith.constant 0 : index
    %58 = vector.load %arg10[%57, %c0_32] : memref<128x512xf32, #tpu.memory_space<vmem>>, vector<16x512xf32>
    %59 = arith.truncf %50 : vector<16x128xf32> to vector<16x128xbf16>
    %c0_33 = arith.constant 0 : index
    %c0_34 = arith.constant 0 : index
    %60 = vector.load %arg4[%c0_33, %c0_34] : memref<128x512xbf16, #tpu.memory_space<vmem>>, vector<128x512xbf16>
    %cst_35 = arith.constant dense<0.000000e+00> : vector<16x512xf32>
    %61 = tpu.matmul %59, %60, %cst_35 {dimension_numbers = #tpu.dot_dimension_numbers<[1], [0], [0], [1], [0, 0, 1, 1], [], []>} : vector<16x128xbf16>, vector<128x512xbf16>, vector<16x512xf32> -> vector<16x512xf32>
    %62 = arith.addf %58, %61 : vector<16x512xf32>
    %63 = vector.extract_strided_slice %62 {offsets = [0, 0], sizes = [16, 128], strides = [1, 1]} : vector<16x512xf32> to vector<16x128xf32>
    %cst_36 = arith.constant 5.000000e-01 : f32
    %64 = vector.broadcast %cst_36 : f32 to vector<16x128xf32>
    %65 = arith.mulf %64, %63 : vector<16x128xf32>
    %66 = math.tanh %65 : vector<16x128xf32>
    %cst_37 = arith.constant 5.000000e-01 : f32
    %67 = vector.broadcast %cst_37 : f32 to vector<16x128xf32>
    %68 = arith.mulf %67, %66 : vector<16x128xf32>
    %cst_38 = arith.constant 5.000000e-01 : f32
    %69 = vector.broadcast %cst_38 : f32 to vector<16x128xf32>
    %70 = arith.addf %68, %69 : vector<16x128xf32>
    %71 = vector.extract_strided_slice %62 {offsets = [0, 128], sizes = [16, 128], strides = [1, 1]} : vector<16x512xf32> to vector<16x128xf32>
    %cst_39 = arith.constant 5.000000e-01 : f32
    %72 = vector.broadcast %cst_39 : f32 to vector<16x128xf32>
    %73 = arith.mulf %72, %71 : vector<16x128xf32>
    %74 = math.tanh %73 : vector<16x128xf32>
    %cst_40 = arith.constant 5.000000e-01 : f32
    %75 = vector.broadcast %cst_40 : f32 to vector<16x128xf32>
    %76 = arith.mulf %75, %74 : vector<16x128xf32>
    %cst_41 = arith.constant 5.000000e-01 : f32
    %77 = vector.broadcast %cst_41 : f32 to vector<16x128xf32>
    %78 = arith.addf %76, %77 : vector<16x128xf32>
    %79 = vector.extract_strided_slice %62 {offsets = [0, 256], sizes = [16, 128], strides = [1, 1]} : vector<16x512xf32> to vector<16x128xf32>
    %80 = math.tanh %79 : vector<16x128xf32>
    %81 = vector.extract_strided_slice %62 {offsets = [0, 384], sizes = [16, 128], strides = [1, 1]} : vector<16x512xf32> to vector<16x128xf32>
    %cst_42 = arith.constant 5.000000e-01 : f32
    %82 = vector.broadcast %cst_42 : f32 to vector<16x128xf32>
    %83 = arith.mulf %82, %81 : vector<16x128xf32>
    %84 = math.tanh %83 : vector<16x128xf32>
    %cst_43 = arith.constant 5.000000e-01 : f32
    %85 = vector.broadcast %cst_43 : f32 to vector<16x128xf32>
    %86 = arith.mulf %85, %84 : vector<16x128xf32>
    %cst_44 = arith.constant 5.000000e-01 : f32
    %87 = vector.broadcast %cst_44 : f32 to vector<16x128xf32>
    %88 = arith.addf %86, %87 : vector<16x128xf32>
    %89 = arith.mulf %78, %48 : vector<16x128xf32>
    %90 = arith.mulf %70, %80 : vector<16x128xf32>
    %91 = arith.addf %89, %90 : vector<16x128xf32>
    %92 = math.tanh %91 : vector<16x128xf32>
    %93 = arith.mulf %88, %92 : vector<16x128xf32>
    %c0_45 = arith.constant 0 : index
    %c0_46 = arith.constant 0 : index
    %94 = arith.index_cast %56 : i32 to index
    %c0_47 = arith.constant 0 : index
    %95 = vector.load %arg7[%c0_45, %c0_46, %94, %c0_47] : memref<1x1x128x128xf32, #tpu.memory_space<vmem>>, vector<1x1x16x128xf32>
    %96 = vector.shape_cast %95 : vector<1x1x16x128xf32> to vector<16x128xf32>
    %97 = vector.shape_cast %93 : vector<16x128xf32> to vector<1x1x16x128xf32>
    tpu.vector_store %arg7[%c0_45, %c0_46, %94, %c0_47], %97 {strides = array<i32>} : memref<1x1x128x128xf32, #tpu.memory_space<vmem>>, vector<1x1x16x128xf32>,
    %c2_i32 = arith.constant 2 : i32
    %c16_i32_48 = arith.constant 16 : i32
    %98 = arith.muli %c2_i32, %c16_i32_48 : i32
    %99 = tpu.assume_multiple %98, 16 : i32
    %100 = arith.index_cast %99 : i32 to index
    %c0_49 = arith.constant 0 : index
    %101 = vector.load %arg10[%100, %c0_49] : memref<128x512xf32, #tpu.memory_space<vmem>>, vector<16x512xf32>
    %102 = arith.truncf %93 : vector<16x128xf32> to vector<16x128xbf16>
    %c0_50 = arith.constant 0 : index
    %c0_51 = arith.constant 0 : index
    %103 = vector.load %arg4[%c0_50, %c0_51] : memref<128x512xbf16, #tpu.memory_space<vmem>>, vector<128x512xbf16>
    %cst_52 = arith.constant dense<0.000000e+00> : vector<16x512xf32>
    %104 = tpu.matmul %102, %103, %cst_52 {dimension_numbers = #tpu.dot_dimension_numbers<[1], [0], [0], [1], [0, 0, 1, 1], [], []>} : vector<16x128xbf16>, vector<128x512xbf16>, vector<16x512xf32> -> vector<16x512xf32>
    %105 = arith.addf %101, %104 : vector<16x512xf32>
    %106 = vector.extract_strided_slice %105 {offsets = [0, 0], sizes = [16, 128], strides = [1, 1]} : vector<16x512xf32> to vector<16x128xf32>
    %cst_53 = arith.constant 5.000000e-01 : f32
    %107 = vector.broadcast %cst_53 : f32 to vector<16x128xf32>
    %108 = arith.mulf %107, %106 : vector<16x128xf32>
    %109 = math.tanh %108 : vector<16x128xf32>
    %cst_54 = arith.constant 5.000000e-01 : f32
    %110 = vector.broadcast %cst_54 : f32 to vector<16x128xf32>
    %111 = arith.mulf %110, %109 : vector<16x128xf32>
    %cst_55 = arith.constant 5.000000e-01 : f32
    %112 = vector.broadcast %cst_55 : f32 to vector<16x128xf32>
    %113 = arith.addf %111, %112 : vector<16x128xf32>
    %114 = vector.extract_strided_slice %105 {offsets = [0, 128], sizes = [16, 128], strides = [1, 1]} : vector<16x512xf32> to vector<16x128xf32>
    %cst_56 = arith.constant 5.000000e-01 : f32
    %115 = vector.broadcast %cst_56 : f32 to vector<16x128xf32>
    %116 = arith.mulf %115, %114 : vector<16x128xf32>
    %117 = math.tanh %116 : vector<16x128xf32>
    %cst_57 = arith.constant 5.000000e-01 : f32
    %118 = vector.broadcast %cst_57 : f32 to vector<16x128xf32>
    %119 = arith.mulf %118, %117 : vector<16x128xf32>
    %cst_58 = arith.constant 5.000000e-01 : f32
    %120 = vector.broadcast %cst_58 : f32 to vector<16x128xf32>
    %121 = arith.addf %119, %120 : vector<16x128xf32>
    %122 = vector.extract_strided_slice %105 {offsets = [0, 256], sizes = [16, 128], strides = [1, 1]} : vector<16x512xf32> to vector<16x128xf32>
    %123 = math.tanh %122 : vector<16x128xf32>
    %124 = vector.extract_strided_slice %105 {offsets = [0, 384], sizes = [16, 128], strides = [1, 1]} : vector<16x512xf32> to vector<16x128xf32>
    %cst_59 = arith.constant 5.000000e-01 : f32
    %125 = vector.broadcast %cst_59 : f32 to vector<16x128xf32>
    %126 = arith.mulf %125, %124 : vector<16x128xf32>
    %127 = math.tanh %126 : vector<16x128xf32>
    %cst_60 = arith.constant 5.000000e-01 : f32
    %128 = vector.broadcast %cst_60 : f32 to vector<16x128xf32>
    %129 = arith.mulf %128, %127 : vector<16x128xf32>
    %cst_61 = arith.constant 5.000000e-01 : f32
    %130 = vector.broadcast %cst_61 : f32 to vector<16x128xf32>
    %131 = arith.addf %129, %130 : vector<16x128xf32>
    %132 = arith.mulf %121, %91 : vector<16x128xf32>
    %133 = arith.mulf %113, %123 : vector<16x128xf32>
    %134 = arith.addf %132, %133 : vector<16x128xf32>
    %135 = math.tanh %134 : vector<16x128xf32>
    %136 = arith.mulf %131, %135 : vector<16x128xf32>
    %c0_62 = arith.constant 0 : index
    %c0_63 = arith.constant 0 : index
    %137 = arith.index_cast %99 : i32 to index
    %c0_64 = arith.constant 0 : index
    %138 = vector.load %arg7[%c0_62, %c0_63, %137, %c0_64] : memref<1x1x128x128xf32, #tpu.memory_space<vmem>>, vector<1x1x16x128xf32>
    %139 = vector.shape_cast %138 : vector<1x1x16x128xf32> to vector<16x128xf32>
    %140 = vector.shape_cast %136 : vector<16x128xf32> to vector<1x1x16x128xf32>
    tpu.vector_store %arg7[%c0_62, %c0_63, %137, %c0_64], %140 {strides = array<i32>} : memref<1x1x128x128xf32, #tpu.memory_space<vmem>>, vector<1x1x16x128xf32>,
    %c3_i32 = arith.constant 3 : i32
    %c16_i32_65 = arith.constant 16 : i32
    %141 = arith.muli %c3_i32, %c16_i32_65 : i32
    %142 = tpu.assume_multiple %141, 16 : i32
    %143 = arith.index_cast %142 : i32 to index
    %c0_66 = arith.constant 0 : index
    %144 = vector.load %arg10[%143, %c0_66] : memref<128x512xf32, #tpu.memory_space<vmem>>, vector<16x512xf32>
    %145 = arith.truncf %136 : vector<16x128xf32> to vector<16x128xbf16>
    %c0_67 = arith.constant 0 : index
    %c0_68 = arith.constant 0 : index
    %146 = vector.load %arg4[%c0_67, %c0_68] : memref<128x512xbf16, #tpu.memory_space<vmem>>, vector<128x512xbf16>
    %cst_69 = arith.constant dense<0.000000e+00> : vector<16x512xf32>
    %147 = tpu.matmul %145, %146, %cst_69 {dimension_numbers = #tpu.dot_dimension_numbers<[1], [0], [0], [1], [0, 0, 1, 1], [], []>} : vector<16x128xbf16>, vector<128x512xbf16>, vector<16x512xf32> -> vector<16x512xf32>
    %148 = arith.addf %144, %147 : vector<16x512xf32>
    %149 = vector.extract_strided_slice %148 {offsets = [0, 0], sizes = [16, 128], strides = [1, 1]} : vector<16x512xf32> to vector<16x128xf32>
    %cst_70 = arith.constant 5.000000e-01 : f32
    %150 = vector.broadcast %cst_70 : f32 to vector<16x128xf32>
    %151 = arith.mulf %150, %149 : vector<16x128xf32>
    %152 = math.tanh %151 : vector<16x128xf32>
    %cst_71 = arith.constant 5.000000e-01 : f32
    %153 = vector.broadcast %cst_71 : f32 to vector<16x128xf32>
    %154 = arith.mulf %153, %152 : vector<16x128xf32>
    %cst_72 = arith.constant 5.000000e-01 : f32
    %155 = vector.broadcast %cst_72 : f32 to vector<16x128xf32>
    %156 = arith.addf %154, %155 : vector<16x128xf32>
    %157 = vector.extract_strided_slice %148 {offsets = [0, 128], sizes = [16, 128], strides = [1, 1]} : vector<16x512xf32> to vector<16x128xf32>
    %cst_73 = arith.constant 5.000000e-01 : f32
    %158 = vector.broadcast %cst_73 : f32 to vector<16x128xf32>
    %159 = arith.mulf %158, %157 : vector<16x128xf32>
    %160 = math.tanh %159 : vector<16x128xf32>
    %cst_74 = arith.constant 5.000000e-01 : f32
    %161 = vector.broadcast %cst_74 : f32 to vector<16x128xf32>
    %162 = arith.mulf %161, %160 : vector<16x128xf32>
    %cst_75 = arith.constant 5.000000e-01 : f32
    %163 = vector.broadcast %cst_75 : f32 to vector<16x128xf32>
    %164 = arith.addf %162, %163 : vector<16x128xf32>
    %165 = vector.extract_strided_slice %148 {offsets = [0, 256], sizes = [16, 128], strides = [1, 1]} : vector<16x512xf32> to vector<16x128xf32>
    %166 = math.tanh %165 : vector<16x128xf32>
    %167 = vector.extract_strided_slice %148 {offsets = [0, 384], sizes = [16, 128], strides = [1, 1]} : vector<16x512xf32> to vector<16x128xf32>
    %cst_76 = arith.constant 5.000000e-01 : f32
    %168 = vector.broadcast %cst_76 : f32 to vector<16x128xf32>
    %169 = arith.mulf %168, %167 : vector<16x128xf32>
    %170 = math.tanh %169 : vector<16x128xf32>
    %cst_77 = arith.constant 5.000000e-01 : f32
    %171 = vector.broadcast %cst_77 : f32 to vector<16x128xf32>
    %172 = arith.mulf %171, %170 : vector<16x128xf32>
    %cst_78 = arith.constant 5.000000e-01 : f32
    %173 = vector.broadcast %cst_78 : f32 to vector<16x128xf32>
    %174 = arith.addf %172, %173 : vector<16x128xf32>
    %175 = arith.mulf %164, %134 : vector<16x128xf32>
    %176 = arith.mulf %156, %166 : vector<16x128xf32>
    %177 = arith.addf %175, %176 : vector<16x128xf32>
    %178 = math.tanh %177 : vector<16x128xf32>
    %179 = arith.mulf %174, %178 : vector<16x128xf32>
    %c0_79 = arith.constant 0 : index
    %c0_80 = arith.constant 0 : index
    %180 = arith.index_cast %142 : i32 to index
    %c0_81 = arith.constant 0 : index
    %181 = vector.load %arg7[%c0_79, %c0_80, %180, %c0_81] : memref<1x1x128x128xf32, #tpu.memory_space<vmem>>, vector<1x1x16x128xf32>
    %182 = vector.shape_cast %181 : vector<1x1x16x128xf32> to vector<16x128xf32>
    %183 = vector.shape_cast %179 : vector<16x128xf32> to vector<1x1x16x128xf32>
    tpu.vector_store %arg7[%c0_79, %c0_80, %180, %c0_81], %183 {strides = array<i32>} : memref<1x1x128x128xf32, #tpu.memory_space<vmem>>, vector<1x1x16x128xf32>,
    %c4_i32 = arith.constant 4 : i32
    %c16_i32_82 = arith.constant 16 : i32
    %184 = arith.muli %c4_i32, %c16_i32_82 : i32
    %185 = tpu.assume_multiple %184, 16 : i32
    %186 = arith.index_cast %185 : i32 to index
    %c0_83 = arith.constant 0 : index
    %187 = vector.load %arg10[%186, %c0_83] : memref<128x512xf32, #tpu.memory_space<vmem>>, vector<16x512xf32>
    %188 = arith.truncf %179 : vector<16x128xf32> to vector<16x128xbf16>
    %c0_84 = arith.constant 0 : index
    %c0_85 = arith.constant 0 : index
    %189 = vector.load %arg4[%c0_84, %c0_85] : memref<128x512xbf16, #tpu.memory_space<vmem>>, vector<128x512xbf16>
    %cst_86 = arith.constant dense<0.000000e+00> : vector<16x512xf32>
    %190 = tpu.matmul %188, %189, %cst_86 {dimension_numbers = #tpu.dot_dimension_numbers<[1], [0], [0], [1], [0, 0, 1, 1], [], []>} : vector<16x128xbf16>, vector<128x512xbf16>, vector<16x512xf32> -> vector<16x512xf32>
    %191 = arith.addf %187, %190 : vector<16x512xf32>
    %192 = vector.extract_strided_slice %191 {offsets = [0, 0], sizes = [16, 128], strides = [1, 1]} : vector<16x512xf32> to vector<16x128xf32>
    %cst_87 = arith.constant 5.000000e-01 : f32
    %193 = vector.broadcast %cst_87 : f32 to vector<16x128xf32>
    %194 = arith.mulf %193, %192 : vector<16x128xf32>
    %195 = math.tanh %194 : vector<16x128xf32>
    %cst_88 = arith.constant 5.000000e-01 : f32
    %196 = vector.broadcast %cst_88 : f32 to vector<16x128xf32>
    %197 = arith.mulf %196, %195 : vector<16x128xf32>
    %cst_89 = arith.constant 5.000000e-01 : f32
    %198 = vector.broadcast %cst_89 : f32 to vector<16x128xf32>
    %199 = arith.addf %197, %198 : vector<16x128xf32>
    %200 = vector.extract_strided_slice %191 {offsets = [0, 128], sizes = [16, 128], strides = [1, 1]} : vector<16x512xf32> to vector<16x128xf32>
    %cst_90 = arith.constant 5.000000e-01 : f32
    %201 = vector.broadcast %cst_90 : f32 to vector<16x128xf32>
    %202 = arith.mulf %201, %200 : vector<16x128xf32>
    %203 = math.tanh %202 : vector<16x128xf32>
    %cst_91 = arith.constant 5.000000e-01 : f32
    %204 = vector.broadcast %cst_91 : f32 to vector<16x128xf32>
    %205 = arith.mulf %204, %203 : vector<16x128xf32>
    %cst_92 = arith.constant 5.000000e-01 : f32
    %206 = vector.broadcast %cst_92 : f32 to vector<16x128xf32>
    %207 = arith.addf %205, %206 : vector<16x128xf32>
    %208 = vector.extract_strided_slice %191 {offsets = [0, 256], sizes = [16, 128], strides = [1, 1]} : vector<16x512xf32> to vector<16x128xf32>
    %209 = math.tanh %208 : vector<16x128xf32>
    %210 = vector.extract_strided_slice %191 {offsets = [0, 384], sizes = [16, 128], strides = [1, 1]} : vector<16x512xf32> to vector<16x128xf32>
    %cst_93 = arith.constant 5.000000e-01 : f32
    %211 = vector.broadcast %cst_93 : f32 to vector<16x128xf32>
    %212 = arith.mulf %211, %210 : vector<16x128xf32>
    %213 = math.tanh %212 : vector<16x128xf32>
    %cst_94 = arith.constant 5.000000e-01 : f32
    %214 = vector.broadcast %cst_94 : f32 to vector<16x128xf32>
    %215 = arith.mulf %214, %213 : vector<16x128xf32>
    %cst_95 = arith.constant 5.000000e-01 : f32
    %216 = vector.broadcast %cst_95 : f32 to vector<16x128xf32>
    %217 = arith.addf %215, %216 : vector<16x128xf32>
    %218 = arith.mulf %207, %177 : vector<16x128xf32>
    %219 = arith.mulf %199, %209 : vector<16x128xf32>
    %220 = arith.addf %218, %219 : vector<16x128xf32>
    %221 = math.tanh %220 : vector<16x128xf32>
    %222 = arith.mulf %217, %221 : vector<16x128xf32>
    %c0_96 = arith.constant 0 : index
    %c0_97 = arith.constant 0 : index
    %223 = arith.index_cast %185 : i32 to index
    %c0_98 = arith.constant 0 : index
    %224 = vector.load %arg7[%c0_96, %c0_97, %223, %c0_98] : memref<1x1x128x128xf32, #tpu.memory_space<vmem>>, vector<1x1x16x128xf32>
    %225 = vector.shape_cast %224 : vector<1x1x16x128xf32> to vector<16x128xf32>
    %226 = vector.shape_cast %222 : vector<16x128xf32> to vector<1x1x16x128xf32>
    tpu.vector_store %arg7[%c0_96, %c0_97, %223, %c0_98], %226 {strides = array<i32>} : memref<1x1x128x128xf32, #tpu.memory_space<vmem>>, vector<1x1x16x128xf32>,
    %c5_i32 = arith.constant 5 : i32
    %c16_i32_99 = arith.constant 16 : i32
    %227 = arith.muli %c5_i32, %c16_i32_99 : i32
    %228 = tpu.assume_multiple %227, 16 : i32
    %229 = arith.index_cast %228 : i32 to index
    %c0_100 = arith.constant 0 : index
    %230 = vector.load %arg10[%229, %c0_100] : memref<128x512xf32, #tpu.memory_space<vmem>>, vector<16x512xf32>
    %231 = arith.truncf %222 : vector<16x128xf32> to vector<16x128xbf16>
    %c0_101 = arith.constant 0 : index
    %c0_102 = arith.constant 0 : index
    %232 = vector.load %arg4[%c0_101, %c0_102] : memref<128x512xbf16, #tpu.memory_space<vmem>>, vector<128x512xbf16>
    %cst_103 = arith.constant dense<0.000000e+00> : vector<16x512xf32>
    %233 = tpu.matmul %231, %232, %cst_103 {dimension_numbers = #tpu.dot_dimension_numbers<[1], [0], [0], [1], [0, 0, 1, 1], [], []>} : vector<16x128xbf16>, vector<128x512xbf16>, vector<16x512xf32> -> vector<16x512xf32>
    %234 = arith.addf %230, %233 : vector<16x512xf32>
    %235 = vector.extract_strided_slice %234 {offsets = [0, 0], sizes = [16, 128], strides = [1, 1]} : vector<16x512xf32> to vector<16x128xf32>
    %cst_104 = arith.constant 5.000000e-01 : f32
    %236 = vector.broadcast %cst_104 : f32 to vector<16x128xf32>
    %237 = arith.mulf %236, %235 : vector<16x128xf32>
    %238 = math.tanh %237 : vector<16x128xf32>
    %cst_105 = arith.constant 5.000000e-01 : f32
    %239 = vector.broadcast %cst_105 : f32 to vector<16x128xf32>
    %240 = arith.mulf %239, %238 : vector<16x128xf32>
    %cst_106 = arith.constant 5.000000e-01 : f32
    %241 = vector.broadcast %cst_106 : f32 to vector<16x128xf32>
    %242 = arith.addf %240, %241 : vector<16x128xf32>
    %243 = vector.extract_strided_slice %234 {offsets = [0, 128], sizes = [16, 128], strides = [1, 1]} : vector<16x512xf32> to vector<16x128xf32>
    %cst_107 = arith.constant 5.000000e-01 : f32
    %244 = vector.broadcast %cst_107 : f32 to vector<16x128xf32>
    %245 = arith.mulf %244, %243 : vector<16x128xf32>
    %246 = math.tanh %245 : vector<16x128xf32>
    %cst_108 = arith.constant 5.000000e-01 : f32
    %247 = vector.broadcast %cst_108 : f32 to vector<16x128xf32>
    %248 = arith.mulf %247, %246 : vector<16x128xf32>
    %cst_109 = arith.constant 5.000000e-01 : f32
    %249 = vector.broadcast %cst_109 : f32 to vector<16x128xf32>
    %250 = arith.addf %248, %249 : vector<16x128xf32>
    %251 = vector.extract_strided_slice %234 {offsets = [0, 256], sizes = [16, 128], strides = [1, 1]} : vector<16x512xf32> to vector<16x128xf32>
    %252 = math.tanh %251 : vector<16x128xf32>
    %253 = vector.extract_strided_slice %234 {offsets = [0, 384], sizes = [16, 128], strides = [1, 1]} : vector<16x512xf32> to vector<16x128xf32>
    %cst_110 = arith.constant 5.000000e-01 : f32
    %254 = vector.broadcast %cst_110 : f32 to vector<16x128xf32>
    %255 = arith.mulf %254, %253 : vector<16x128xf32>
    %256 = math.tanh %255 : vector<16x128xf32>
    %cst_111 = arith.constant 5.000000e-01 : f32
    %257 = vector.broadcast %cst_111 : f32 to vector<16x128xf32>
    %258 = arith.mulf %257, %256 : vector<16x128xf32>
    %cst_112 = arith.constant 5.000000e-01 : f32
    %259 = vector.broadcast %cst_112 : f32 to vector<16x128xf32>
    %260 = arith.addf %258, %259 : vector<16x128xf32>
    %261 = arith.mulf %250, %220 : vector<16x128xf32>
    %262 = arith.mulf %242, %252 : vector<16x128xf32>
    %263 = arith.addf %261, %262 : vector<16x128xf32>
    %264 = math.tanh %263 : vector<16x128xf32>
    %265 = arith.mulf %260, %264 : vector<16x128xf32>
    %c0_113 = arith.constant 0 : index
    %c0_114 = arith.constant 0 : index
    %266 = arith.index_cast %228 : i32 to index
    %c0_115 = arith.constant 0 : index
    %267 = vector.load %arg7[%c0_113, %c0_114, %266, %c0_115] : memref<1x1x128x128xf32, #tpu.memory_space<vmem>>, vector<1x1x16x128xf32>
    %268 = vector.shape_cast %267 : vector<1x1x16x128xf32> to vector<16x128xf32>
    %269 = vector.shape_cast %265 : vector<16x128xf32> to vector<1x1x16x128xf32>
    tpu.vector_store %arg7[%c0_113, %c0_114, %266, %c0_115], %269 {strides = array<i32>} : memref<1x1x128x128xf32, #tpu.memory_space<vmem>>, vector<1x1x16x128xf32>,
    %c6_i32 = arith.constant 6 : i32
    %c16_i32_116 = arith.constant 16 : i32
    %270 = arith.muli %c6_i32, %c16_i32_116 : i32
    %271 = tpu.assume_multiple %270, 16 : i32
    %272 = arith.index_cast %271 : i32 to index
    %c0_117 = arith.constant 0 : index
    %273 = vector.load %arg10[%272, %c0_117] : memref<128x512xf32, #tpu.memory_space<vmem>>, vector<16x512xf32>
    %274 = arith.truncf %265 : vector<16x128xf32> to vector<16x128xbf16>
    %c0_118 = arith.constant 0 : index
    %c0_119 = arith.constant 0 : index
    %275 = vector.load %arg4[%c0_118, %c0_119] : memref<128x512xbf16, #tpu.memory_space<vmem>>, vector<128x512xbf16>
    %cst_120 = arith.constant dense<0.000000e+00> : vector<16x512xf32>
    %276 = tpu.matmul %274, %275, %cst_120 {dimension_numbers = #tpu.dot_dimension_numbers<[1], [0], [0], [1], [0, 0, 1, 1], [], []>} : vector<16x128xbf16>, vector<128x512xbf16>, vector<16x512xf32> -> vector<16x512xf32>
    %277 = arith.addf %273, %276 : vector<16x512xf32>
    %278 = vector.extract_strided_slice %277 {offsets = [0, 0], sizes = [16, 128], strides = [1, 1]} : vector<16x512xf32> to vector<16x128xf32>
    %cst_121 = arith.constant 5.000000e-01 : f32
    %279 = vector.broadcast %cst_121 : f32 to vector<16x128xf32>
    %280 = arith.mulf %279, %278 : vector<16x128xf32>
    %281 = math.tanh %280 : vector<16x128xf32>
    %cst_122 = arith.constant 5.000000e-01 : f32
    %282 = vector.broadcast %cst_122 : f32 to vector<16x128xf32>
    %283 = arith.mulf %282, %281 : vector<16x128xf32>
    %cst_123 = arith.constant 5.000000e-01 : f32
    %284 = vector.broadcast %cst_123 : f32 to vector<16x128xf32>
    %285 = arith.addf %283, %284 : vector<16x128xf32>
    %286 = vector.extract_strided_slice %277 {offsets = [0, 128], sizes = [16, 128], strides = [1, 1]} : vector<16x512xf32> to vector<16x128xf32>
    %cst_124 = arith.constant 5.000000e-01 : f32
    %287 = vector.broadcast %cst_124 : f32 to vector<16x128xf32>
    %288 = arith.mulf %287, %286 : vector<16x128xf32>
    %289 = math.tanh %288 : vector<16x128xf32>
    %cst_125 = arith.constant 5.000000e-01 : f32
    %290 = vector.broadcast %cst_125 : f32 to vector<16x128xf32>
    %291 = arith.mulf %290, %289 : vector<16x128xf32>
    %cst_126 = arith.constant 5.000000e-01 : f32
    %292 = vector.broadcast %cst_126 : f32 to vector<16x128xf32>
    %293 = arith.addf %291, %292 : vector<16x128xf32>
    %294 = vector.extract_strided_slice %277 {offsets = [0, 256], sizes = [16, 128], strides = [1, 1]} : vector<16x512xf32> to vector<16x128xf32>
    %295 = math.tanh %294 : vector<16x128xf32>
    %296 = vector.extract_strided_slice %277 {offsets = [0, 384], sizes = [16, 128], strides = [1, 1]} : vector<16x512xf32> to vector<16x128xf32>
    %cst_127 = arith.constant 5.000000e-01 : f32
    %297 = vector.broadcast %cst_127 : f32 to vector<16x128xf32>
    %298 = arith.mulf %297, %296 : vector<16x128xf32>
    %299 = math.tanh %298 : vector<16x128xf32>
    %cst_128 = arith.constant 5.000000e-01 : f32
    %300 = vector.broadcast %cst_128 : f32 to vector<16x128xf32>
    %301 = arith.mulf %300, %299 : vector<16x128xf32>
    %cst_129 = arith.constant 5.000000e-01 : f32
    %302 = vector.broadcast %cst_129 : f32 to vector<16x128xf32>
    %303 = arith.addf %301, %302 : vector<16x128xf32>
    %304 = arith.mulf %293, %263 : vector<16x128xf32>
    %305 = arith.mulf %285, %295 : vector<16x128xf32>
    %306 = arith.addf %304, %305 : vector<16x128xf32>
    %307 = math.tanh %306 : vector<16x128xf32>
    %308 = arith.mulf %303, %307 : vector<16x128xf32>
    %c0_130 = arith.constant 0 : index
    %c0_131 = arith.constant 0 : index
    %309 = arith.index_cast %271 : i32 to index
    %c0_132 = arith.constant 0 : index
    %310 = vector.load %arg7[%c0_130, %c0_131, %309, %c0_132] : memref<1x1x128x128xf32, #tpu.memory_space<vmem>>, vector<1x1x16x128xf32>
    %311 = vector.shape_cast %310 : vector<1x1x16x128xf32> to vector<16x128xf32>
    %312 = vector.shape_cast %308 : vector<16x128xf32> to vector<1x1x16x128xf32>
    tpu.vector_store %arg7[%c0_130, %c0_131, %309, %c0_132], %312 {strides = array<i32>} : memref<1x1x128x128xf32, #tpu.memory_space<vmem>>, vector<1x1x16x128xf32>,
    %c7_i32 = arith.constant 7 : i32
    %c16_i32_133 = arith.constant 16 : i32
    %313 = arith.muli %c7_i32, %c16_i32_133 : i32
    %314 = tpu.assume_multiple %313, 16 : i32
    %315 = arith.index_cast %314 : i32 to index
    %c0_134 = arith.constant 0 : index
    %316 = vector.load %arg10[%315, %c0_134] : memref<128x512xf32, #tpu.memory_space<vmem>>, vector<16x512xf32>
    %317 = arith.truncf %308 : vector<16x128xf32> to vector<16x128xbf16>
    %c0_135 = arith.constant 0 : index
    %c0_136 = arith.constant 0 : index
    %318 = vector.load %arg4[%c0_135, %c0_136] : memref<128x512xbf16, #tpu.memory_space<vmem>>, vector<128x512xbf16>
    %cst_137 = arith.constant dense<0.000000e+00> : vector<16x512xf32>
    %319 = tpu.matmul %317, %318, %cst_137 {dimension_numbers = #tpu.dot_dimension_numbers<[1], [0], [0], [1], [0, 0, 1, 1], [], []>} : vector<16x128xbf16>, vector<128x512xbf16>, vector<16x512xf32> -> vector<16x512xf32>
    %320 = arith.addf %316, %319 : vector<16x512xf32>
    %321 = vector.extract_strided_slice %320 {offsets = [0, 0], sizes = [16, 128], strides = [1, 1]} : vector<16x512xf32> to vector<16x128xf32>
    %cst_138 = arith.constant 5.000000e-01 : f32
    %322 = vector.broadcast %cst_138 : f32 to vector<16x128xf32>
    %323 = arith.mulf %322, %321 : vector<16x128xf32>
    %324 = math.tanh %323 : vector<16x128xf32>
    %cst_139 = arith.constant 5.000000e-01 : f32
    %325 = vector.broadcast %cst_139 : f32 to vector<16x128xf32>
    %326 = arith.mulf %325, %324 : vector<16x128xf32>
    %cst_140 = arith.constant 5.000000e-01 : f32
    %327 = vector.broadcast %cst_140 : f32 to vector<16x128xf32>
    %328 = arith.addf %326, %327 : vector<16x128xf32>
    %329 = vector.extract_strided_slice %320 {offsets = [0, 128], sizes = [16, 128], strides = [1, 1]} : vector<16x512xf32> to vector<16x128xf32>
    %cst_141 = arith.constant 5.000000e-01 : f32
    %330 = vector.broadcast %cst_141 : f32 to vector<16x128xf32>
    %331 = arith.mulf %330, %329 : vector<16x128xf32>
    %332 = math.tanh %331 : vector<16x128xf32>
    %cst_142 = arith.constant 5.000000e-01 : f32
    %333 = vector.broadcast %cst_142 : f32 to vector<16x128xf32>
    %334 = arith.mulf %333, %332 : vector<16x128xf32>
    %cst_143 = arith.constant 5.000000e-01 : f32
    %335 = vector.broadcast %cst_143 : f32 to vector<16x128xf32>
    %336 = arith.addf %334, %335 : vector<16x128xf32>
    %337 = vector.extract_strided_slice %320 {offsets = [0, 256], sizes = [16, 128], strides = [1, 1]} : vector<16x512xf32> to vector<16x128xf32>
    %338 = math.tanh %337 : vector<16x128xf32>
    %339 = vector.extract_strided_slice %320 {offsets = [0, 384], sizes = [16, 128], strides = [1, 1]} : vector<16x512xf32> to vector<16x128xf32>
    %cst_144 = arith.constant 5.000000e-01 : f32
    %340 = vector.broadcast %cst_144 : f32 to vector<16x128xf32>
    %341 = arith.mulf %340, %339 : vector<16x128xf32>
    %342 = math.tanh %341 : vector<16x128xf32>
    %cst_145 = arith.constant 5.000000e-01 : f32
    %343 = vector.broadcast %cst_145 : f32 to vector<16x128xf32>
    %344 = arith.mulf %343, %342 : vector<16x128xf32>
    %cst_146 = arith.constant 5.000000e-01 : f32
    %345 = vector.broadcast %cst_146 : f32 to vector<16x128xf32>
    %346 = arith.addf %344, %345 : vector<16x128xf32>
    %347 = arith.mulf %336, %306 : vector<16x128xf32>
    %348 = arith.mulf %328, %338 : vector<16x128xf32>
    %349 = arith.addf %347, %348 : vector<16x128xf32>
    %350 = math.tanh %349 : vector<16x128xf32>
    %351 = arith.mulf %346, %350 : vector<16x128xf32>
    %c0_147 = arith.constant 0 : index
    %c0_148 = arith.constant 0 : index
    %352 = arith.index_cast %314 : i32 to index
    %c0_149 = arith.constant 0 : index
    %353 = vector.load %arg7[%c0_147, %c0_148, %352, %c0_149] : memref<1x1x128x128xf32, #tpu.memory_space<vmem>>, vector<1x1x16x128xf32>
    %354 = vector.shape_cast %353 : vector<1x1x16x128xf32> to vector<16x128xf32>
    %355 = vector.shape_cast %351 : vector<16x128xf32> to vector<1x1x16x128xf32>
    tpu.vector_store %arg7[%c0_147, %c0_148, %352, %c0_149], %355 {strides = array<i32>} : memref<1x1x128x128xf32, #tpu.memory_space<vmem>>, vector<1x1x16x128xf32>,
    %c8_i32 = arith.constant 8 : i32
    %c0_150 = arith.constant 0 : index
    %c0_151 = arith.constant 0 : index
    %c0_152 = arith.constant 0 : index
    %356 = vector.load %arg8[%c0_150, %c0_151, %c0_152] : memref<1x16x128xf32, #tpu.memory_space<vmem>>, vector<1x16x128xf32>
    %357 = vector.shape_cast %356 : vector<1x16x128xf32> to vector<16x128xf32>
    %358 = vector.shape_cast %351 : vector<16x128xf32> to vector<1x16x128xf32>
    tpu.vector_store %arg8[%c0_150, %c0_151, %c0_152], %358 {strides = array<i32>} : memref<1x16x128xf32, #tpu.memory_space<vmem>>, vector<1x16x128xf32>,
    %c0_153 = arith.constant 0 : index
    %c0_154 = arith.constant 0 : index
    %c0_155 = arith.constant 0 : index
    %359 = vector.load %arg9[%c0_153, %c0_154, %c0_155] : memref<1x16x128xf32, #tpu.memory_space<vmem>>, vector<1x16x128xf32>
    %360 = vector.shape_cast %359 : vector<1x16x128xf32> to vector<16x128xf32>
    %361 = vector.shape_cast %349 : vector<16x128xf32> to vector<1x16x128xf32>
    tpu.vector_store %arg9[%c0_153, %c0_154, %c0_155], %361 {strides = array<i32>} : memref<1x16x128xf32, #tpu.memory_space<vmem>>, vector<1x16x128xf32>,
    return
  }
  func.func @transform_0(%arg0: i32, %arg1: i32) -> (i32, i32, i32, i32) {
    %c0_i32 = arith.constant 0 : i32
    %c0_i32_0 = arith.constant 0 : i32
    %c0_i32_1 = arith.constant 0 : i32
    return %arg1, %arg0, %c0_i32, %c0_i32_0 : i32, i32, i32, i32
  }
  func.func @transform_1(%arg0: i32, %arg1: i32) -> (i32, i32) {
    %c0_i32 = arith.constant 0 : i32
    %c0_i32_0 = arith.constant 0 : i32
    %c0_i32_1 = arith.constant 0 : i32
    return %c0_i32, %c0_i32_0 : i32, i32
  }
  func.func @transform_2(%arg0: i32, %arg1: i32) -> (i32, i32) {
    %c0_i32 = arith.constant 0 : i32
    %c0_i32_0 = arith.constant 0 : i32
    %c0_i32_1 = arith.constant 0 : i32
    return %c0_i32, %c0_i32_0 : i32, i32
  }
  func.func @transform_3(%arg0: i32, %arg1: i32) -> (i32, i32, i32) {
    %c0_i32 = arith.constant 0 : i32
    %c0_i32_0 = arith.constant 0 : i32
    %c0_i32_1 = arith.constant 0 : i32
    return %arg0, %c0_i32, %c0_i32_0 : i32, i32, i32
  }
  func.func @transform_4(%arg0: i32, %arg1: i32) -> (i32, i32, i32) {
    %c0_i32 = arith.constant 0 : i32
    %c0_i32_0 = arith.constant 0 : i32
    %c0_i32_1 = arith.constant 0 : i32
    return %arg0, %c0_i32, %c0_i32_0 : i32, i32, i32
  }
  func.func @transform_5(%arg0: i32, %arg1: i32) -> (i32, i32, i32, i32) {
    %c0_i32 = arith.constant 0 : i32
    %c0_i32_0 = arith.constant 0 : i32
    %c0_i32_1 = arith.constant 0 : i32
    return %arg1, %arg0, %c0_i32, %c0_i32_0 : i32, i32, i32, i32
  }
  func.func @transform_6(%arg0: i32, %arg1: i32) -> (i32, i32, i32) {
    %c0_i32 = arith.constant 0 : i32
    %c0_i32_0 = arith.constant 0 : i32
    %c0_i32_1 = arith.constant 0 : i32
    return %arg0, %c0_i32, %c0_i32_0 : i32, i32, i32
  }
  func.func @transform_7(%arg0: i32, %arg1: i32) -> (i32, i32, i32) {
    %c0_i32 = arith.constant 0 : i32
    %c0_i32_0 = arith.constant 0 : i32
    %c0_i32_1 = arith.constant 0 : i32
    return %arg0, %c0_i32, %c0_i32_0 : i32, i32, i32
  }
}

</mosaic_0001>

<bundles_post_ra>
// kernel: tpu_custom_call.1
= control target key start
LH: loop header
LB: loop body
LE: loop exit
PB: predicated region body
PF: predicated region fallthrough
CT: control target
= control target key end

     0   :  { %13 = vsyncpa [#allocation4], 0  ;;  %s4985_s0 = inlined_call_operand.vmem [shape: bf16[1,1,128,16], index: 0, kind: input, shape index: {}]   ;;  %s4986_s1 = inlined_call_operand.vmem [shape: bf16[16,512], index: 1, kind: input, shape index: {}]   ;;  %s4987_s2 = inlined_call_operand.hbm [shape: bf16[128,512], index: 2, kind: input, shape index: {}]   ;;  %s4988_s3 = inlined_call_operand.vmem [shape: f32[1,16,128], index: 3, kind: input, shape index: {}]   ;;  %s4989_s4 = inlined_call_operand.vmem [shape: f32[1,16,128], index: 4, kind: input, shape index: {}]   ;;  %s4990_s5 = inlined_call_operand.hbm [shape: f32[1,1,128,128], index: 5, kind: output, shape index: {0}]   ;;  %s4991_s6 = inlined_call_operand.hbm [shape: f32[1,16,128], index: 6, kind: output, shape index: {1}]   ;;  %s4992_s7 = inlined_call_operand.hbm [shape: f32[1,16,128], index: 7, kind: output, shape index: {2}]  }
   0x1   :  { %14 = vsyncpa [#allocation5], 0 }
   0x2   :  { %15 = vsyncpa [#allocation8], 0  ;;  %s24_s26 = sshll.u32 %s4987_s2, 4  ;;  %s4585_s27 = smov [#allocation3]   ;;  %s25_s26 = int_to_ptr.hbm [resolvable:$true] %s24_s26 }
   0x3   :  { %s26_s28 = sshll.u32 %s4585_s27, 4  ;;  %s4586_s29 = smov 256   ;;  %s27_s28 = int_to_ptr.vmem [resolvable:$true] %s26_s28 }
   0x4   :  { %s4587_s30 = smov 16  }
   0x5   :  { %32 = dma.hbm_to_vmem [thread:$0]  %s25_s26, 4096, %s27_s28, [#allocation4], %s4586_s29, %s4586_s29, %s4587_s30  }
   0x6   :  { %4579 = dma.done.wait [#allocation4], 4096  }
   0x7   :  { %4580 = vsyncadd [#allocation4], 4294963200  ;;  %v2977_v0 = vld [vmem:[%s4986_s1] sm:$0xf]  ;;  %v4057_v1 = vld [vmem:[%s4986_s1 + $0xc] sm:$0xf0] }
   0x8   :  { %v4055_v2 = vld [vmem:[%s4986_s1 + $0x4] sm:$0xf]  ;;  %v2978_v3 = vor.u32 %v4057_v1, %v2977_v0  ;;  %v2979_v4 = vld [vmem:[%s4986_s1 + $0x10] sm:$0xf0]  ;;  %v2985_v5 = vld [vmem:[%s4986_s1 + $0x8] sm:$0xf] }
   0x9   :  { %v4058_v6 = vld [vmem:[%s4986_s1 + $0x14] sm:$0xf0]  ;;  %v2982_v7 = vor.u32 %v4055_v2, %v2979_v4  ;;  %v4056_v9 = vld [vmem:[%s4986_s1 + $0xc] sm:$0xf]  ;;  %v2987_v10 = vld [vmem:[%s4986_s1 + $0x18] sm:$0xf0] }
   0xa   :  { %v2986_v8 = vor.u32 %v4058_v6, %v2985_v5  ;;  %v4047_v11 = vld [vmem:[%s4985_s0] sm:$0xff]  ;;  %vm134_vm0 = vcmask 130048   ;;  %166 = vmatpush.bf16.msra.mxu0 %v2978_v3  ;;  %v2990_v12 = vor.u32 %v4056_v9, %v2987_v10  ;;  %v4089_v14 = vld [vmem:[#allocation3 + $0xec] sm:$0xf0]  ;;  %v3139_v17 = vld [vmem:[#allocation3 + $0xf0] sm:$0xf0] }
   0xb   :  { %v3137_v13 = vld [vmem:[#allocation3 + $0xe0] sm:$0xf]  ;;  %v4087_v15 = vld [vmem:[#allocation3 + $0xe4] sm:$0xf]  ;;  %215 = vmatpush.bf16.msra.mxu1 %v2982_v7  ;;  %v3145_v18 = vld [vmem:[#allocation3 + $0xe8] sm:$0xf] }
   0xc   :  { %264 = vmatpush.bf16.msra.mxu2 %v2986_v8  ;;  %v3138_v16 = vor.u32 %v4089_v14, %v3137_v13  ;;  %v4090_v19 = vld [vmem:[#allocation3 + $0xf4] sm:$0xf0]  ;;  %313 = vmatpush.bf16.msra.mxu3 %v2990_v12  ;;  %v3142_v20 = vor.u32 %v4087_v15, %v3139_v17  ;;  %v4088_v22 = vld [vmem:[#allocation3 + $0xec] sm:$0xf]  ;;  %v3147_v23 = vld [vmem:[#allocation3 + $0xf8] sm:$0xf0] }
   0xd   :  { %v3146_v21 = vor.u32 %v4090_v19, %v3145_v18  ;;  %2991 = vmatmul.msk.bf16.vlgmr.msra.gmra.mxu0 %vm134_vm0, %v4047_v11  ;;  %v3150_v24 = vor.u32 %v4088_v22, %v3147_v23  ;;  %v3121_v25 = vld [vmem:[#allocation3 + $0xc0] sm:$0xf]  ;;  %v4085_v26 = vld [vmem:[#allocation3 + $0xcc] sm:$0xf0]  ;;  %v4083_v27 = vld [vmem:[#allocation3 + $0xc4] sm:$0xf] }
   0xe   :  { %2999 = vmatmul.msk.bf16.vlgmr.msra.gmra.mxu1 %vm134_vm0, %v4047_v11  ;;  %v3123_v28 = vld [vmem:[#allocation3 + $0xd0] sm:$0xf0]  ;;  %v3129_v29 = vld [vmem:[#allocation3 + $0xc8] sm:$0xf]  ;;  %v4086_v30 = vld [vmem:[#allocation3 + $0xd4] sm:$0xf0]  ;;  %627 = vmatpush.bf16.msrb.mxu0 %v3138_v16  ;;  %v3122_v31 = vor.u32 %v4085_v26, %v3121_v25 }
   0xf   :  { %3007 = vmatmul.msk.bf16.vlgmr.msra.gmra.mxu2 %vm134_vm0, %v4047_v11  ;;  %3015 = vmatmul.msk.bf16.vlgmr.msra.gmra.mxu3 %vm134_vm0, %v4047_v11  ;;  %v4084_v32 = vld [vmem:[#allocation3 + $0xcc] sm:$0xf]  ;;  %v3131_v33 = vld [vmem:[#allocation3 + $0xd8] sm:$0xf0]  ;;  %v3126_v34 = vor.u32 %v4083_v27, %v3123_v28  ;;  %v3130_v35 = vor.u32 %v4086_v30, %v3129_v29  ;;  %v3105_v36 = vld [vmem:[#allocation3 + $0xa0] sm:$0xf] }
  0x10   :  { %641 = vmatpush.bf16.msrb.mxu1 %v3142_v20  ;;  %655 = vmatpush.bf16.msrb.mxu2 %v3146_v21  ;;  %v4081_v37 = vld [vmem:[#allocation3 + $0xac] sm:$0xf0]  ;;  %v4079_v38 = vld [vmem:[#allocation3 + $0xa4] sm:$0xf]  ;;  %v3134_v39 = vor.u32 %v4084_v32, %v3131_v33  ;;  %v3107_v40 = vld [vmem:[#allocation3 + $0xb0] sm:$0xf0] }
  0x11   :  { %669 = vmatpush.bf16.msrb.mxu3 %v3150_v24  ;;  %v3113_v41 = vld [vmem:[#allocation3 + $0xa8] sm:$0xf]  ;;  %v4082_v42 = vld [vmem:[#allocation3 + $0xb4] sm:$0xf0]  ;;  %v4080_v43 = vld [vmem:[#allocation3 + $0xac] sm:$0xf]  ;;  %v3106_v45 = vor.u32 %v4081_v37, %v3105_v36  ;;  %v3110_v46 = vor.u32 %v4079_v38, %v3107_v40 }
  0x12   :  { %v3115_v44 = vld [vmem:[#allocation3 + $0xb8] sm:$0xf0]  ;;  %628 = vmatpush.bf16.msrb.mxu0 %v3122_v31  ;;  %v3114_v47 = vor.u32 %v4082_v42, %v3113_v41  ;;  %v4048_v49 = vld [vmem:[%s4985_s0 + $0x8] sm:$0xff]  ;;  %v3089_v50 = vld [vmem:[#allocation3 + $0x80] sm:$0xf]  ;;  %s2901_s23 = sshll.u32 %s4991_s6, 4  ;;  %s2902_s23 = int_to_ptr.hbm [resolvable:$true] %s2901_s23 }
  0x13   :  { %v3118_v48 = vor.u32 %v4080_v43, %v3115_v44  ;;  %v4077_v51 = vld [vmem:[#allocation3 + $0x8c] sm:$0xf0]  ;;  %v4075_v52 = vld [vmem:[#allocation3 + $0x84] sm:$0xf]  ;;  %v3091_v54 = vld [vmem:[#allocation3 + $0x90] sm:$0xf0] }
  0x14   :  { %642 = vmatpush.bf16.msrb.mxu1 %v3126_v34  ;;  %656 = vmatpush.bf16.msrb.mxu2 %v3130_v35  ;;  %v3090_v53 = vor.u32 %v4077_v51, %v3089_v50  ;;  %v3097_v55 = vld [vmem:[#allocation3 + $0x88] sm:$0xf]  ;;  %v4078_v56 = vld [vmem:[#allocation3 + $0x94] sm:$0xf0]  ;;  %v3094_v57 = vor.u32 %v4075_v52, %v3091_v54  ;;  %v4076_v59 = vld [vmem:[#allocation3 + $0x8c] sm:$0xf] }
  0x15   :  { %670 = vmatpush.bf16.msrb.mxu3 %v3134_v39  ;;  %v3098_v58 = vor.u32 %v4078_v56, %v3097_v55  ;;  %v3099_v60 = vld [vmem:[#allocation3 + $0x98] sm:$0xf0]  ;;  %v4049_v62 = vld [vmem:[%s4985_s0 + $0x10] sm:$0xff]  ;;  %v3073_v63 = vld [vmem:[#allocation3 + $0x60] sm:$0xf]  ;;  %s4589_s24 = smov [#allocation6]  }
  0x16   :  { %629 = vmatpush.bf16.msrb.mxu0 %v3106_v45  ;;  %v3102_v61 = vor.u32 %v4076_v59, %v3099_v60  ;;  %v4073_v0 = vld [vmem:[#allocation3 + $0x6c] sm:$0xf0]  ;;  %v4071_v1 = vld [vmem:[#allocation3 + $0x64] sm:$0xf]  ;;  %v3075_v3 = vld [vmem:[#allocation3 + $0x70] sm:$0xf0] }
  0x17   :  { %v3074_v2 = vor.u32 %v4073_v0, %v3073_v63  ;;  %v3081_v4 = vld [vmem:[#allocation3 + $0x68] sm:$0xf]  ;;  %v4074_v5 = vld [vmem:[#allocation3 + $0x74] sm:$0xf0]  ;;  %v3078_v6 = vor.u32 %v4071_v1, %v3075_v3  ;;  %v4072_v8 = vld [vmem:[#allocation3 + $0x6c] sm:$0xf] }
  0x18   :  { %643 = vmatpush.bf16.msrb.mxu1 %v3110_v46  ;;  %657 = vmatpush.bf16.msrb.mxu2 %v3114_v47  ;;  %v3082_v7 = vor.u32 %v4074_v5, %v3081_v4  ;;  %v3083_v9 = vld [vmem:[#allocation3 + $0x78] sm:$0xf0]  ;;  %v3057_v12 = vld [vmem:[#allocation3 + $0x40] sm:$0xf]  ;;  %v4069_v13 = vld [vmem:[#allocation3 + $0x4c] sm:$0xf0] }
  0x19   :  { %671 = vmatpush.bf16.msrb.mxu3 %v3118_v48  ;;  %v3086_v10 = vor.u32 %v4072_v8, %v3083_v9  ;;  %v4050_v11 = vld [vmem:[%s4985_s0 + $0x18] sm:$0xff]  ;;  %v4067_v14 = vld [vmem:[#allocation3 + $0x44] sm:$0xf]  ;;  %v3058_v15 = vor.u32 %v4069_v13, %v3057_v12  ;;  %v3059_v16 = vld [vmem:[#allocation3 + $0x50] sm:$0xf0]  ;;  %s2886_s1 = sshll.u32 %s4589_s24, 4  ;;  %s2887_s1 = int_to_ptr.vmem [resolvable:$true] %s2886_s1 }
  0x1a   :  { %630 = vmatpush.bf16.msrb.mxu0 %v3090_v53  ;;  %v3065_v17 = vld [vmem:[#allocation3 + $0x48] sm:$0xf]  ;;  %v4070_v18 = vld [vmem:[#allocation3 + $0x54] sm:$0xf0]  ;;  %v3062_v19 = vor.u32 %v4067_v14, %v3059_v16  ;;  %v4068_v21 = vld [vmem:[#allocation3 + $0x4c] sm:$0xf] }
  0x1b   :  { %v3066_v20 = vor.u32 %v4070_v18, %v3065_v17  ;;  %v3067_v22 = vld [vmem:[#allocation3 + $0x58] sm:$0xf0]  ;;  %v4051_v24 = vld [vmem:[%s4985_s0 + $0x20] sm:$0xff]  ;;  %v4065_v26 = vld [vmem:[#allocation3 + $0x2c] sm:$0xf0]  ;;  %s2888_s27 = sshll.u32 %s4990_s5, 4  ;;  %s2889_s27 = int_to_ptr.hbm [resolvable:$true] %s2888_s27 }
  0x1c   :  { %644 = vmatpush.bf16.msrb.mxu1 %v3094_v57  ;;  %658 = vmatpush.bf16.msrb.mxu2 %v3098_v58  ;;  %v3070_v23 = vor.u32 %v4068_v21, %v3067_v22  ;;  %v3041_v25 = vld [vmem:[#allocation3 + $0x20] sm:$0xf]  ;;  %v4063_v27 = vld [vmem:[#allocation3 + $0x24] sm:$0xf]  ;;  %v3043_v29 = vld [vmem:[#allocation3 + $0x30] sm:$0xf0] }
  0x1d   :  { %2992 = vmatmul.msk.bf16.gmra.mxu0 %vm134_vm0, %v4048_v49  ;;  %672 = vmatpush.bf16.msrb.mxu3 %v3102_v61  ;;  %v3042_v28 = vor.u32 %v4065_v26, %v3041_v25  ;;  %v3049_v30 = vld [vmem:[#allocation3 + $0x28] sm:$0xf]  ;;  %v4066_v31 = vld [vmem:[#allocation3 + $0x34] sm:$0xf0]  ;;  %v3046_v32 = vor.u32 %v4063_v27, %v3043_v29  ;;  %v4064_v34 = vld [vmem:[#allocation3 + $0x2c] sm:$0xf] }
  0x1e   :  { %3000 = vmatmul.msk.bf16.gmra.mxu1 %vm134_vm0, %v4048_v49  ;;  %631 = vmatpush.bf16.msrb.mxu0 %v3074_v2  ;;  %v3050_v33 = vor.u32 %v4066_v31, %v3049_v30  ;;  %v3051_v35 = vld [vmem:[#allocation3 + $0x38] sm:$0xf0]  ;;  %v4052_v37 = vld [vmem:[%s4985_s0 + $0x28] sm:$0xff]  ;;  %v3025_v38 = vld [vmem:[#allocation3] sm:$0xf]  ;;  %s4590_s28 = smov [#allocation9]  }
  0x1f   :  { %3008 = vmatmul.msk.bf16.gmra.mxu2 %vm134_vm0, %v4048_v49  ;;  %3016 = vmatmul.msk.bf16.gmra.mxu3 %vm134_vm0, %v4048_v49  ;;  %v3054_v36 = vor.u32 %v4064_v34, %v3051_v35  ;;  %v4061_v39 = vld [vmem:[#allocation3 + $0xc] sm:$0xf0]  ;;  %v4059_v40 = vld [vmem:[#allocation3 + $0x4] sm:$0xf]  ;;  %v3027_v42 = vld [vmem:[#allocation3 + $0x10] sm:$0xf0] }
  0x20   :  { %645 = vmatpush.bf16.msrb.mxu1 %v3078_v6  ;;  %659 = vmatpush.bf16.msrb.mxu2 %v3082_v7  ;;  %v3026_v41 = vor.u32 %v4061_v39, %v3025_v38  ;;  %v3033_v43 = vld [vmem:[#allocation3 + $0x8] sm:$0xf]  ;;  %v4062_v44 = vld [vmem:[#allocation3 + $0x14] sm:$0xf0]  ;;  %v3030_v45 = vor.u32 %v4059_v40, %v3027_v42  ;;  %v4060_v47 = vld [vmem:[#allocation3 + $0xc] sm:$0xf] }
  0x21   :  { %673 = vmatpush.bf16.msrb.mxu3 %v3086_v10  ;;  %v3034_v46 = vor.u32 %v4062_v44, %v3033_v43  ;;  %v3035_v48 = vld [vmem:[#allocation3 + $0x18] sm:$0xf0]  ;;  %v4053_v50 = vld [vmem:[%s4985_s0 + $0x30] sm:$0xff]  ;;  %v46_v52 = vld [vmem:[%s4988_s3] sm:$0xff]  ;;  %s2912_s29 = sshll.u32 %s4590_s28, 4  ;;  %s2914_s9 = sshll.u32 %s4992_s7, 4  ;;  %s2913_s29 = int_to_ptr.vmem [resolvable:$true] %s2912_s29  ;;  %s2915_s9 = int_to_ptr.hbm [resolvable:$true] %s2914_s9 }
  0x22   :  { %632 = vmatpush.bf16.msrb.mxu0 %v3058_v15  ;;  %v3038_v49 = vor.u32 %v4060_v47, %v3035_v48  ;;  %v4054_v51 = vld [vmem:[%s4985_s0 + $0x38] sm:$0xff]  ;;  %v47_v53 = vld [vmem:[%s4988_s3 + $0x8] sm:$0xff]  ;;  %v3265_v42 = vld [vmem:[#allocation3 + $0xe0] sm:$0xf]  ;;  %s4591_s6 = smov 128   ;;  %s4592_s10 = smov 8  }
  0x23   :  { %v434_v54 = vpack.c.bf16 %v47_v53, %v46_v52  ;;  %v4121_v43 = vld [vmem:[#allocation3 + $0xec] sm:$0xf0]  ;;  %v4119_v44 = vld [vmem:[#allocation3 + $0xe4] sm:$0xf]  ;;  %v3267_v48 = vld [vmem:[#allocation3 + $0xf0] sm:$0xf0] }
  0x24   :  { %646 = vmatpush.bf16.msrb.mxu1 %v3062_v19  ;;  %660 = vmatpush.bf16.msrb.mxu2 %v3066_v20  ;;  %v3266_v47 = vor.u32 %v4121_v43, %v3265_v42  ;;  %v3270_v52 = vor.u32 %v4119_v44, %v3267_v48  ;;  %v3257_v42 = vld [vmem:[#allocation3 + $0xc8] sm:$0xf]  ;;  %v4118_v43 = vld [vmem:[#allocation3 + $0xd4] sm:$0xf0] }
  0x25   :  { %674 = vmatpush.bf16.msrb.mxu3 %v3070_v23 }
  0x26   :  { %633 = vmatpush.bf16.msrb.mxu0 %v3042_v28 }
  0x28   :  { %647 = vmatpush.bf16.msrb.mxu1 %v3046_v32  ;;  %661 = vmatpush.bf16.msrb.mxu2 %v3050_v33 }
  0x29   :  { %675 = vmatpush.bf16.msrb.mxu3 %v3054_v36 }
  0x2a   :  { %634 = vmatpush.bf16.msrb.mxu0 %v3026_v41 }
  0x2c   :  { %648 = vmatpush.bf16.msrb.mxu1 %v3030_v45  ;;  %662 = vmatpush.bf16.msrb.mxu2 %v3034_v46 }
  0x2d   :  { %2993 = vmatmul.msk.bf16.gmra.mxu0 %vm134_vm0, %v4049_v62  ;;  %676 = vmatpush.bf16.msrb.mxu3 %v3038_v49  ;;  %v3273_v49 = vld [vmem:[#allocation3 + $0xe8] sm:$0xf] }
  0x2e   :  { %3001 = vmatmul.msk.bf16.gmra.mxu1 %vm134_vm0, %v4049_v62  ;;  %933 = vmatpush.bf16.msra.mxu0 %v3266_v47 }
  0x2f   :  { %3009 = vmatmul.msk.bf16.gmra.mxu2 %vm134_vm0, %v4049_v62  ;;  %3017 = vmatmul.msk.bf16.gmra.mxu3 %vm134_vm0, %v4049_v62 }
  0x30   :  { %947 = vmatpush.bf16.msra.mxu1 %v3270_v52  ;;  %v4114_v52 = vld [vmem:[#allocation3 + $0xb4] sm:$0xf0] }
  0x3d   :  { %2994 = vmatmul.msk.bf16.gmra.mxu0 %vm134_vm0, %v4050_v11 }
  0x3e   :  { %3002 = vmatmul.msk.bf16.gmra.mxu1 %vm134_vm0, %v4050_v11 }
  0x3f   :  { %3010 = vmatmul.msk.bf16.gmra.mxu2 %vm134_vm0, %v4050_v11  ;;  %3018 = vmatmul.msk.bf16.gmra.mxu3 %vm134_vm0, %v4050_v11 }
  0x4d   :  { %2995 = vmatmul.msk.bf16.gmra.mxu0 %vm134_vm0, %v4051_v24 }
  0x4e   :  { %3003 = vmatmul.msk.bf16.gmra.mxu1 %vm134_vm0, %v4051_v24 }
  0x4f   :  { %3011 = vmatmul.msk.bf16.gmra.mxu2 %vm134_vm0, %v4051_v24  ;;  %3019 = vmatmul.msk.bf16.gmra.mxu3 %vm134_vm0, %v4051_v24 }
  0x5d   :  { %2996 = vmatmul.msk.bf16.gmra.mxu0 %vm134_vm0, %v4052_v37 }
  0x5e   :  { %3004 = vmatmul.msk.bf16.gmra.mxu1 %vm134_vm0, %v4052_v37 }
  0x5f   :  { %3012 = vmatmul.msk.bf16.gmra.mxu2 %vm134_vm0, %v4052_v37  ;;  %3020 = vmatmul.msk.bf16.gmra.mxu3 %vm134_vm0, %v4052_v37 }
  0x6d   :  { %2997 = vmatmul.msk.bf16.gmra.mxu0 %vm134_vm0, %v4053_v50 }
  0x6e   :  { %3005 = vmatmul.msk.bf16.gmra.mxu1 %vm134_vm0, %v4053_v50 }
  0x6f   :  { %3013 = vmatmul.msk.bf16.gmra.mxu2 %vm134_vm0, %v4053_v50  ;;  %3021 = vmatmul.msk.bf16.gmra.mxu3 %vm134_vm0, %v4053_v50  ;;  %v4122_v50 = vld [vmem:[#allocation3 + $0xf4] sm:$0xf0] }
  0x70   :  { %v3274_v53 = vor.u32 %v4122_v50, %v3273_v49  ;;  %v3241_v50 = vld [vmem:[#allocation3 + $0xa8] sm:$0xf] }
  0x72   :  { %961 = vmatpush.bf16.msra.mxu2 %v3274_v53  ;;  %v3243_v53 = vld [vmem:[#allocation3 + $0xb8] sm:$0xf0] }
  0x7d   :  { %2998 = vmatmul.msk.bf16.gmra.mxu0 %vm134_vm0, %v4054_v51 }
  0x7e   :  { %3006 = vmatmul.msk.bf16.gmra.mxu1 %vm134_vm0, %v4054_v51 }
  0x7f   :  { %3014 = vmatmul.msk.bf16.gmra.mxu2 %vm134_vm0, %v4054_v51  ;;  %3022 = vmatmul.msk.bf16.gmra.mxu3 %vm134_vm0, %v4054_v51 }
  0x8a   :  { %v4722_v55 = vpop.f32.mrf.mxu0 }
  0x8b   :  { %v4724_v56 = vpop.f32.mrf.mxu1 }
  0x8d   :  { %635 = vmatmul.bf16.vlgmr.msrb.gmra.mxu0 %v434_v54 }
  0x8e   :  { %649 = vmatmul.bf16.vlgmr.msrb.gmra.mxu1 %v434_v54 }
  0x8f   :  { %663 = vmatmul.bf16.vlgmr.msrb.gmra.mxu2 %v434_v54  ;;  %677 = vmatmul.bf16.vlgmr.msrb.gmra.mxu3 %v434_v54  ;;  %v4120_v54 = vld [vmem:[#allocation3 + $0xec] sm:$0xf] }
  0x92   :  { %v4726_v57 = vpop.f32.mrf.mxu2  ;;  %v4728_v58 = vpop.f32.mrf.mxu3 }
  0x93   :  { %v4730_v59 = vpop.f32.mrf.mxu0  ;;  %v4732_v60 = vpop.f32.mrf.mxu1 }
  0x9a   :  { %v4734_v61 = vpop.f32.mrf.mxu2  ;;  %v4736_v62 = vpop.f32.mrf.mxu3 }
  0x9b   :  { %v4738_v63 = vpop.f32.mrf.mxu0  ;;  %v4740_v0 = vpop.f32.mrf.mxu1 }
  0xa2   :  { %v4742_v1 = vpop.f32.mrf.mxu2  ;;  %v4744_v2 = vpop.f32.mrf.mxu3 }
  0xa3   :  { %v4746_v3 = vpop.f32.mrf.mxu0  ;;  %v4748_v4 = vpop.f32.mrf.mxu1 }
  0xaa   :  { %v4750_v5 = vpop.f32.mrf.mxu2  ;;  %v4752_v6 = vpop.f32.mrf.mxu3 }
  0xab   :  { %v4754_v7 = vpop.f32.mrf.mxu0  ;;  %v4756_v8 = vpop.f32.mrf.mxu1 }
  0xb2   :  { %v4758_v9 = vpop.f32.mrf.mxu2  ;;  %v4760_v10 = vpop.f32.mrf.mxu3 }
  0xb3   :  { %v4762_v11 = vpop.f32.mrf.mxu0  ;;  %v4764_v12 = vpop.f32.mrf.mxu1 }
  0xba   :  { %v4766_v13 = vpop.f32.mrf.mxu2  ;;  %v4768_v14 = vpop.f32.mrf.mxu3 }
  0xbb   :  { %v4770_v15 = vpop.f32.mrf.mxu0  ;;  %v4772_v16 = vpop.f32.mrf.mxu1 }
  0xc2   :  { %v4774_v17 = vpop.f32.mrf.mxu2  ;;  %v4776_v18 = vpop.f32.mrf.mxu3 }
  0xc3   :  { %v4778_v19 = vpop.f32.mrf.mxu0  ;;  %v4780_v20 = vpop.f32.mrf.mxu1 }
  0xca   :  { %v4782_v21 = vpop.f32.mrf.mxu2  ;;  %v4784_v22 = vpop.f32.mrf.mxu3 }
  0xcb   :  { %v4786_v23 = vpop.f32.mrf.mxu0  ;;  %v4788_v24 = vpop.f32.mrf.mxu1 }
  0xd2   :  { %v4790_v25 = vpop.f32.mrf.mxu2  ;;  %v4792_v26 = vpop.f32.mrf.mxu3 }
  0xd3   :  { %v4794_v27 = vpop.f32.mrf.mxu0  ;;  %v4796_v28 = vpop.f32.mrf.mxu1 }
  0xda   :  { %v4798_v29 = vpop.f32.mrf.mxu2  ;;  %v4800_v30 = vpop.f32.mrf.mxu3 }
  0xdb   :  { %v4802_v31 = vpop.f32.mrf.mxu0  ;;  %v4804_v32 = vpop.f32.mrf.mxu1 }
  0xe2   :  { %v4806_v33 = vpop.f32.mrf.mxu2  ;;  %v4808_v34 = vpop.f32.mrf.mxu3 }
  0xe3   :  { %4993 = vst [vmem:[#allocation13_spill] sm:$0xff] %v4808_v34  ;;  %v4810_v35 = vpop.f32.mrf.mxu0  ;;  %v4812_v36 = vpop.f32.mrf.mxu1  ;;  %v4116_v34 = vld [vmem:[#allocation3 + $0xcc] sm:$0xf] }
  0xe4   :  { %4994 = vst [vmem:[#allocation14_spill] sm:$0xff] %v4810_v35  ;;  %v3258_v35 = vor.u32 %v4118_v43, %v3257_v42  ;;  %v4107_v42 = vld [vmem:[#allocation3 + $0x84] sm:$0xf] }
  0xe5   :  { %4995 = vst [vmem:[#allocation15_spill] sm:$0xff] %v4812_v36 }
  0xe6   :  { %962 = vmatpush.bf16.msra.mxu2 %v3258_v35 }
  0xea   :  { %v4814_v37 = vpop.f32.mrf.mxu2  ;;  %v4816_v38 = vpop.f32.mrf.mxu3 }
  0xeb   :  { %4996 = vst [vmem:[#allocation16_spill] sm:$0xff] %v4814_v37  ;;  %v4818_v39 = vpop.f32.mrf.mxu0  ;;  %v4820_v40 = vpop.f32.mrf.mxu1  ;;  %v4115_v37 = vld [vmem:[#allocation3 + $0xc4] sm:$0xf] }
  0xec   :  { %4997 = vst [vmem:[#allocation17_spill] sm:$0xff] %v4816_v38  ;;  %v4117_v38 = vld [vmem:[#allocation3 + $0xcc] sm:$0xf0] }
  0xed   :  { %4998 = vst [vmem:[#allocation18_spill] sm:$0xff] %v4818_v39  ;;  %v3275_v39 = vld [vmem:[#allocation3 + $0xf8] sm:$0xf0] }
  0xee   :  { %4999 = vst [vmem:[#allocation19_spill] sm:$0xff] %v4820_v40  ;;  %v3278_v40 = vor.u32 %v4120_v54, %v3275_v39  ;;  %v4109_v54 = vld [vmem:[#allocation3 + $0x8c] sm:$0xf0] }
  0xf0   :  { %975 = vmatpush.bf16.msra.mxu3 %v3278_v40  ;;  %v3233_v40 = vld [vmem:[#allocation3 + $0xa0] sm:$0xf] }
  0xf2   :  { %v4822_v41 = vpop.f32.mrf.mxu2  ;;  %v4824_v45 = vpop.f32.mrf.mxu3 }
  0xf3   :  { %5000 = vst [vmem:[#allocation20_spill] sm:$0xff] %v4822_v41  ;;  %v4826_v46 = vpop.f32.mrf.mxu0  ;;  %v4828_v51 = vpop.f32.mrf.mxu1  ;;  %v3249_v41 = vld [vmem:[#allocation3 + $0xc0] sm:$0xf] }
  0xf4   :  { %5001 = vst [vmem:[#allocation21_spill] sm:$0xff] %v4824_v45  ;;  %v3250_v45 = vor.u32 %v4117_v38, %v3249_v41  ;;  %v4113_v38 = vld [vmem:[#allocation3 + $0xac] sm:$0xf0]  ;;  %v4111_v41 = vld [vmem:[#allocation3 + $0xa4] sm:$0xf] }
  0xf5   :  { %5002 = vst [vmem:[#allocation22_spill] sm:$0xff] %v4826_v46  ;;  %v3251_v46 = vld [vmem:[#allocation3 + $0xd0] sm:$0xf0] }
  0xf6   :  { %5003 = vst [vmem:[#allocation23_spill] sm:$0xff] %v4828_v51  ;;  %v3254_v36 = vor.u32 %v4115_v37, %v3251_v46  ;;  %v3259_v51 = vld [vmem:[#allocation3 + $0xd8] sm:$0xf0]  ;;  %934 = vmatpush.bf16.msra.mxu0 %v3250_v45  ;;  %v3234_v37 = vor.u32 %v4113_v38, %v3233_v40  ;;  %v3235_v46 = vld [vmem:[#allocation3 + $0xb0] sm:$0xf0] }
  0xf7   :  { %v3262_v44 = vor.u32 %v4116_v34, %v3259_v51  ;;  %v3238_v45 = vor.u32 %v4111_v41, %v3235_v46  ;;  %v3242_v34 = vor.u32 %v4114_v52, %v3241_v50  ;;  %v4112_v51 = vld [vmem:[#allocation3 + $0xac] sm:$0xf]  ;;  %v3201_v52 = vld [vmem:[#allocation3 + $0x60] sm:$0xf] }
  0xf8   :  { %948 = vmatpush.bf16.msra.mxu1 %v3254_v36  ;;  %v3246_v35 = vor.u32 %v4112_v51, %v3243_v53  ;;  %v3217_v36 = vld [vmem:[#allocation3 + $0x80] sm:$0xf] }
  0xf9   :  { %976 = vmatpush.bf16.msra.mxu3 %v3262_v44  ;;  %963 = vmatpush.bf16.msra.mxu2 %v3242_v34  ;;  %v3218_v43 = vor.u32 %v4109_v54, %v3217_v36  ;;  %v3219_v44 = vld [vmem:[#allocation3 + $0x90] sm:$0xf0]  ;;  %v4103_v34 = vld [vmem:[#allocation3 + $0x64] sm:$0xf]  ;;  %v4106_v36 = vld [vmem:[#allocation3 + $0x74] sm:$0xf0] }
  0xfa   :  { %v4830_v48 = vpop.f32.mrf.mxu2  ;;  %v4832_v39 = vpop.f32.mrf.mxu3  ;;  %935 = vmatpush.bf16.msra.mxu0 %v3234_v37  ;;  %v3222_v40 = vor.u32 %v4107_v42, %v3219_v44  ;;  %v4104_v54 = vld [vmem:[#allocation3 + $0x6c] sm:$0xf]  ;;  %v3211_v42 = vld [vmem:[#allocation3 + $0x78] sm:$0xf0]  ;;  %v4101_v44 = vld [vmem:[#allocation3 + $0x4c] sm:$0xf0] }
  0xfb   :  { %5004 = vst [vmem:[#allocation24_spill] sm:$0xff] %v4830_v48  ;;  %v4834_v47 = vpop.f32.mrf.mxu0  ;;  %v4836_v49 = vpop.f32.mrf.mxu1  ;;  %v3227_v48 = vld [vmem:[#allocation3 + $0x98] sm:$0xf0] }
  0xfc   :  { %5005 = vst [vmem:[#allocation25_spill] sm:$0xff] %v4832_v39  ;;  %949 = vmatpush.bf16.msra.mxu1 %v3238_v45  ;;  %v4108_v39 = vld [vmem:[#allocation3 + $0x8c] sm:$0xf]  ;;  %v4105_v45 = vld [vmem:[#allocation3 + $0x6c] sm:$0xf0] }
  0xfd   :  { %5006 = vst [vmem:[#allocation26_spill] sm:$0xff] %v4834_v47  ;;  %977 = vmatpush.bf16.msra.mxu3 %v3246_v35  ;;  %v3225_v47 = vld [vmem:[#allocation3 + $0x88] sm:$0xf]  ;;  %v3230_v46 = vor.u32 %v4108_v39, %v3227_v48  ;;  %v3202_v53 = vor.u32 %v4105_v45, %v3201_v52  ;;  %v3214_v39 = vor.u32 %v4104_v54, %v3211_v42  ;;  %v4097_v54 = vld [vmem:[#allocation3 + $0x2c] sm:$0xf0] }
  0xfe   :  { %5007 = vst [vmem:[#allocation27_spill] sm:$0xff] %v4836_v49  ;;  %v4110_v49 = vld [vmem:[#allocation3 + $0x94] sm:$0xf0]  ;;  %936 = vmatpush.bf16.msra.mxu0 %v3218_v43  ;;  %v3185_v43 = vld [vmem:[#allocation3 + $0x40] sm:$0xf] }
  0xff   :  { %v3226_v38 = vor.u32 %v4110_v49, %v3225_v47  ;;  %v3203_v47 = vld [vmem:[#allocation3 + $0x70] sm:$0xf0]  ;;  %v3209_v49 = vld [vmem:[#allocation3 + $0x68] sm:$0xf]  ;;  %v4095_v42 = vld [vmem:[#allocation3 + $0x24] sm:$0xf] }
 0x100   :  { %950 = vmatpush.bf16.msra.mxu1 %v3222_v40  ;;  %v3206_v35 = vor.u32 %v4103_v34, %v3203_v47  ;;  %v3210_v48 = vor.u32 %v4106_v36, %v3209_v49  ;;  %v4099_v40 = vld [vmem:[#allocation3 + $0x44] sm:$0xf]  ;;  %v3195_v34 = vld [vmem:[#allocation3 + $0x58] sm:$0xf0]  ;;  %v3169_v36 = vld [vmem:[#allocation3 + $0x20] sm:$0xf] }
 0x101   :  { %964 = vmatpush.bf16.msra.mxu2 %v3226_v38  ;;  %978 = vmatpush.bf16.msra.mxu3 %v3230_v46  ;;  %v3186_v38 = vor.u32 %v4101_v44, %v3185_v43  ;;  %v4102_v46 = vld [vmem:[#allocation3 + $0x54] sm:$0xf0]  ;;  %v3177_v43 = vld [vmem:[#allocation3 + $0x28] sm:$0xf] }
 0x102   :  { %v4838_v41 = vpop.f32.mrf.mxu2  ;;  %v4840_v37 = vpop.f32.mrf.mxu3  ;;  %937 = vmatpush.bf16.msra.mxu0 %v3202_v53  ;;  %v4098_v44 = vld [vmem:[#allocation3 + $0x34] sm:$0xf0] }
 0x103   :  { %5008 = vst [vmem:[#allocation28_spill] sm:$0xff] %v4838_v41  ;;  %v4842_v50 = vpop.f32.mrf.mxu0  ;;  %v4844_v51 = vpop.f32.mrf.mxu1  ;;  %v3153_v41 = vld [vmem:[#allocation3] sm:$0xf] }
 0x104   :  { %5009 = vst [vmem:[#allocation29_spill] sm:$0xff] %v4840_v37  ;;  %951 = vmatpush.bf16.msra.mxu1 %v3206_v35  ;;  %v4100_v37 = vld [vmem:[#allocation3 + $0x4c] sm:$0xf] }
 0x105   :  { %5010 = vst [vmem:[#allocation30_spill] sm:$0xff] %v4842_v50  ;;  %965 = vmatpush.bf16.msra.mxu2 %v3210_v48  ;;  %979 = vmatpush.bf16.msra.mxu3 %v3214_v39  ;;  %v3187_v50 = vld [vmem:[#allocation3 + $0x50] sm:$0xf0]  ;;  %v3198_v53 = vor.u32 %v4100_v37, %v3195_v34  ;;  %v3178_v37 = vor.u32 %v4098_v44, %v3177_v43  ;;  %v3179_v34 = vld [vmem:[#allocation3 + $0x38] sm:$0xf0] }
 0x106   :  { %5011 = vst [vmem:[#allocation31_spill] sm:$0xff] %v4844_v51  ;;  %v3193_v51 = vld [vmem:[#allocation3 + $0x48] sm:$0xf]  ;;  %v3190_v52 = vor.u32 %v4099_v40, %v3187_v50  ;;  %938 = vmatpush.bf16.msra.mxu0 %v3186_v38  ;;  %v3170_v50 = vor.u32 %v4097_v54, %v3169_v36  ;;  %v4094_v54 = vld [vmem:[#allocation3 + $0x14] sm:$0xf0] }
 0x107   :  { %v3194_v45 = vor.u32 %v4102_v46, %v3193_v51  ;;  %v3171_v51 = vld [vmem:[#allocation3 + $0x30] sm:$0xf0]  ;;  %v4096_v46 = vld [vmem:[#allocation3 + $0x2c] sm:$0xf]  ;;  %v3161_v36 = vld [vmem:[#allocation3 + $0x8] sm:$0xf] }
 0x108   :  { %952 = vmatpush.bf16.msra.mxu1 %v3190_v52  ;;  %v3174_v38 = vor.u32 %v4095_v42, %v3171_v51  ;;  %v3182_v52 = vor.u32 %v4096_v46, %v3179_v34  ;;  %v4092_v42 = vld [vmem:[#allocation3 + $0xc] sm:$0xf] }
 0x109   :  { %966 = vmatpush.bf16.msra.mxu2 %v3194_v45  ;;  %980 = vmatpush.bf16.msra.mxu3 %v3198_v53  ;;  %v4091_v53 = vld [vmem:[#allocation3 + $0x4] sm:$0xf] }
 0x10a   :  { %v4846_v47 = vpop.f32.mrf.mxu2  ;;  %v4848_v49 = vpop.f32.mrf.mxu3  ;;  %939 = vmatpush.bf16.msra.mxu0 %v3170_v50 }
 0x10b   :  { %5012 = vst [vmem:[#allocation32_spill] sm:$0xff] %v4846_v47  ;;  %v636_v35 = vpop.f32.mrf.mxu0  ;;  %v650_v39 = vpop.f32.mrf.mxu1 }
 0x10c   :  { %5013 = vst [vmem:[#allocation33_spill] sm:$0xff] %v4848_v49  ;;  %v683_v48 = vadd.f32 %v636_v35, %v4722_v55  ;;  %v684_v40 = vadd.f32 %v650_v39, %v4724_v56  ;;  %953 = vmatpush.bf16.msra.mxu1 %v3174_v38  ;;  %v4093_v55 = vld [vmem:[#allocation3 + $0xc] sm:$0xf0]  ;;  %v3155_v35 = vld [vmem:[#allocation3 + $0x10] sm:$0xf0] }
 0x10d   :  { %967 = vmatpush.bf16.msra.mxu2 %v3178_v37  ;;  %981 = vmatpush.bf16.msra.mxu3 %v3182_v52  ;;  %v3154_v45 = vor.u32 %v4093_v55, %v3153_v41  ;;  %v3158_v56 = vor.u32 %v4091_v53, %v3155_v35  ;;  %v3163_v39 = vld [vmem:[#allocation3 + $0x18] sm:$0xf0] }
 0x10e   :  { %v691_v49 = vmul.f32 0.5, %v683_v48  ;;  %v699_v47 = vmul.f32 0.5, %v684_v40  ;;  %v3162_v48 = vor.u32 %v4094_v54, %v3161_v36  ;;  %v3166_v50 = vor.u32 %v4092_v42, %v3163_v39 }
 0x10f   :  { %940 = vmatpush.bf16.msra.mxu0 %v3154_v45 }
 0x110   :  { %4323 = vtanh.f32 %v691_v49  ;;  %954 = vmatpush.bf16.msra.mxu1 %v3158_v56 }
 0x111   :  { %4325 = vtanh.f32 %v699_v47  ;;  %968 = vmatpush.bf16.msra.mxu2 %v3162_v48  ;;  %982 = vmatpush.bf16.msra.mxu3 %v3166_v50 }
 0x112   :  { %v664_v51 = vpop.f32.mrf.mxu2  ;;  %v678_v44 = vpop.f32.mrf.mxu3 }
 0x113   :  { %v685_v43 = vadd.f32 %v664_v51, %v4726_v57  ;;  %v638_v40 = vpop.f32.mrf.mxu0  ;;  %v686_v49 = vadd.f32 %v678_v44, %v4728_v58  ;;  %v652_v38 = vpop.f32.mrf.mxu1  ;;  %v50_v58 = vld [vmem:[%s4989_s4] sm:$0xff] }
 0x114   :  { %v687_v41 = vadd.f32 %v638_v40, %v4730_v59  ;;  %v688_v47 = vadd.f32 %v652_v38, %v4732_v60 }
 0x115   :  { %4327 = vtanh.f32 %v685_v43  ;;  %v709_v46 = vmul.f32 0.5, %v686_v49 }
 0x116   :  { %v4324_v37 = vpop.eup %4323  ;;  %v692_v34 = vmul.f32 0.5, %v687_v41  ;;  %v700_v45 = vmul.f32 0.5, %v688_v47 }
 0x117   :  { %v4326_v52 = vpop.eup %4325  ;;  %v695_v55 = vmul.f32 0.5, %v4324_v37  ;;  %4329 = vtanh.f32 %v709_v46 }
 0x118   :  { %v703_v57 = vmul.f32 0.5, %v4326_v52  ;;  %4331 = vtanh.f32 %v692_v34 }
 0x119   :  { %v697_v53 = vadd.f32 0.5, %v695_v55  ;;  %4333 = vtanh.f32 %v700_v45 }
 0x11a   :  { %v705_v59 = vadd.f32 0.5, %v703_v57  ;;  %v666_v35 = vpop.f32.mrf.mxu2  ;;  %v680_v56 = vpop.f32.mrf.mxu3 }
 0x11b   :  { %v4328_v36 = vpop.eup %4327  ;;  %v689_v60 = vadd.f32 %v666_v35, %v4734_v61  ;;  %v690_v39 = vadd.f32 %v680_v56, %v4736_v62  ;;  %v51_v61 = vld [vmem:[%s4989_s4 + $0x8] sm:$0xff]  ;;  %v4153_v56 = vld [vmem:[#allocation3 + $0xec] sm:$0xf0]  ;;  %s4588_s4 = smov [#allocation7]  }
 0x11c   :  { %v717_v54 = vmul.f32 %v705_v59, %v50_v58  ;;  %v719_v42 = vmul.f32 %v4328_v36, %v697_v53  ;;  %s2899_s20 = sshll.u32 %s4588_s4, 4  ;;  %s2900_s20 = int_to_ptr.vmem [resolvable:$true] %s2899_s20 }
 0x11d   :  { %4335 = vtanh.f32 %v689_v60  ;;  %v4330_v51 = vpop.eup %4329  ;;  %v710_v50 = vmul.f32 0.5, %v690_v39  ;;  %v3393_v60 = vld [vmem:[#allocation3 + $0xe0] sm:$0xf]  ;;  %v3395_v39 = vld [vmem:[#allocation3 + $0xf0] sm:$0xf0] }
 0x11e   :  { %v4861_v48 = vadd.f32 %v719_v42, %v717_v54  ;;  %v4332_v43 = vpop.eup %4331  ;;  %v713_v49 = vmul.f32 0.5, %v4330_v51  ;;  %v4151_v54 = vld [vmem:[#allocation3 + $0xe4] sm:$0xf]  ;;  %v3394_v42 = vor.u32 %v4153_v56, %v3393_v60  ;;  %v3401_v51 = vld [vmem:[#allocation3 + $0xe8] sm:$0xf] }
 0x11f   :  { %v4334_v44 = vpop.eup %4333  ;;  %v696_v40 = vmul.f32 0.5, %v4332_v43  ;;  %v3398_v43 = vor.u32 %v4151_v54, %v3395_v39  ;;  %v3363_v56 = vld [vmem:[#allocation3 + $0xb0] sm:$0xf0]  ;;  %v3369_v54 = vld [vmem:[#allocation3 + $0xa8] sm:$0xf] }
 0x120   :  { %4337 = vtanh.f32 %v4861_v48  ;;  %v704_v41 = vmul.f32 0.5, %v4334_v44  ;;  %v715_v46 = vadd.f32 0.5, %v713_v49  ;;  %v3403_v49 = vld [vmem:[#allocation3 + $0xf8] sm:$0xf0]  ;;  %1240 = vmatpush.bf16.msrb.mxu0 %v3394_v42  ;;  %v4146_v42 = vld [vmem:[#allocation3 + $0xb4] sm:$0xf0] }
 0x121   :  { %4339 = vtanh.f32 %v710_v50  ;;  %v698_v38 = vadd.f32 0.5, %v696_v40  ;;  %v4154_v50 = vld [vmem:[#allocation3 + $0xf4] sm:$0xf0]  ;;  %v4152_v40 = vld [vmem:[#allocation3 + $0xec] sm:$0xf]  ;;  %1254 = vmatpush.bf16.msrb.mxu1 %v3398_v43 }
 0x122   :  { %v706_v62 = vadd.f32 0.5, %v704_v41  ;;  %v3402_v44 = vor.u32 %v4154_v50, %v3401_v51  ;;  %v3406_v41 = vor.u32 %v4152_v40, %v3403_v49  ;;  %v3370_v51 = vor.u32 %v4146_v42, %v3369_v54  ;;  %v4144_v50 = vld [vmem:[#allocation3 + $0xac] sm:$0xf]  ;;  %v3371_v43 = vld [vmem:[#allocation3 + $0xb8] sm:$0xf0] }
 0x123   :  { %v4336_v47 = vpop.eup %4335  ;;  %v3345_v40 = vld [vmem:[#allocation3 + $0x80] sm:$0xf]  ;;  %v4141_v49 = vld [vmem:[#allocation3 + $0x8c] sm:$0xf0]  ;;  %v4136_v42 = vld [vmem:[#allocation3 + $0x6c] sm:$0xf] }
 0x124   :  { %v720_v37 = vmul.f32 %v4336_v47, %v698_v38  ;;  %v718_v34 = vmul.f32 %v706_v62, %v51_v61  ;;  %1268 = vmatpush.bf16.msrb.mxu2 %v3402_v44  ;;  %v3377_v38 = vld [vmem:[#allocation3 + $0xc0] sm:$0xf]  ;;  %v4149_v61 = vld [vmem:[#allocation3 + $0xcc] sm:$0xf0]  ;;  %v4147_v47 = vld [vmem:[#allocation3 + $0xc4] sm:$0xf]  ;;  %1282 = vmatpush.bf16.msrb.mxu3 %v3406_v41  ;;  %v3374_v44 = vor.u32 %v4144_v50, %v3371_v43 }
 0x125   :  { %v3378_v62 = vor.u32 %v4149_v61, %v3377_v38  ;;  %v4139_v41 = vld [vmem:[#allocation3 + $0x84] sm:$0xf]  ;;  %v3346_v38 = vor.u32 %v4141_v49, %v3345_v40  ;;  %v3347_v61 = vld [vmem:[#allocation3 + $0x90] sm:$0xf0]  ;;  %v3313_v50 = vld [vmem:[#allocation3 + $0x40] sm:$0xf] }
 0x126   :  { %v4338_v52 = vpop.eup %4337  ;;  %v4867_v57 = vadd.f32 %v720_v37, %v718_v34  ;;  %v3379_v37 = vld [vmem:[#allocation3 + $0xd0] sm:$0xf0]  ;;  %v4150_v34 = vld [vmem:[#allocation3 + $0xd4] sm:$0xf0]  ;;  %v4133_v43 = vld [vmem:[#allocation3 + $0x4c] sm:$0xf0] }
 0x127   :  { %v4340_v55 = vpop.eup %4339  ;;  %v725_v45 = vmul.f32 %v4338_v52, %v715_v46  ;;  %v3385_v46 = vld [vmem:[#allocation3 + $0xc8] sm:$0xf]  ;;  %v3382_v52 = vor.u32 %v4147_v47, %v3379_v37  ;;  %1241 = vmatpush.bf16.msrb.mxu0 %v3378_v62  ;;  %v4142_v62 = vld [vmem:[#allocation3 + $0x94] sm:$0xf0]  ;;  %v3350_v37 = vor.u32 %v4139_v41, %v3347_v61  ;;  %v3314_v40 = vor.u32 %v4133_v43, %v3313_v50  ;;  %v3315_v49 = vld [vmem:[#allocation3 + $0x50] sm:$0xf0] }
 0x128   :  { %4341 = vtanh.f32 %v4867_v57  ;;  %v714_v53 = vmul.f32 0.5, %v4340_v55  ;;  %v3386_v55 = vor.u32 %v4150_v34, %v3385_v46  ;;  %v3353_v47 = vld [vmem:[#allocation3 + $0x88] sm:$0xf]  ;;  %v4140_v34 = vld [vmem:[#allocation3 + $0x8c] sm:$0xf] }
 0x129   :  { %727 = vst [vmem:[#allocation6] sm:$0xff] %v725_v45  ;;  %1255 = vmatpush.bf16.msrb.mxu1 %v3382_v52  ;;  %v3354_v46 = vor.u32 %v4142_v62, %v3353_v47  ;;  %v3355_v52 = vld [vmem:[#allocation3 + $0x98] sm:$0xf0]  ;;  %v3321_v41 = vld [vmem:[#allocation3 + $0x48] sm:$0xf] }
 0x12a   :  { %v716_v58 = vadd.f32 0.5, %v714_v53  ;;  %v3387_v53 = vld [vmem:[#allocation3 + $0xd8] sm:$0xf0]  ;;  %1269 = vmatpush.bf16.msrb.mxu2 %v3386_v55  ;;  %v3358_v55 = vor.u32 %v4140_v34, %v3355_v52  ;;  %v4132_v62 = vld [vmem:[#allocation3 + $0x4c] sm:$0xf] }
 0x12b   :  { %v3297_v34 = vld [vmem:[#allocation3 + $0x20] sm:$0xf]  ;;  %v4129_v52 = vld [vmem:[#allocation3 + $0x2c] sm:$0xf0] }
 0x12c   :  { %v3281_v43 = vld [vmem:[#allocation3] sm:$0xf] }
 0x12e   :  { %v4342_v59 = vpop.eup %4341  ;;  %1270 = vmatpush.bf16.msrb.mxu2 %v3370_v51 }
 0x12f   :  { %v726_v35 = vmul.f32 %v4342_v59, %v716_v58  ;;  %v3361_v59 = vld [vmem:[#allocation3 + $0xa0] sm:$0xf] }
 0x131   :  { %728 = vst [vmem:[#allocation6 + $0x8] sm:$0xff] %v726_v35  ;;  %v740_v36 = vpack.c.bf16 %v726_v35, %v725_v45  ;;  %v4148_v45 = vld [vmem:[#allocation3 + $0xcc] sm:$0xf]  ;;  %v4145_v35 = vld [vmem:[#allocation3 + $0xac] sm:$0xf0] }
 0x132   :  { %v3390_v58 = vor.u32 %v4148_v45, %v3387_v53  ;;  %v3362_v60 = vor.u32 %v4145_v35, %v3361_v59  ;;  %1271 = vmatpush.bf16.msrb.mxu2 %v3354_v46  ;;  %v3329_v45 = vld [vmem:[#allocation3 + $0x60] sm:$0xf]  ;;  %v4137_v53 = vld [vmem:[#allocation3 + $0x6c] sm:$0xf0]  ;;  %v3331_v35 = vld [vmem:[#allocation3 + $0x70] sm:$0xf0] }
 0x133   :  { %941 = vmatmul.bf16.vlgmr.msra.gmra.mxu0 %v740_v36  ;;  %955 = vmatmul.bf16.vlgmr.msra.gmra.mxu1 %v740_v36  ;;  %v3330_v59 = vor.u32 %v4137_v53, %v3329_v45  ;;  %v3298_v45 = vor.u32 %v4129_v52, %v3297_v34  ;;  %v3299_v53 = vld [vmem:[#allocation3 + $0x30] sm:$0xf0]  ;;  %v3291_v34 = vld [vmem:[#allocation3 + $0x18] sm:$0xf0] }
 0x134   :  { %969 = vmatmul.bf16.vlgmr.msra.gmra.mxu2 %v740_v36  ;;  %983 = vmatmul.bf16.vlgmr.msra.gmra.mxu3 %v740_v36  ;;  %v4143_v36 = vld [vmem:[#allocation3 + $0xa4] sm:$0xf] }
 0x135   :  { %1283 = vmatpush.bf16.msrb.mxu3 %v3390_v58  ;;  %v3366_v39 = vor.u32 %v4143_v36, %v3363_v56  ;;  %1242 = vmatpush.bf16.msrb.mxu0 %v3362_v60  ;;  %v4135_v58 = vld [vmem:[#allocation3 + $0x64] sm:$0xf]  ;;  %v3337_v36 = vld [vmem:[#allocation3 + $0x68] sm:$0xf]  ;;  %v4138_v60 = vld [vmem:[#allocation3 + $0x74] sm:$0xf0] }
 0x136   :  { %v3334_v56 = vor.u32 %v4135_v58, %v3331_v35  ;;  %v3338_v54 = vor.u32 %v4138_v60, %v3337_v36  ;;  %v3305_v58 = vld [vmem:[#allocation3 + $0x28] sm:$0xf] }
 0x137   :  { %1256 = vmatpush.bf16.msrb.mxu1 %v3366_v39  ;;  %v3339_v39 = vld [vmem:[#allocation3 + $0x78] sm:$0xf0] }
 0x138   :  { %v3342_v51 = vor.u32 %v4136_v42, %v3339_v39  ;;  %1272 = vmatpush.bf16.msrb.mxu2 %v3338_v54  ;;  %v4128_v54 = vld [vmem:[#allocation3 + $0x2c] sm:$0xf]  ;;  %v3307_v42 = vld [vmem:[#allocation3 + $0x38] sm:$0xf0] }
 0x139   :  { %1284 = vmatpush.bf16.msrb.mxu3 %v3374_v44  ;;  %1243 = vmatpush.bf16.msrb.mxu0 %v3346_v38  ;;  %v4131_v44 = vld [vmem:[#allocation3 + $0x44] sm:$0xf]  ;;  %v4134_v38 = vld [vmem:[#allocation3 + $0x54] sm:$0xf0]  ;;  %v3310_v50 = vor.u32 %v4128_v54, %v3307_v42 }
 0x13a   :  { %v3318_v61 = vor.u32 %v4131_v44, %v3315_v49  ;;  %v3322_v47 = vor.u32 %v4134_v38, %v3321_v41  ;;  %v4125_v44 = vld [vmem:[#allocation3 + $0xc] sm:$0xf0] }
 0x13b   :  { %1257 = vmatpush.bf16.msrb.mxu1 %v3350_v37  ;;  %v3323_v37 = vld [vmem:[#allocation3 + $0x58] sm:$0xf0]  ;;  %v3282_v38 = vor.u32 %v4125_v44, %v3281_v43 }
 0x13c   :  { %v3326_v46 = vor.u32 %v4132_v62, %v3323_v37  ;;  %1273 = vmatpush.bf16.msrb.mxu2 %v3322_v47  ;;  %v3289_v47 = vld [vmem:[#allocation3 + $0x8] sm:$0xf]  ;;  %v4126_v37 = vld [vmem:[#allocation3 + $0x14] sm:$0xf0] }
 0x13d   :  { %1285 = vmatpush.bf16.msrb.mxu3 %v3358_v55  ;;  %1244 = vmatpush.bf16.msrb.mxu0 %v3330_v59  ;;  %v4127_v55 = vld [vmem:[#allocation3 + $0x24] sm:$0xf]  ;;  %v4130_v59 = vld [vmem:[#allocation3 + $0x34] sm:$0xf0] }
 0x13e   :  { %v3302_v60 = vor.u32 %v4127_v55, %v3299_v53 }
 0x13f   :  { %1258 = vmatpush.bf16.msrb.mxu1 %v3334_v56  ;;  %v3306_v56 = vor.u32 %v4130_v59, %v3305_v58 }
 0x141   :  { %1286 = vmatpush.bf16.msrb.mxu3 %v3342_v51  ;;  %1245 = vmatpush.bf16.msrb.mxu0 %v3314_v40  ;;  %v4123_v40 = vld [vmem:[#allocation3 + $0x4] sm:$0xf] }
 0x142   :  { %1274 = vmatpush.bf16.msrb.mxu2 %v3306_v56 }
 0x143   :  { %1259 = vmatpush.bf16.msrb.mxu1 %v3318_v61  ;;  %v3283_v61 = vld [vmem:[#allocation3 + $0x10] sm:$0xf0] }
 0x144   :  { %v3286_v62 = vor.u32 %v4123_v40, %v3283_v61 }
 0x145   :  { %1287 = vmatpush.bf16.msrb.mxu3 %v3326_v46  ;;  %1246 = vmatpush.bf16.msrb.mxu0 %v3298_v45  ;;  %v4124_v46 = vld [vmem:[#allocation3 + $0xc] sm:$0xf] }
 0x147   :  { %1260 = vmatpush.bf16.msrb.mxu1 %v3302_v60 }
 0x149   :  { %1288 = vmatpush.bf16.msrb.mxu3 %v3310_v50  ;;  %1247 = vmatpush.bf16.msrb.mxu0 %v3282_v38 }
 0x14b   :  { %1261 = vmatpush.bf16.msrb.mxu1 %v3286_v62 }
 0x1b0   :  { %v942_v35 = vpop.f32.mrf.mxu0  ;;  %v956_v36 = vpop.f32.mrf.mxu1 }
 0x1b1   :  { %v989_v39 = vadd.f32 %v942_v35, %v4738_v63  ;;  %v990_v51 = vadd.f32 %v956_v36, %v4740_v0  ;;  %v3290_v63 = vor.u32 %v4126_v37, %v3289_v47  ;;  %v3294_v0 = vor.u32 %v4124_v46, %v3291_v34 }
 0x1b3   :  { %v997_v49 = vmul.f32 0.5, %v989_v39  ;;  %v1005_v41 = vmul.f32 0.5, %v990_v51  ;;  %1275 = vmatpush.bf16.msrb.mxu2 %v3290_v63  ;;  %1289 = vmatpush.bf16.msrb.mxu3 %v3294_v0 }
 0x1b5   :  { %4343 = vtanh.f32 %v997_v49 }
 0x1b6   :  { %4345 = vtanh.f32 %v1005_v41 }
 0x1b7   :  { %v970_v52 = vpop.f32.mrf.mxu2  ;;  %v984_v55 = vpop.f32.mrf.mxu3 }
 0x1b8   :  { %v991_v45 = vadd.f32 %v970_v52, %v4742_v1  ;;  %v992_v53 = vadd.f32 %v984_v55, %v4744_v2  ;;  %v944_v58 = vpop.f32.mrf.mxu0  ;;  %v958_v59 = vpop.f32.mrf.mxu1 }
 0x1b9   :  { %v993_v35 = vadd.f32 %v944_v58, %v4746_v3  ;;  %v994_v36 = vadd.f32 %v958_v59, %v4748_v4 }
 0x1ba   :  { %4347 = vtanh.f32 %v991_v45  ;;  %v1015_v60 = vmul.f32 0.5, %v992_v53 }
 0x1bb   :  { %v4344_v56 = vpop.eup %4343  ;;  %v998_v54 = vmul.f32 0.5, %v993_v35  ;;  %v1006_v42 = vmul.f32 0.5, %v994_v36 }
 0x1bc   :  { %v4346_v39 = vpop.eup %4345  ;;  %v1001_v51 = vmul.f32 0.5, %v4344_v56  ;;  %4349 = vtanh.f32 %v1015_v60 }
 0x1bd   :  { %v1009_v50 = vmul.f32 0.5, %v4346_v39  ;;  %4351 = vtanh.f32 %v998_v54  ;;  %v4183_v39 = vld [vmem:[#allocation3 + $0xe4] sm:$0xf] }
 0x1be   :  { %v1003_v43 = vadd.f32 0.5, %v1001_v51  ;;  %4353 = vtanh.f32 %v1006_v42  ;;  %v4185_v42 = vld [vmem:[#allocation3 + $0xec] sm:$0xf0] }
 0x1bf   :  { %v1011_v1 = vadd.f32 0.5, %v1009_v50  ;;  %v972_v2 = vpop.f32.mrf.mxu2  ;;  %v986_v44 = vpop.f32.mrf.mxu3  ;;  %v3523_v50 = vld [vmem:[#allocation3 + $0xf0] sm:$0xf0] }
 0x1c0   :  { %v4348_v40 = vpop.eup %4347  ;;  %v995_v3 = vadd.f32 %v972_v2, %v4750_v5  ;;  %v996_v4 = vadd.f32 %v986_v44, %v4752_v6  ;;  %v3526_v2 = vor.u32 %v4183_v39, %v3523_v50  ;;  %v4173_v39 = vld [vmem:[#allocation3 + $0x8c] sm:$0xf0] }
 0x1c1   :  { %v1023_v49 = vmul.f32 %v1011_v1, %v4861_v48  ;;  %v1025_v41 = vmul.f32 %v4348_v40, %v1003_v43  ;;  %v3529_v43 = vld [vmem:[#allocation3 + $0xe8] sm:$0xf]  ;;  %v4186_v1 = vld [vmem:[#allocation3 + $0xf4] sm:$0xf0]  ;;  %v4184_v40 = vld [vmem:[#allocation3 + $0xec] sm:$0xf] }
 0x1c2   :  { %v4350_v38 = vpop.eup %4349  ;;  %4355 = vtanh.f32 %v995_v3  ;;  %v1016_v61 = vmul.f32 0.5, %v996_v4  ;;  %v3530_v44 = vor.u32 %v4186_v1, %v3529_v43  ;;  %v3531_v3 = vld [vmem:[#allocation3 + $0xf8] sm:$0xf0]  ;;  %1561 = vmatpush.bf16.msra.mxu1 %v3526_v2  ;;  %v3475_v43 = vld [vmem:[#allocation3 + $0x90] sm:$0xf0] }
 0x1c3   :  { %v4352_v47 = vpop.eup %4351  ;;  %v4879_v62 = vadd.f32 %v1025_v41, %v1023_v49  ;;  %v1019_v63 = vmul.f32 0.5, %v4350_v38  ;;  %v3534_v4 = vor.u32 %v4184_v40, %v3531_v3  ;;  %v3505_v49 = vld [vmem:[#allocation3 + $0xc0] sm:$0xf]  ;;  %v4181_v41 = vld [vmem:[#allocation3 + $0xcc] sm:$0xf0] }
 0x1c4   :  { %v4354_v37 = vpop.eup %4353  ;;  %v1002_v46 = vmul.f32 0.5, %v4352_v47  ;;  %4357 = vtanh.f32 %v1016_v61  ;;  %1575 = vmatpush.bf16.msra.mxu2 %v3530_v44  ;;  %v4179_v38 = vld [vmem:[#allocation3 + $0xc4] sm:$0xf]  ;;  %v3506_v61 = vor.u32 %v4181_v41, %v3505_v49  ;;  %v3507_v47 = vld [vmem:[#allocation3 + $0xd0] sm:$0xf0] }
 0x1c5   :  { %4359 = vtanh.f32 %v4879_v62  ;;  %v1010_v34 = vmul.f32 0.5, %v4354_v37  ;;  %v1021_v45 = vadd.f32 0.5, %v1019_v63  ;;  %1589 = vmatpush.bf16.msra.mxu3 %v3534_v4  ;;  %v3513_v37 = vld [vmem:[#allocation3 + $0xc8] sm:$0xf]  ;;  %v4174_v2 = vld [vmem:[#allocation3 + $0x94] sm:$0xf0] }
 0x1c6   :  { %v1004_v0 = vadd.f32 0.5, %v1002_v46  ;;  %v4182_v46 = vld [vmem:[#allocation3 + $0xd4] sm:$0xf0]  ;;  %v3481_v1 = vld [vmem:[#allocation3 + $0x88] sm:$0xf] }
 0x1c7   :  { %v1012_v5 = vadd.f32 0.5, %v1010_v34  ;;  %v3510_v34 = vor.u32 %v4179_v38, %v3507_v47  ;;  %v3514_v63 = vor.u32 %v4182_v46, %v3513_v37  ;;  %v3482_v40 = vor.u32 %v4174_v2, %v3481_v1  ;;  %v4172_v3 = vld [vmem:[#allocation3 + $0x8c] sm:$0xf]  ;;  %v3483_v4 = vld [vmem:[#allocation3 + $0x98] sm:$0xf0] }
 0x1c8   :  { %v4356_v52 = vpop.eup %4355  ;;  %v3486_v49 = vor.u32 %v4172_v3, %v3483_v4  ;;  %v3457_v41 = vld [vmem:[#allocation3 + $0x60] sm:$0xf]  ;;  %v4169_v38 = vld [vmem:[#allocation3 + $0x6c] sm:$0xf0]  ;;  %v3459_v37 = vld [vmem:[#allocation3 + $0x70] sm:$0xf0] }
 0x1c9   :  { %v1024_v6 = vmul.f32 %v1012_v5, %v4867_v57  ;;  %v1026_v48 = vmul.f32 %v4356_v52, %v1004_v0  ;;  %v3521_v57 = vld [vmem:[#allocation3 + $0xe0] sm:$0xf]  ;;  %v4180_v0 = vld [vmem:[#allocation3 + $0xcc] sm:$0xf]  ;;  %v3515_v5 = vld [vmem:[#allocation3 + $0xd8] sm:$0xf0]  ;;  %1562 = vmatpush.bf16.msra.mxu1 %v3510_v34  ;;  %1576 = vmatpush.bf16.msra.mxu2 %v3514_v63  ;;  %v3458_v47 = vor.u32 %v4169_v38, %v3457_v41 }
 0x1ca   :  { %v4358_v55 = vpop.eup %4357  ;;  %v3522_v51 = vor.u32 %v4185_v42, %v3521_v57  ;;  %v3518_v52 = vor.u32 %v4180_v0, %v3515_v5  ;;  %v3473_v42 = vld [vmem:[#allocation3 + $0x80] sm:$0xf]  ;;  %v3465_v46 = vld [vmem:[#allocation3 + $0x68] sm:$0xf]  ;;  %v4170_v34 = vld [vmem:[#allocation3 + $0x74] sm:$0xf0] }
 0x1cb   :  { %v4360_v53 = vpop.eup %4359  ;;  %v4883_v58 = vadd.f32 %v1026_v48, %v1024_v6  ;;  %v1020_v35 = vmul.f32 0.5, %v4358_v55  ;;  %v3489_v6 = vld [vmem:[#allocation3 + $0xa0] sm:$0xf]  ;;  %v4177_v48 = vld [vmem:[#allocation3 + $0xac] sm:$0xf0]  ;;  %v3474_v50 = vor.u32 %v4173_v39, %v3473_v42  ;;  %v3466_v0 = vor.u32 %v4170_v34, %v3465_v46 }
 0x1cc   :  { %v1031_v59 = vmul.f32 %v4360_v53, %v1021_v45  ;;  %1547 = vmatpush.bf16.msra.mxu0 %v3522_v51  ;;  %v4175_v55 = vld [vmem:[#allocation3 + $0xa4] sm:$0xf]  ;;  %1590 = vmatpush.bf16.msra.mxu3 %v3518_v52  ;;  %v3490_v45 = vor.u32 %v4177_v48, %v3489_v6  ;;  %v3491_v53 = vld [vmem:[#allocation3 + $0xb0] sm:$0xf0]  ;;  %v4168_v5 = vld [vmem:[#allocation3 + $0x6c] sm:$0xf] }
 0x1cd   :  { %4361 = vtanh.f32 %v4883_v58  ;;  %v1022_v36 = vadd.f32 0.5, %v1020_v35  ;;  %v4178_v35 = vld [vmem:[#allocation3 + $0xb4] sm:$0xf0]  ;;  %v4171_v51 = vld [vmem:[#allocation3 + $0x84] sm:$0xf] }
 0x1ce   :  { %1034 = vst [vmem:[#allocation6 + $0x10] sm:$0xff] %v1031_v59  ;;  %v3478_v44 = vor.u32 %v4171_v51, %v3475_v43  ;;  %v3467_v52 = vld [vmem:[#allocation3 + $0x78] sm:$0xf0]  ;;  %v3441_v48 = vld [vmem:[#allocation3 + $0x40] sm:$0xf] }
 0x1cf   :  { %v3470_v6 = vor.u32 %v4168_v5, %v3467_v52  ;;  %v3425_v39 = vld [vmem:[#allocation3 + $0x20] sm:$0xf]  ;;  %v4161_v51 = vld [vmem:[#allocation3 + $0x2c] sm:$0xf0]  ;;  %v3427_v1 = vld [vmem:[#allocation3 + $0x30] sm:$0xf0] }
 0x1d0   :  { %1548 = vmatpush.bf16.msra.mxu0 %v3506_v61  ;;  %v4167_v61 = vld [vmem:[#allocation3 + $0x64] sm:$0xf]  ;;  %v3426_v43 = vor.u32 %v4161_v51, %v3425_v39  ;;  %v3433_v2 = vld [vmem:[#allocation3 + $0x28] sm:$0xf]  ;;  %v4160_v41 = vld [vmem:[#allocation3 + $0x2c] sm:$0xf] }
 0x1d1   :  { %v3462_v63 = vor.u32 %v4167_v61, %v3459_v37  ;;  %v3435_v38 = vld [vmem:[#allocation3 + $0x38] sm:$0xf0]  ;;  %v3409_v46 = vld [vmem:[#allocation3] sm:$0xf]  ;;  %v4157_v34 = vld [vmem:[#allocation3 + $0xc] sm:$0xf0] }
 0x1d2   :  { %v3438_v37 = vor.u32 %v4160_v41, %v3435_v38  ;;  %v3410_v52 = vor.u32 %v4157_v34, %v3409_v46 }
 0x1d3   :  { %v4362_v60 = vpop.eup %4361 }
 0x1d4   :  { %v1032_v56 = vmul.f32 %v4362_v60, %v1022_v36  ;;  %v3494_v36 = vor.u32 %v4175_v55, %v3491_v53  ;;  %1549 = vmatpush.bf16.msra.mxu0 %v3490_v45  ;;  %v4165_v55 = vld [vmem:[#allocation3 + $0x4c] sm:$0xf0]  ;;  %v4163_v45 = vld [vmem:[#allocation3 + $0x44] sm:$0xf] }
 0x1d5   :  { %v3442_v53 = vor.u32 %v4165_v55, %v3441_v48  ;;  %v3417_v48 = vld [vmem:[#allocation3 + $0x8] sm:$0xf] }
 0x1d6   :  { %1035 = vst [vmem:[#allocation6 + $0x18] sm:$0xff] %v1032_v56  ;;  %v1047_v54 = vpack.c.bf16 %v1032_v56, %v1031_v59  ;;  %v3497_v59 = vld [vmem:[#allocation3 + $0xa8] sm:$0xf]  ;;  %v4176_v56 = vld [vmem:[#allocation3 + $0xac] sm:$0xf]  ;;  %1563 = vmatpush.bf16.msra.mxu1 %v3494_v36 }
 0x1d7   :  { %v3498_v60 = vor.u32 %v4178_v35, %v3497_v59  ;;  %v3443_v59 = vld [vmem:[#allocation3 + $0x50] sm:$0xf0]  ;;  %v3449_v35 = vld [vmem:[#allocation3 + $0x48] sm:$0xf]  ;;  %v4166_v36 = vld [vmem:[#allocation3 + $0x54] sm:$0xf0] }
 0x1d8   :  { %1248 = vmatmul.bf16.vlgmr.msrb.gmra.mxu0 %v1047_v54  ;;  %1262 = vmatmul.bf16.vlgmr.msrb.gmra.mxu1 %v1047_v54 }
 0x1d9   :  { %1276 = vmatmul.bf16.vlgmr.msrb.gmra.mxu2 %v1047_v54  ;;  %1290 = vmatmul.bf16.vlgmr.msrb.gmra.mxu3 %v1047_v54  ;;  %v3499_v54 = vld [vmem:[#allocation3 + $0xb8] sm:$0xf0] }
 0x1da   :  { %v3502_v57 = vor.u32 %v4176_v56, %v3499_v54  ;;  %1577 = vmatpush.bf16.msra.mxu2 %v3498_v60  ;;  %1550 = vmatpush.bf16.msra.mxu0 %v3474_v50  ;;  %v3446_v60 = vor.u32 %v4163_v45, %v3443_v59  ;;  %v3450_v56 = vor.u32 %v4166_v36, %v3449_v35  ;;  %v4164_v54 = vld [vmem:[#allocation3 + $0x4c] sm:$0xf]  ;;  %v4159_v50 = vld [vmem:[#allocation3 + $0x24] sm:$0xf]  ;;  %v4158_v45 = vld [vmem:[#allocation3 + $0x14] sm:$0xf0] }
 0x1db   :  { %1564 = vmatpush.bf16.msra.mxu1 %v3478_v44  ;;  %v4162_v44 = vld [vmem:[#allocation3 + $0x34] sm:$0xf0]  ;;  %v3430_v4 = vor.u32 %v4159_v50, %v3427_v1  ;;  %v3419_v59 = vld [vmem:[#allocation3 + $0x18] sm:$0xf0] }
 0x1dc   :  { %1591 = vmatpush.bf16.msra.mxu3 %v3502_v57  ;;  %v3451_v57 = vld [vmem:[#allocation3 + $0x58] sm:$0xf0] }
 0x1dd   :  { %v3454_v42 = vor.u32 %v4164_v54, %v3451_v57 }
 0x1de   :  { %1578 = vmatpush.bf16.msra.mxu2 %v3482_v40  ;;  %1551 = vmatpush.bf16.msra.mxu0 %v3458_v47 }
 0x1df   :  { %1565 = vmatpush.bf16.msra.mxu1 %v3462_v63  ;;  %v4155_v63 = vld [vmem:[#allocation3 + $0x4] sm:$0xf] }
 0x1e0   :  { %1592 = vmatpush.bf16.msra.mxu3 %v3486_v49  ;;  %v3434_v49 = vor.u32 %v4162_v44, %v3433_v2 }
 0x1e2   :  { %1579 = vmatpush.bf16.msra.mxu2 %v3466_v0  ;;  %1552 = vmatpush.bf16.msra.mxu0 %v3442_v53  ;;  %v4156_v53 = vld [vmem:[#allocation3 + $0xc] sm:$0xf] }
 0x1e3   :  { %1566 = vmatpush.bf16.msra.mxu1 %v3446_v60 }
 0x1e4   :  { %1593 = vmatpush.bf16.msra.mxu3 %v3470_v6  ;;  %v3411_v6 = vld [vmem:[#allocation3 + $0x10] sm:$0xf0] }
 0x1e5   :  { %v3414_v55 = vor.u32 %v4155_v63, %v3411_v6 }
 0x1e6   :  { %1580 = vmatpush.bf16.msra.mxu2 %v3450_v56  ;;  %1553 = vmatpush.bf16.msra.mxu0 %v3426_v43 }
 0x1e7   :  { %1567 = vmatpush.bf16.msra.mxu1 %v3430_v4 }
 0x1e8   :  { %1594 = vmatpush.bf16.msra.mxu3 %v3454_v42 }
 0x1ea   :  { %1581 = vmatpush.bf16.msra.mxu2 %v3434_v49  ;;  %1554 = vmatpush.bf16.msra.mxu0 %v3410_v52 }
 0x1eb   :  { %1568 = vmatpush.bf16.msra.mxu1 %v3414_v55 }
 0x1ec   :  { %1595 = vmatpush.bf16.msra.mxu3 %v3438_v37 }
 0x255   :  { %v1249_v40 = vpop.f32.mrf.mxu0  ;;  %v1263_v3 = vpop.f32.mrf.mxu1 }
 0x256   :  { %v1296_v61 = vadd.f32 %v1249_v40, %v4754_v7  ;;  %v1297_v47 = vadd.f32 %v1263_v3, %v4756_v8  ;;  %v3418_v7 = vor.u32 %v4158_v45, %v3417_v48  ;;  %v3422_v8 = vor.u32 %v4156_v53, %v3419_v59 }
 0x258   :  { %v1304_v0 = vmul.f32 0.5, %v1296_v61  ;;  %v1312_v5 = vmul.f32 0.5, %v1297_v47  ;;  %1582 = vmatpush.bf16.msra.mxu2 %v3418_v7  ;;  %1596 = vmatpush.bf16.msra.mxu3 %v3422_v8 }
 0x25a   :  { %4363 = vtanh.f32 %v1304_v0 }
 0x25b   :  { %4365 = vtanh.f32 %v1312_v5 }
 0x25c   :  { %v1277_v35 = vpop.f32.mrf.mxu2  ;;  %v1291_v36 = vpop.f32.mrf.mxu3 }
 0x25d   :  { %v1298_v60 = vadd.f32 %v1277_v35, %v4758_v9  ;;  %v1299_v56 = vadd.f32 %v1291_v36, %v4760_v10  ;;  %v1251_v54 = vpop.f32.mrf.mxu0  ;;  %v1265_v57 = vpop.f32.mrf.mxu1 }
 0x25e   :  { %v1300_v42 = vadd.f32 %v1251_v54, %v4762_v11  ;;  %v1301_v39 = vadd.f32 %v1265_v57, %v4764_v12  ;;  %v4215_v54 = vld [vmem:[#allocation3 + $0xe4] sm:$0xf] }
 0x25f   :  { %4367 = vtanh.f32 %v1298_v60  ;;  %v1322_v51 = vmul.f32 0.5, %v1299_v56  ;;  %v4217_v56 = vld [vmem:[#allocation3 + $0xec] sm:$0xf0] }
 0x260   :  { %v4364_v50 = vpop.eup %4363  ;;  %v1305_v43 = vmul.f32 0.5, %v1300_v42  ;;  %v1313_v1 = vmul.f32 0.5, %v1301_v39  ;;  %v3651_v42 = vld [vmem:[#allocation3 + $0xf0] sm:$0xf0]  ;;  %v3657_v39 = vld [vmem:[#allocation3 + $0xe8] sm:$0xf] }
 0x261   :  { %v4366_v2 = vpop.eup %4365  ;;  %v1308_v44 = vmul.f32 0.5, %v4364_v50  ;;  %4369 = vtanh.f32 %v1322_v51  ;;  %v4218_v51 = vld [vmem:[#allocation3 + $0xf4] sm:$0xf0]  ;;  %v3654_v50 = vor.u32 %v4215_v54, %v3651_v42  ;;  %v4204_v54 = vld [vmem:[#allocation3 + $0x8c] sm:$0xf] }
 0x262   :  { %v1316_v40 = vmul.f32 0.5, %v4366_v2  ;;  %4371 = vtanh.f32 %v1305_v43  ;;  %v3658_v43 = vor.u32 %v4218_v51, %v3657_v39  ;;  %v3659_v2 = vld [vmem:[#allocation3 + $0xf8] sm:$0xf0]  ;;  %v3585_v39 = vld [vmem:[#allocation3 + $0x60] sm:$0xf] }
 0x263   :  { %v1310_v3 = vadd.f32 0.5, %v1308_v44  ;;  %4373 = vtanh.f32 %v1313_v1  ;;  %v4216_v1 = vld [vmem:[#allocation3 + $0xec] sm:$0xf]  ;;  %1868 = vmatpush.bf16.msrb.mxu1 %v3654_v50  ;;  %v4201_v51 = vld [vmem:[#allocation3 + $0x6c] sm:$0xf0] }
 0x264   :  { %v1318_v9 = vadd.f32 0.5, %v1316_v40  ;;  %v1279_v10 = vpop.f32.mrf.mxu2  ;;  %v1293_v4 = vpop.f32.mrf.mxu3  ;;  %v3662_v44 = vor.u32 %v4216_v1, %v3659_v2  ;;  %1882 = vmatpush.bf16.msrb.mxu2 %v3658_v43  ;;  %v3633_v40 = vld [vmem:[#allocation3 + $0xc0] sm:$0xf]  ;;  %v4199_v50 = vld [vmem:[#allocation3 + $0x64] sm:$0xf]  ;;  %v3586_v43 = vor.u32 %v4201_v51, %v3585_v39 }
 0x265   :  { %v4368_v49 = vpop.eup %4367  ;;  %v1302_v11 = vadd.f32 %v1279_v10, %v4766_v13  ;;  %v1303_v12 = vadd.f32 %v1293_v4, %v4768_v14  ;;  %v3635_v4 = vld [vmem:[#allocation3 + $0xd0] sm:$0xf0]  ;;  %v3593_v2 = vld [vmem:[#allocation3 + $0x68] sm:$0xf] }
 0x266   :  { %v1330_v41 = vmul.f32 %v1318_v9, %v4879_v62  ;;  %v1332_v38 = vmul.f32 %v4368_v49, %v1310_v3  ;;  %v4213_v3 = vld [vmem:[#allocation3 + $0xcc] sm:$0xf0]  ;;  %v4211_v9 = vld [vmem:[#allocation3 + $0xc4] sm:$0xf]  ;;  %1896 = vmatpush.bf16.msrb.mxu3 %v3662_v44  ;;  %v3641_v49 = vld [vmem:[#allocation3 + $0xc8] sm:$0xf] }
 0x267   :  { %v4370_v61 = vpop.eup %4369  ;;  %4375 = vtanh.f32 %v1302_v11  ;;  %v1323_v47 = vmul.f32 0.5, %v1303_v12  ;;  %v3634_v10 = vor.u32 %v4213_v3, %v3633_v40  ;;  %v4214_v11 = vld [vmem:[#allocation3 + $0xd4] sm:$0xf0]  ;;  %v3638_v12 = vor.u32 %v4211_v9, %v3635_v4  ;;  %v3587_v1 = vld [vmem:[#allocation3 + $0x70] sm:$0xf0] }
 0x268   :  { %v4372_v37 = vpop.eup %4371  ;;  %v4895_v46 = vadd.f32 %v1332_v38, %v1330_v41  ;;  %v1326_v5 = vmul.f32 0.5, %v4370_v61  ;;  %v3642_v41 = vor.u32 %v4214_v11, %v3641_v49  ;;  %v4212_v38 = vld [vmem:[#allocation3 + $0xcc] sm:$0xf]  ;;  %v3643_v61 = vld [vmem:[#allocation3 + $0xd8] sm:$0xf0]  ;;  %v3590_v40 = vor.u32 %v4199_v50, %v3587_v1 }
 0x269   :  { %v4374_v34 = vpop.eup %4373  ;;  %v1309_v63 = vmul.f32 0.5, %v4372_v37  ;;  %4377 = vtanh.f32 %v1323_v47  ;;  %v3646_v47 = vor.u32 %v4212_v38, %v3643_v61  ;;  %1869 = vmatpush.bf16.msrb.mxu1 %v3638_v12  ;;  %v3617_v37 = vld [vmem:[#allocation3 + $0xa0] sm:$0xf]  ;;  %v4202_v44 = vld [vmem:[#allocation3 + $0x74] sm:$0xf0] }
 0x26a   :  { %4379 = vtanh.f32 %v4895_v46  ;;  %v1317_v0 = vmul.f32 0.5, %v4374_v34  ;;  %v1328_v55 = vadd.f32 0.5, %v1326_v5  ;;  %1883 = vmatpush.bf16.msrb.mxu2 %v3642_v41  ;;  %v4209_v34 = vld [vmem:[#allocation3 + $0xac] sm:$0xf0]  ;;  %v3619_v5 = vld [vmem:[#allocation3 + $0xb0] sm:$0xf0]  ;;  %v3594_v3 = vor.u32 %v4202_v44, %v3593_v2 }
 0x26b   :  { %v1311_v52 = vadd.f32 0.5, %v1309_v63  ;;  %v4207_v63 = vld [vmem:[#allocation3 + $0xa4] sm:$0xf]  ;;  %1897 = vmatpush.bf16.msrb.mxu3 %v3646_v47  ;;  %v4200_v9 = vld [vmem:[#allocation3 + $0x6c] sm:$0xf] }
 0x26c   :  { %v1319_v13 = vadd.f32 0.5, %v1317_v0  ;;  %v3618_v0 = vor.u32 %v4209_v34, %v3617_v37  ;;  %v3569_v49 = vld [vmem:[#allocation3 + $0x40] sm:$0xf]  ;;  %v4197_v11 = vld [vmem:[#allocation3 + $0x4c] sm:$0xf0] }
 0x26d   :  { %v4376_v6 = vpop.eup %4375  ;;  %v4195_v12 = vld [vmem:[#allocation3 + $0x44] sm:$0xf]  ;;  %v3570_v41 = vor.u32 %v4197_v11, %v3569_v49  ;;  %v3571_v38 = vld [vmem:[#allocation3 + $0x50] sm:$0xf0]  ;;  %v3577_v61 = vld [vmem:[#allocation3 + $0x48] sm:$0xf] }
 0x26e   :  { %v1331_v14 = vmul.f32 %v1319_v13, %v4883_v58  ;;  %v1333_v62 = vmul.f32 %v4376_v6, %v1311_v52  ;;  %v3649_v58 = vld [vmem:[#allocation3 + $0xe0] sm:$0xf]  ;;  %v3625_v52 = vld [vmem:[#allocation3 + $0xa8] sm:$0xf]  ;;  %v4210_v13 = vld [vmem:[#allocation3 + $0xb4] sm:$0xf0]  ;;  %v3622_v6 = vor.u32 %v4207_v63, %v3619_v5  ;;  %v3574_v37 = vor.u32 %v4195_v12, %v3571_v38 }
 0x26f   :  { %v4378_v48 = vpop.eup %4377  ;;  %v3650_v57 = vor.u32 %v4217_v56, %v3649_v58  ;;  %v4198_v47 = vld [vmem:[#allocation3 + $0x54] sm:$0xf0]  ;;  %v4196_v63 = vld [vmem:[#allocation3 + $0x4c] sm:$0xf]  ;;  %v3545_v1 = vld [vmem:[#allocation3 + $0x8] sm:$0xf] }
 0x270   :  { %v4380_v45 = vpop.eup %4379  ;;  %v4899_v53 = vadd.f32 %v1333_v62, %v1331_v14  ;;  %v1327_v7 = vmul.f32 0.5, %v4378_v48  ;;  %v3626_v14 = vor.u32 %v4210_v13, %v3625_v52  ;;  %v4208_v62 = vld [vmem:[#allocation3 + $0xac] sm:$0xf]  ;;  %v3627_v48 = vld [vmem:[#allocation3 + $0xb8] sm:$0xf0]  ;;  %1870 = vmatpush.bf16.msrb.mxu1 %v3622_v6  ;;  %v3578_v34 = vor.u32 %v4198_v47, %v3577_v61 }
 0x271   :  { %v1338_v59 = vmul.f32 %v4380_v45, %v1328_v55  ;;  %1854 = vmatpush.bf16.msrb.mxu0 %v3650_v57  ;;  %v3630_v55 = vor.u32 %v4208_v62, %v3627_v48  ;;  %v3601_v45 = vld [vmem:[#allocation3 + $0x80] sm:$0xf]  ;;  %v3611_v57 = vld [vmem:[#allocation3 + $0x98] sm:$0xf0]  ;;  %v4193_v13 = vld [vmem:[#allocation3 + $0x2c] sm:$0xf0] }
 0x272   :  { %4381 = vtanh.f32 %v4899_v53  ;;  %v1329_v8 = vadd.f32 0.5, %v1327_v7  ;;  %1884 = vmatpush.bf16.msrb.mxu2 %v3626_v14  ;;  %v4203_v7 = vld [vmem:[#allocation3 + $0x84] sm:$0xf]  ;;  %v3614_v42 = vor.u32 %v4204_v54, %v3611_v57  ;;  %v3553_v52 = vld [vmem:[#allocation3 + $0x20] sm:$0xf] }
 0x273   :  { %1341 = vst [vmem:[#allocation6 + $0x20] sm:$0xff] %v1338_v59  ;;  %1898 = vmatpush.bf16.msrb.mxu3 %v3630_v55  ;;  %v4191_v6 = vld [vmem:[#allocation3 + $0x24] sm:$0xf]  ;;  %v3554_v14 = vor.u32 %v4193_v13, %v3553_v52  ;;  %v3555_v62 = vld [vmem:[#allocation3 + $0x30] sm:$0xf0] }
 0x274   :  { %v3561_v48 = vld [vmem:[#allocation3 + $0x28] sm:$0xf]  ;;  %v4194_v55 = vld [vmem:[#allocation3 + $0x34] sm:$0xf0]  ;;  %v3537_v54 = vld [vmem:[#allocation3] sm:$0xf] }
 0x275   :  { %1855 = vmatpush.bf16.msrb.mxu0 %v3634_v10  ;;  %v3595_v10 = vld [vmem:[#allocation3 + $0x78] sm:$0xf0]  ;;  %v4189_v57 = vld [vmem:[#allocation3 + $0xc] sm:$0xf0]  ;;  %v4190_v44 = vld [vmem:[#allocation3 + $0x14] sm:$0xf0] }
 0x276   :  { %v3598_v4 = vor.u32 %v4200_v9, %v3595_v10  ;;  %v3538_v50 = vor.u32 %v4189_v57, %v3537_v54 }
 0x277   :  { %1899 = vmatpush.bf16.msrb.mxu3 %v3614_v42  ;;  %v4187_v42 = vld [vmem:[#allocation3 + $0x4] sm:$0xf] }
 0x278   :  { %v4382_v35 = vpop.eup %4381 }
 0x279   :  { %v1339_v36 = vmul.f32 %v4382_v35, %v1329_v8  ;;  %1856 = vmatpush.bf16.msrb.mxu0 %v3618_v0  ;;  %v3603_v35 = vld [vmem:[#allocation3 + $0x90] sm:$0xf0]  ;;  %v3579_v0 = vld [vmem:[#allocation3 + $0x58] sm:$0xf0] }
 0x27a   :  { %v3606_v58 = vor.u32 %v4203_v7, %v3603_v35  ;;  %v3582_v5 = vor.u32 %v4196_v63, %v3579_v0  ;;  %v3558_v7 = vor.u32 %v4191_v6, %v3555_v62  ;;  %v4192_v35 = vld [vmem:[#allocation3 + $0x2c] sm:$0xf] }
 0x27b   :  { %1342 = vst [vmem:[#allocation6 + $0x28] sm:$0xff] %v1339_v36  ;;  %v1354_v60 = vpack.c.bf16 %v1339_v36, %v1338_v59  ;;  %v4205_v59 = vld [vmem:[#allocation3 + $0x8c] sm:$0xf0]  ;;  %v3609_v36 = vld [vmem:[#allocation3 + $0x88] sm:$0xf]  ;;  %1900 = vmatpush.bf16.msrb.mxu3 %v3598_v4 }
 0x27c   :  { %v3602_v8 = vor.u32 %v4205_v59, %v3601_v45  ;;  %1871 = vmatpush.bf16.msrb.mxu1 %v3606_v58 }
 0x27d   :  { %1555 = vmatmul.bf16.vlgmr.msra.gmra.mxu0 %v1354_v60  ;;  %1569 = vmatmul.bf16.vlgmr.msra.gmra.mxu1 %v1354_v60 }
 0x27e   :  { %1583 = vmatmul.bf16.vlgmr.msra.gmra.mxu2 %v1354_v60  ;;  %1597 = vmatmul.bf16.vlgmr.msra.gmra.mxu3 %v1354_v60  ;;  %v4206_v60 = vld [vmem:[#allocation3 + $0x94] sm:$0xf0] }
 0x27f   :  { %v3610_v56 = vor.u32 %v4206_v60, %v3609_v36  ;;  %1857 = vmatpush.bf16.msrb.mxu0 %v3602_v8  ;;  %1901 = vmatpush.bf16.msrb.mxu3 %v3582_v5  ;;  %v3562_v8 = vor.u32 %v4194_v55, %v3561_v48  ;;  %v3563_v36 = vld [vmem:[#allocation3 + $0x38] sm:$0xf0] }
 0x280   :  { %1872 = vmatpush.bf16.msrb.mxu1 %v3590_v40  ;;  %v4188_v40 = vld [vmem:[#allocation3 + $0xc] sm:$0xf] }
 0x281   :  { %1885 = vmatpush.bf16.msrb.mxu2 %v3610_v56  ;;  %v3566_v56 = vor.u32 %v4192_v35, %v3563_v36 }
 0x283   :  { %1858 = vmatpush.bf16.msrb.mxu0 %v3586_v43  ;;  %1902 = vmatpush.bf16.msrb.mxu3 %v3566_v56  ;;  %v3539_v43 = vld [vmem:[#allocation3 + $0x10] sm:$0xf0] }
 0x284   :  { %1873 = vmatpush.bf16.msrb.mxu1 %v3574_v37  ;;  %v3542_v2 = vor.u32 %v4187_v42, %v3539_v43 }
 0x285   :  { %1886 = vmatpush.bf16.msrb.mxu2 %v3594_v3  ;;  %v3547_v3 = vld [vmem:[#allocation3 + $0x18] sm:$0xf0] }
 0x287   :  { %1859 = vmatpush.bf16.msrb.mxu0 %v3570_v41 }
 0x288   :  { %1874 = vmatpush.bf16.msrb.mxu1 %v3558_v7 }
 0x289   :  { %1887 = vmatpush.bf16.msrb.mxu2 %v3578_v34 }
 0x28b   :  { %1860 = vmatpush.bf16.msrb.mxu0 %v3554_v14 }
 0x28c   :  { %1875 = vmatpush.bf16.msrb.mxu1 %v3542_v2 }
 0x28d   :  { %1888 = vmatpush.bf16.msrb.mxu2 %v3562_v8 }
 0x28f   :  { %1861 = vmatpush.bf16.msrb.mxu0 %v3538_v50 }
 0x2fa   :  { %v1556_v45 = vpop.f32.mrf.mxu0  ;;  %v1570_v59 = vpop.f32.mrf.mxu1 }
 0x2fb   :  { %v1603_v60 = vadd.f32 %v1556_v45, %v4770_v15  ;;  %v1604_v58 = vadd.f32 %v1570_v59, %v4772_v16  ;;  %v3546_v15 = vor.u32 %v4190_v44, %v3545_v1  ;;  %v3550_v16 = vor.u32 %v4188_v40, %v3547_v3  ;;  %v4249_v44 = vld [vmem:[#allocation3 + $0xec] sm:$0xf0]  ;;  %v4247_v40 = vld [vmem:[#allocation3 + $0xe4] sm:$0xf] }
 0x2fd   :  { %v1611_v39 = vmul.f32 0.5, %v1603_v60  ;;  %v1619_v51 = vmul.f32 0.5, %v1604_v58  ;;  %1889 = vmatpush.bf16.msrb.mxu2 %v3546_v15  ;;  %1903 = vmatpush.bf16.msrb.mxu3 %v3550_v16  ;;  %v3779_v15 = vld [vmem:[#allocation3 + $0xf0] sm:$0xf0]  ;;  %v3785_v16 = vld [vmem:[#allocation3 + $0xe8] sm:$0xf] }
 0x2ff   :  { %4383 = vtanh.f32 %v1611_v39 }
 0x300   :  { %4385 = vtanh.f32 %v1619_v51 }
 0x301   :  { %v1584_v9 = vpop.f32.mrf.mxu2  ;;  %v1598_v10 = vpop.f32.mrf.mxu3 }
 0x302   :  { %v1605_v4 = vadd.f32 %v1584_v9, %v4774_v17  ;;  %v1606_v49 = vadd.f32 %v1598_v10, %v4776_v18  ;;  %v1558_v11 = vpop.f32.mrf.mxu0  ;;  %v1572_v12 = vpop.f32.mrf.mxu1  ;;  %v4250_v9 = vld [vmem:[#allocation3 + $0xf4] sm:$0xf0]  ;;  %v3782_v10 = vor.u32 %v4247_v40, %v3779_v15  ;;  %v3721_v40 = vld [vmem:[#allocation3 + $0x68] sm:$0xf] }
 0x303   :  { %v1607_v41 = vadd.f32 %v1558_v11, %v4778_v19  ;;  %v1608_v38 = vadd.f32 %v1572_v12, %v4780_v20  ;;  %v3787_v11 = vld [vmem:[#allocation3 + $0xf8] sm:$0xf0] }
 0x304   :  { %4387 = vtanh.f32 %v1605_v4  ;;  %v1629_v61 = vmul.f32 0.5, %v1606_v49  ;;  %v3786_v4 = vor.u32 %v4250_v9, %v3785_v16  ;;  %v4248_v49 = vld [vmem:[#allocation3 + $0xec] sm:$0xf]  ;;  %2175 = vmatpush.bf16.msra.mxu1 %v3782_v10  ;;  %v3723_v10 = vld [vmem:[#allocation3 + $0x78] sm:$0xf0] }
 0x305   :  { %v4384_v47 = vpop.eup %4383  ;;  %v1612_v37 = vmul.f32 0.5, %v1607_v41  ;;  %v1620_v34 = vmul.f32 0.5, %v1608_v38  ;;  %v3790_v12 = vor.u32 %v4248_v49, %v3787_v11  ;;  %v3761_v41 = vld [vmem:[#allocation3 + $0xc0] sm:$0xf]  ;;  %v4245_v38 = vld [vmem:[#allocation3 + $0xcc] sm:$0xf0] }
 0x306   :  { %v4386_v63 = vpop.eup %4385  ;;  %v1615_v0 = vmul.f32 0.5, %v4384_v47  ;;  %4389 = vtanh.f32 %v1629_v61  ;;  %2189 = vmatpush.bf16.msra.mxu2 %v3786_v4  ;;  %v4243_v61 = vld [vmem:[#allocation3 + $0xc4] sm:$0xf]  ;;  %v3762_v47 = vor.u32 %v4245_v38, %v3761_v41  ;;  %v4232_v9 = vld [vmem:[#allocation3 + $0x6c] sm:$0xf] }
 0x307   :  { %v1623_v5 = vmul.f32 0.5, %v4386_v63  ;;  %4391 = vtanh.f32 %v1612_v37  ;;  %2203 = vmatpush.bf16.msra.mxu3 %v3790_v12  ;;  %v3763_v37 = vld [vmem:[#allocation3 + $0xd0] sm:$0xf0]  ;;  %v4246_v63 = vld [vmem:[#allocation3 + $0xd4] sm:$0xf0]  ;;  %v3726_v4 = vor.u32 %v4232_v9, %v3723_v10 }
 0x308   :  { %v1617_v52 = vadd.f32 0.5, %v1615_v0  ;;  %4393 = vtanh.f32 %v1620_v34  ;;  %v3769_v34 = vld [vmem:[#allocation3 + $0xc8] sm:$0xf]  ;;  %v3766_v0 = vor.u32 %v4243_v61, %v3763_v37  ;;  %v3697_v49 = vld [vmem:[#allocation3 + $0x40] sm:$0xf] }
 0x309   :  { %v1625_v17 = vadd.f32 0.5, %v1623_v5  ;;  %v1586_v18 = vpop.f32.mrf.mxu2  ;;  %v1600_v13 = vpop.f32.mrf.mxu3  ;;  %v3770_v5 = vor.u32 %v4246_v63, %v3769_v34  ;;  %v4229_v11 = vld [vmem:[#allocation3 + $0x4c] sm:$0xf0]  ;;  %v4227_v12 = vld [vmem:[#allocation3 + $0x44] sm:$0xf] }
 0x30a   :  { %v4388_v6 = vpop.eup %4387  ;;  %v1609_v19 = vadd.f32 %v1586_v18, %v4782_v21  ;;  %v1610_v20 = vadd.f32 %v1600_v13, %v4784_v22  ;;  %2176 = vmatpush.bf16.msra.mxu1 %v3766_v0  ;;  %v3745_v13 = vld [vmem:[#allocation3 + $0xa0] sm:$0xf]  ;;  %v3698_v41 = vor.u32 %v4229_v11, %v3697_v49  ;;  %v3699_v38 = vld [vmem:[#allocation3 + $0x50] sm:$0xf0]  ;;  %v3705_v61 = vld [vmem:[#allocation3 + $0x48] sm:$0xf] }
 0x30b   :  { %v1637_v14 = vmul.f32 %v1625_v17, %v4895_v46  ;;  %v1639_v62 = vmul.f32 %v4388_v6, %v1617_v52  ;;  %v4244_v52 = vld [vmem:[#allocation3 + $0xcc] sm:$0xf]  ;;  %v3771_v17 = vld [vmem:[#allocation3 + $0xd8] sm:$0xf0]  ;;  %2190 = vmatpush.bf16.msra.mxu2 %v3770_v5  ;;  %v4241_v6 = vld [vmem:[#allocation3 + $0xac] sm:$0xf0]  ;;  %v3702_v37 = vor.u32 %v4227_v12, %v3699_v38 }
 0x30c   :  { %v4390_v48 = vpop.eup %4389  ;;  %4395 = vtanh.f32 %v1609_v19  ;;  %v1630_v55 = vmul.f32 0.5, %v1610_v20  ;;  %v3774_v18 = vor.u32 %v4244_v52, %v3771_v17  ;;  %v4239_v19 = vld [vmem:[#allocation3 + $0xa4] sm:$0xf]  ;;  %v3746_v20 = vor.u32 %v4241_v6, %v3745_v13  ;;  %v4228_v63 = vld [vmem:[#allocation3 + $0x4c] sm:$0xf] }
 0x30d   :  { %v4392_v45 = vpop.eup %4391  ;;  %v4911_v59 = vadd.f32 %v1639_v62, %v1637_v14  ;;  %v1633_v36 = vmul.f32 0.5, %v4390_v48  ;;  %v3747_v14 = vld [vmem:[#allocation3 + $0xb0] sm:$0xf0]  ;;  %v3753_v62 = vld [vmem:[#allocation3 + $0xa8] sm:$0xf] }
 0x30e   :  { %v4394_v7 = vpop.eup %4393  ;;  %v1616_v8 = vmul.f32 0.5, %v4392_v45  ;;  %4397 = vtanh.f32 %v1630_v55  ;;  %2204 = vmatpush.bf16.msra.mxu3 %v3774_v18  ;;  %v4242_v48 = vld [vmem:[#allocation3 + $0xb4] sm:$0xf0]  ;;  %v3750_v55 = vor.u32 %v4239_v19, %v3747_v14  ;;  %v3707_v0 = vld [vmem:[#allocation3 + $0x58] sm:$0xf0] }
 0x30f   :  { %4399 = vtanh.f32 %v4911_v59  ;;  %v1624_v35 = vmul.f32 0.5, %v4394_v7  ;;  %v1635_v54 = vadd.f32 0.5, %v1633_v36  ;;  %v3754_v45 = vor.u32 %v4242_v48, %v3753_v62  ;;  %v4240_v7 = vld [vmem:[#allocation3 + $0xac] sm:$0xf]  ;;  %v3729_v36 = vld [vmem:[#allocation3 + $0x80] sm:$0xf] }
 0x310   :  { %v1618_v60 = vadd.f32 0.5, %v1616_v8  ;;  %v3755_v8 = vld [vmem:[#allocation3 + $0xb8] sm:$0xf0]  ;;  %2177 = vmatpush.bf16.msra.mxu1 %v3750_v55  ;;  %v3710_v5 = vor.u32 %v4228_v63, %v3707_v0  ;;  %v3681_v52 = vld [vmem:[#allocation3 + $0x20] sm:$0xf] }
 0x311   :  { %v1626_v21 = vadd.f32 0.5, %v1624_v35  ;;  %v3758_v35 = vor.u32 %v4240_v7, %v3755_v8  ;;  %2191 = vmatpush.bf16.msra.mxu2 %v3754_v45  ;;  %v4225_v17 = vld [vmem:[#allocation3 + $0x2c] sm:$0xf0]  ;;  %v4223_v18 = vld [vmem:[#allocation3 + $0x24] sm:$0xf] }
 0x312   :  { %v4396_v58 = vpop.eup %4395  ;;  %v3682_v13 = vor.u32 %v4225_v17, %v3681_v52  ;;  %v3683_v6 = vld [vmem:[#allocation3 + $0x30] sm:$0xf0]  ;;  %v3689_v19 = vld [vmem:[#allocation3 + $0x28] sm:$0xf]  ;;  %v4224_v45 = vld [vmem:[#allocation3 + $0x2c] sm:$0xf] }
 0x313   :  { %v1638_v22 = vmul.f32 %v1626_v21, %v4899_v53  ;;  %v1640_v46 = vmul.f32 %v4396_v58, %v1618_v60  ;;  %v3777_v53 = vld [vmem:[#allocation3 + $0xe0] sm:$0xf]  ;;  %v4237_v60 = vld [vmem:[#allocation3 + $0x8c] sm:$0xf0]  ;;  %v4235_v21 = vld [vmem:[#allocation3 + $0x84] sm:$0xf]  ;;  %2205 = vmatpush.bf16.msra.mxu3 %v3758_v35  ;;  %v3686_v48 = vor.u32 %v4223_v18, %v3683_v6 }
 0x314   :  { %v4398_v56 = vpop.eup %4397  ;;  %v3778_v3 = vor.u32 %v4249_v44, %v3777_v53  ;;  %v3730_v58 = vor.u32 %v4237_v60, %v3729_v36  ;;  %v3715_v44 = vld [vmem:[#allocation3 + $0x70] sm:$0xf0]  ;;  %v3691_v7 = vld [vmem:[#allocation3 + $0x38] sm:$0xf0]  ;;  %v3665_v60 = vld [vmem:[#allocation3] sm:$0xf] }
 0x315   :  { %v4400_v57 = vpop.eup %4399  ;;  %v4915_v42 = vadd.f32 %v1640_v46, %v1638_v22  ;;  %v1634_v51 = vmul.f32 0.5, %v4398_v56  ;;  %v3731_v22 = vld [vmem:[#allocation3 + $0x90] sm:$0xf0]  ;;  %v3737_v46 = vld [vmem:[#allocation3 + $0x88] sm:$0xf]  ;;  %v3694_v36 = vor.u32 %v4224_v45, %v3691_v7 }
 0x316   :  { %v1645_v39 = vmul.f32 %v4400_v57, %v1635_v54  ;;  %2161 = vmatpush.bf16.msra.mxu0 %v3778_v3  ;;  %v4238_v56 = vld [vmem:[#allocation3 + $0x94] sm:$0xf0]  ;;  %v3734_v54 = vor.u32 %v4235_v21, %v3731_v22  ;;  %v4221_v21 = vld [vmem:[#allocation3 + $0xc] sm:$0xf0] }
 0x317   :  { %4401 = vtanh.f32 %v4915_v42  ;;  %v1636_v50 = vadd.f32 0.5, %v1634_v51  ;;  %v3738_v57 = vor.u32 %v4238_v56, %v3737_v46  ;;  %v3739_v51 = vld [vmem:[#allocation3 + $0x98] sm:$0xf0]  ;;  %v4234_v3 = vld [vmem:[#allocation3 + $0x74] sm:$0xf0]  ;;  %v3666_v56 = vor.u32 %v4221_v21, %v3665_v60 }
 0x318   :  { %1648 = vst [vmem:[#allocation6 + $0x30] sm:$0xff] %v1645_v39  ;;  %2178 = vmatpush.bf16.msra.mxu1 %v3734_v54  ;;  %v3722_v16 = vor.u32 %v4234_v3, %v3721_v40  ;;  %v3667_v54 = vld [vmem:[#allocation3 + $0x10] sm:$0xf0]  ;;  %v4281_v21 = vld [vmem:[#allocation3 + $0xec] sm:$0xf0] }
 0x319   :  { %2192 = vmatpush.bf16.msra.mxu2 %v3738_v57  ;;  %v3673_v57 = vld [vmem:[#allocation3 + $0x8] sm:$0xf] }
 0x31a   :  { %2162 = vmatpush.bf16.msra.mxu0 %v3762_v47  ;;  %v4230_v47 = vld [vmem:[#allocation3 + $0x54] sm:$0xf0] }
 0x31b   :  { %v3706_v34 = vor.u32 %v4230_v47, %v3705_v61 }
 0x31d   :  { %v4402_v43 = vpop.eup %4401  ;;  %2193 = vmatpush.bf16.msra.mxu2 %v3722_v16 }
 0x31e   :  { %v1646_v1 = vmul.f32 %v4402_v43, %v1636_v50  ;;  %2163 = vmatpush.bf16.msra.mxu0 %v3746_v20  ;;  %v3713_v43 = vld [vmem:[#allocation3 + $0x60] sm:$0xf]  ;;  %v4226_v20 = vld [vmem:[#allocation3 + $0x34] sm:$0xf0] }
 0x31f   :  { %v3690_v55 = vor.u32 %v4226_v20, %v3689_v19 }
 0x320   :  { %1649 = vst [vmem:[#allocation6 + $0x38] sm:$0xff] %v1646_v1  ;;  %v1661_v2 = vpack.c.bf16 %v1646_v1, %v1645_v39  ;;  %v4236_v39 = vld [vmem:[#allocation3 + $0x8c] sm:$0xf]  ;;  %v4233_v1 = vld [vmem:[#allocation3 + $0x6c] sm:$0xf0] }
 0x321   :  { %v3742_v50 = vor.u32 %v4236_v39, %v3739_v51  ;;  %v3714_v53 = vor.u32 %v4233_v1, %v3713_v43  ;;  %2194 = vmatpush.bf16.msra.mxu2 %v3706_v34  ;;  %v4222_v51 = vld [vmem:[#allocation3 + $0x14] sm:$0xf0]  ;;  %v3675_v43 = vld [vmem:[#allocation3 + $0x18] sm:$0xf0] }
 0x322   :  { %1862 = vmatmul.bf16.vlgmr.msrb.gmra.mxu0 %v1661_v2  ;;  %1876 = vmatmul.bf16.vlgmr.msrb.gmra.mxu1 %v1661_v2 }
 0x323   :  { %1890 = vmatmul.bf16.vlgmr.msrb.gmra.mxu2 %v1661_v2  ;;  %1904 = vmatmul.bf16.vlgmr.msrb.gmra.mxu3 %v1661_v2  ;;  %v4231_v2 = vld [vmem:[#allocation3 + $0x64] sm:$0xf] }
 0x324   :  { %2164 = vmatpush.bf16.msra.mxu0 %v3730_v58  ;;  %2206 = vmatpush.bf16.msra.mxu3 %v3742_v50  ;;  %v3718_v15 = vor.u32 %v4231_v2, %v3715_v44  ;;  %v4219_v58 = vld [vmem:[#allocation3 + $0x4] sm:$0xf]  ;;  %v4220_v50 = vld [vmem:[#allocation3 + $0xc] sm:$0xf] }
 0x325   :  { %2195 = vmatpush.bf16.msra.mxu2 %v3690_v55  ;;  %v3670_v39 = vor.u32 %v4219_v58, %v3667_v54  ;;  %v4279_v58 = vld [vmem:[#allocation3 + $0xe4] sm:$0xf]  ;;  %v4282_v54 = vld [vmem:[#allocation3 + $0xf4] sm:$0xf0] }
 0x326   :  { %2179 = vmatpush.bf16.msra.mxu1 %v3718_v15 }
 0x328   :  { %2165 = vmatpush.bf16.msra.mxu0 %v3714_v53  ;;  %2207 = vmatpush.bf16.msra.mxu3 %v3726_v4 }
 0x32a   :  { %2180 = vmatpush.bf16.msra.mxu1 %v3702_v37 }
 0x32c   :  { %2166 = vmatpush.bf16.msra.mxu0 %v3698_v41  ;;  %2208 = vmatpush.bf16.msra.mxu3 %v3710_v5 }
 0x32e   :  { %2181 = vmatpush.bf16.msra.mxu1 %v3686_v48 }
 0x330   :  { %2167 = vmatpush.bf16.msra.mxu0 %v3682_v13  ;;  %2209 = vmatpush.bf16.msra.mxu3 %v3694_v36 }
 0x332   :  { %2182 = vmatpush.bf16.msra.mxu1 %v3670_v39 }
 0x334   :  { %2168 = vmatpush.bf16.msra.mxu0 %v3666_v56  ;;  %v3913_v56 = vld [vmem:[#allocation3 + $0xe8] sm:$0xf] }
 0x335   :  { %v3914_v39 = vor.u32 %v4282_v54, %v3913_v56  ;;  %v3827_v56 = vld [vmem:[#allocation3 + $0x50] sm:$0xf0]  ;;  %v3833_v54 = vld [vmem:[#allocation3 + $0x48] sm:$0xf] }
 0x39f   :  { %v1863_v14 = vpop.f32.mrf.mxu0  ;;  %v1877_v62 = vpop.f32.mrf.mxu1 }
 0x3a0   :  { %v1910_v8 = vadd.f32 %v1863_v14, %v4786_v23  ;;  %v1911_v35 = vadd.f32 %v1877_v62, %v4788_v24  ;;  %v3674_v23 = vor.u32 %v4222_v51, %v3673_v57  ;;  %v3678_v24 = vor.u32 %v4220_v50, %v3675_v43  ;;  %v4280_v51 = vld [vmem:[#allocation3 + $0xec] sm:$0xf]  ;;  %v3915_v50 = vld [vmem:[#allocation3 + $0xf8] sm:$0xf0] }
 0x3a1   :  { %v3918_v43 = vor.u32 %v4280_v51, %v3915_v50  ;;  %v4260_v50 = vld [vmem:[#allocation3 + $0x4c] sm:$0xf] }
 0x3a2   :  { %v1918_v22 = vmul.f32 0.5, %v1910_v8  ;;  %v1926_v46 = vmul.f32 0.5, %v1911_v35  ;;  %2196 = vmatpush.bf16.msra.mxu2 %v3674_v23  ;;  %2210 = vmatpush.bf16.msra.mxu3 %v3678_v24  ;;  %v3889_v23 = vld [vmem:[#allocation3 + $0xc0] sm:$0xf]  ;;  %v4277_v24 = vld [vmem:[#allocation3 + $0xcc] sm:$0xf0] }
 0x3a4   :  { %4403 = vtanh.f32 %v1918_v22 }
 0x3a5   :  { %4405 = vtanh.f32 %v1926_v46  ;;  %v3907_v46 = vld [vmem:[#allocation3 + $0xf0] sm:$0xf0] }
 0x3a6   :  { %v1891_v1 = vpop.f32.mrf.mxu2  ;;  %v1905_v2 = vpop.f32.mrf.mxu3  ;;  %v3910_v57 = vor.u32 %v4279_v58, %v3907_v46  ;;  %2496 = vmatpush.bf16.msrb.mxu2 %v3914_v39  ;;  %2510 = vmatpush.bf16.msrb.mxu3 %v3918_v43  ;;  %v4261_v58 = vld [vmem:[#allocation3 + $0x4c] sm:$0xf0]  ;;  %v3835_v43 = vld [vmem:[#allocation3 + $0x58] sm:$0xf0] }
 0x3a7   :  { %v1912_v53 = vadd.f32 %v1891_v1, %v4790_v25  ;;  %v1913_v44 = vadd.f32 %v1905_v2, %v4792_v26  ;;  %v1865_v40 = vpop.f32.mrf.mxu0  ;;  %v1879_v3 = vpop.f32.mrf.mxu1  ;;  %v4275_v1 = vld [vmem:[#allocation3 + $0xc4] sm:$0xf]  ;;  %v3890_v2 = vor.u32 %v4277_v24, %v3889_v23  ;;  %v3838_v23 = vor.u32 %v4260_v50, %v3835_v43  ;;  %v3809_v24 = vld [vmem:[#allocation3 + $0x20] sm:$0xf] }
 0x3a8   :  { %v1914_v15 = vadd.f32 %v1865_v40, %v4794_v27  ;;  %v1915_v16 = vadd.f32 %v1879_v3, %v4796_v28  ;;  %2482 = vmatpush.bf16.msrb.mxu1 %v3910_v57  ;;  %v4278_v40 = vld [vmem:[#allocation3 + $0xd4] sm:$0xf0] }
 0x3a9   :  { %4407 = vtanh.f32 %v1912_v53  ;;  %v1936_v9 = vmul.f32 0.5, %v1913_v44  ;;  %v3891_v53 = vld [vmem:[#allocation3 + $0xd0] sm:$0xf0]  ;;  %v3897_v44 = vld [vmem:[#allocation3 + $0xc8] sm:$0xf] }
 0x3aa   :  { %v4404_v10 = vpop.eup %4403  ;;  %v1919_v4 = vmul.f32 0.5, %v1914_v15  ;;  %v1927_v49 = vmul.f32 0.5, %v1915_v16  ;;  %v3894_v3 = vor.u32 %v4275_v1, %v3891_v53  ;;  %v3898_v15 = vor.u32 %v4278_v40, %v3897_v44  ;;  %v4276_v16 = vld [vmem:[#allocation3 + $0xcc] sm:$0xf]  ;;  %v4262_v57 = vld [vmem:[#allocation3 + $0x54] sm:$0xf0] }
 0x3ab   :  { %v4406_v11 = vpop.eup %4405  ;;  %v1922_v12 = vmul.f32 0.5, %v4404_v10  ;;  %4409 = vtanh.f32 %v1936_v9  ;;  %v3899_v9 = vld [vmem:[#allocation3 + $0xd8] sm:$0xf0]  ;;  %v3834_v51 = vor.u32 %v4262_v57, %v3833_v54  ;;  %v4257_v1 = vld [vmem:[#allocation3 + $0x2c] sm:$0xf0]  ;;  %v5018_v54 = vld [vmem:[#allocation17_spill] sm:$0xff] }
 0x3ac   :  { %v1930_v41 = vmul.f32 0.5, %v4406_v11  ;;  %4411 = vtanh.f32 %v1919_v4  ;;  %v3902_v10 = vor.u32 %v4276_v16, %v3899_v9  ;;  %2483 = vmatpush.bf16.msrb.mxu1 %v3894_v3  ;;  %2497 = vmatpush.bf16.msrb.mxu2 %v3898_v15  ;;  %v3873_v4 = vld [vmem:[#allocation3 + $0xa0] sm:$0xf]  ;;  %v4271_v11 = vld [vmem:[#allocation3 + $0xa4] sm:$0xf]  ;;  %v3810_v53 = vor.u32 %v4257_v1, %v3809_v24 }
 0x3ad   :  { %v1924_v38 = vadd.f32 0.5, %v1922_v12  ;;  %4413 = vtanh.f32 %v1927_v49  ;;  %v4273_v49 = vld [vmem:[#allocation3 + $0xac] sm:$0xf0]  ;;  %v3811_v44 = vld [vmem:[#allocation3 + $0x30] sm:$0xf0] }
 0x3ae   :  { %v1932_v25 = vadd.f32 0.5, %v1930_v41  ;;  %v1893_v26 = vpop.f32.mrf.mxu2  ;;  %v1907_v61 = vpop.f32.mrf.mxu3  ;;  %2511 = vmatpush.bf16.msrb.mxu3 %v3902_v10  ;;  %v3874_v12 = vor.u32 %v4273_v49, %v3873_v4  ;;  %v3875_v41 = vld [vmem:[#allocation3 + $0xb0] sm:$0xf0]  ;;  %v3817_v40 = vld [vmem:[#allocation3 + $0x28] sm:$0xf] }
 0x3af   :  { %v4408_v47 = vpop.eup %4407  ;;  %v1916_v27 = vadd.f32 %v1893_v26, %v4798_v29  ;;  %v1917_v28 = vadd.f32 %v1907_v61, %v4800_v30  ;;  %v3878_v26 = vor.u32 %v4271_v11, %v3875_v41  ;;  %v4258_v3 = vld [vmem:[#allocation3 + $0x34] sm:$0xf0]  ;;  %v4256_v4 = vld [vmem:[#allocation3 + $0x2c] sm:$0xf]  ;;  %v3819_v49 = vld [vmem:[#allocation3 + $0x38] sm:$0xf0] }
 0x3b0   :  { %v1944_v37 = vmul.f32 %v1932_v25, %v4911_v59  ;;  %v1946_v34 = vmul.f32 %v4408_v47, %v1924_v38  ;;  %v3881_v38 = vld [vmem:[#allocation3 + $0xa8] sm:$0xf]  ;;  %v4274_v25 = vld [vmem:[#allocation3 + $0xb4] sm:$0xf0]  ;;  %v4272_v47 = vld [vmem:[#allocation3 + $0xac] sm:$0xf]  ;;  %v3818_v10 = vor.u32 %v4258_v3, %v3817_v40  ;;  %v3822_v41 = vor.u32 %v4256_v4, %v3819_v49 }
 0x3b1   :  { %v4410_v63 = vpop.eup %4409  ;;  %4415 = vtanh.f32 %v1916_v27  ;;  %v1937_v0 = vmul.f32 0.5, %v1917_v28  ;;  %v3882_v61 = vor.u32 %v4274_v25, %v3881_v38  ;;  %v3883_v27 = vld [vmem:[#allocation3 + $0xb8] sm:$0xf0]  ;;  %2484 = vmatpush.bf16.msrb.mxu1 %v3878_v26  ;;  %v3793_v38 = vld [vmem:[#allocation3] sm:$0xf] }
 0x3b2   :  { %v4412_v5 = vpop.eup %4411  ;;  %v4927_v52 = vadd.f32 %v1946_v34, %v1944_v37  ;;  %v1940_v6 = vmul.f32 0.5, %v4410_v63  ;;  %v3886_v28 = vor.u32 %v4272_v47, %v3883_v27  ;;  %v3857_v37 = vld [vmem:[#allocation3 + $0x80] sm:$0xf]  ;;  %v4269_v34 = vld [vmem:[#allocation3 + $0x8c] sm:$0xf0] }
 0x3b3   :  { %v4414_v17 = vpop.eup %4413  ;;  %v1923_v18 = vmul.f32 0.5, %v4412_v5  ;;  %4417 = vtanh.f32 %v1937_v0  ;;  %2498 = vmatpush.bf16.msrb.mxu2 %v3882_v61  ;;  %v4267_v63 = vld [vmem:[#allocation3 + $0x84] sm:$0xf]  ;;  %v3858_v0 = vor.u32 %v4269_v34, %v3857_v37  ;;  %v3859_v5 = vld [vmem:[#allocation3 + $0x90] sm:$0xf0] }
 0x3b4   :  { %4419 = vtanh.f32 %v4927_v52  ;;  %v1931_v13 = vmul.f32 0.5, %v4414_v17  ;;  %v1942_v62 = vadd.f32 0.5, %v1940_v6  ;;  %2512 = vmatpush.bf16.msrb.mxu3 %v3886_v28  ;;  %v3865_v17 = vld [vmem:[#allocation3 + $0x88] sm:$0xf]  ;;  %v4253_v25 = vld [vmem:[#allocation3 + $0xc] sm:$0xf0] }
 0x3b5   :  { %v1925_v19 = vadd.f32 0.5, %v1923_v18  ;;  %v4270_v18 = vld [vmem:[#allocation3 + $0x94] sm:$0xf0]  ;;  %v4251_v26 = vld [vmem:[#allocation3 + $0x4] sm:$0xf]  ;;  %v3794_v27 = vor.u32 %v4253_v25, %v3793_v38 }
 0x3b6   :  { %v1933_v29 = vadd.f32 0.5, %v1931_v13  ;;  %v3862_v13 = vor.u32 %v4267_v63, %v3859_v5  ;;  %v3866_v6 = vor.u32 %v4270_v18, %v3865_v17  ;;  %v3795_v28 = vld [vmem:[#allocation3 + $0x10] sm:$0xf0]  ;;  %v3801_v37 = vld [vmem:[#allocation3 + $0x8] sm:$0xf] }
 0x3b7   :  { %v4416_v20 = vpop.eup %4415  ;;  %v3798_v34 = vor.u32 %v4251_v26, %v3795_v28  ;;  %v4254_v63 = vld [vmem:[#allocation3 + $0x14] sm:$0xf0]  ;;  %v3803_v5 = vld [vmem:[#allocation3 + $0x18] sm:$0xf0]  ;;  %v4035_v28 = vld [vmem:[#allocation3 + $0xf0] sm:$0xf0] }
 0x3b8   :  { %v1945_v30 = vmul.f32 %v1933_v29, %v4915_v42  ;;  %v1947_v59 = vmul.f32 %v4416_v20, %v1925_v19  ;;  %v3905_v42 = vld [vmem:[#allocation3 + $0xe0] sm:$0xf]  ;;  %v4268_v19 = vld [vmem:[#allocation3 + $0x8c] sm:$0xf]  ;;  %v3867_v29 = vld [vmem:[#allocation3 + $0x98] sm:$0xf0]  ;;  %2485 = vmatpush.bf16.msrb.mxu1 %v3862_v13  ;;  %2499 = vmatpush.bf16.msrb.mxu2 %v3866_v6 }
 0x3b9   :  { %v4418_v14 = vpop.eup %4417  ;;  %v3906_v22 = vor.u32 %v4281_v21, %v3905_v42  ;;  %v3870_v20 = vor.u32 %v4268_v19, %v3867_v29  ;;  %v3825_v21 = vld [vmem:[#allocation3 + $0x40] sm:$0xf] }
 0x3ba   :  { %v4420_v48 = vpop.eup %4419  ;;  %v4931_v55 = vadd.f32 %v1947_v59, %v1945_v30  ;;  %v1941_v7 = vmul.f32 0.5, %v4418_v14  ;;  %v3841_v30 = vld [vmem:[#allocation3 + $0x60] sm:$0xf]  ;;  %v4265_v59 = vld [vmem:[#allocation3 + $0x6c] sm:$0xf0]  ;;  %v3826_v46 = vor.u32 %v4261_v58, %v3825_v21 }
 0x3bb   :  { %v1952_v45 = vmul.f32 %v4420_v48, %v1942_v62  ;;  %2468 = vmatpush.bf16.msrb.mxu0 %v3906_v22  ;;  %v4263_v14 = vld [vmem:[#allocation3 + $0x64] sm:$0xf]  ;;  %2513 = vmatpush.bf16.msrb.mxu3 %v3870_v20  ;;  %v3842_v62 = vor.u32 %v4265_v59, %v3841_v30  ;;  %v3843_v48 = vld [vmem:[#allocation3 + $0x70] sm:$0xf0]  ;;  %v5015_v30 = vld [vmem:[#allocation14_spill] sm:$0xff] }
 0x3bc   :  { %4421 = vtanh.f32 %v4931_v55  ;;  %v1943_v8 = vadd.f32 0.5, %v1941_v7  ;;  %v4266_v7 = vld [vmem:[#allocation3 + $0x74] sm:$0xf0]  ;;  %v4259_v22 = vld [vmem:[#allocation3 + $0x44] sm:$0xf] }
 0x3bd   :  { %1955 = vst [vmem:[#allocation6 + $0x40] sm:$0xff] %v1952_v45  ;;  %v3830_v39 = vor.u32 %v4259_v22, %v3827_v56  ;;  %v5014_v6 = vld [vmem:[#allocation13_spill] sm:$0xff] }
 0x3bf   :  { %2469 = vmatpush.bf16.msrb.mxu0 %v3890_v2  ;;  %v4255_v2 = vld [vmem:[#allocation3 + $0x24] sm:$0xf] }
 0x3c0   :  { %v3814_v9 = vor.u32 %v4255_v2, %v3811_v44 }
 0x3c2   :  { %v4422_v35 = vpop.eup %4421 }
 0x3c3   :  { %v1953_v36 = vmul.f32 %v4422_v35, %v1943_v8  ;;  %2470 = vmatpush.bf16.msrb.mxu0 %v3874_v12  ;;  %v3846_v8 = vor.u32 %v4263_v14, %v3843_v48  ;;  %v5016_v14 = vld [vmem:[#allocation15_spill] sm:$0xff] }
 0x3c5   :  { %1956 = vst [vmem:[#allocation6 + $0x48] sm:$0xff] %v1953_v36  ;;  %v1968_v60 = vpack.c.bf16 %v1953_v36, %v1952_v45  ;;  %v3849_v45 = vld [vmem:[#allocation3 + $0x68] sm:$0xf]  ;;  %v4264_v36 = vld [vmem:[#allocation3 + $0x6c] sm:$0xf]  ;;  %2486 = vmatpush.bf16.msrb.mxu1 %v3846_v8 }
 0x3c6   :  { %v3850_v35 = vor.u32 %v4266_v7, %v3849_v45 }
 0x3c7   :  { %2169 = vmatmul.bf16.vlgmr.msra.gmra.mxu0 %v1968_v60  ;;  %2183 = vmatmul.bf16.vlgmr.msra.gmra.mxu1 %v1968_v60 }
 0x3c8   :  { %2197 = vmatmul.bf16.vlgmr.msra.gmra.mxu2 %v1968_v60  ;;  %2211 = vmatmul.bf16.vlgmr.msra.gmra.mxu3 %v1968_v60  ;;  %v3851_v60 = vld [vmem:[#allocation3 + $0x78] sm:$0xf0] }
 0x3c9   :  { %2471 = vmatpush.bf16.msrb.mxu0 %v3858_v0  ;;  %v3854_v42 = vor.u32 %v4264_v36, %v3851_v60  ;;  %2500 = vmatpush.bf16.msrb.mxu2 %v3850_v35  ;;  %v4252_v0 = vld [vmem:[#allocation3 + $0xc] sm:$0xf] }
 0x3ca   :  { %2487 = vmatpush.bf16.msrb.mxu1 %v3830_v39 }
 0x3cb   :  { %2514 = vmatpush.bf16.msrb.mxu3 %v3854_v42 }
 0x3cd   :  { %2472 = vmatpush.bf16.msrb.mxu0 %v3842_v62  ;;  %2501 = vmatpush.bf16.msrb.mxu2 %v3834_v51 }
 0x3ce   :  { %2488 = vmatpush.bf16.msrb.mxu1 %v3814_v9 }
 0x3cf   :  { %2515 = vmatpush.bf16.msrb.mxu3 %v3838_v23 }
 0x3d1   :  { %2473 = vmatpush.bf16.msrb.mxu0 %v3826_v46  ;;  %2502 = vmatpush.bf16.msrb.mxu2 %v3818_v10  ;;  %v5017_v46 = vld [vmem:[#allocation16_spill] sm:$0xff] }
 0x3d2   :  { %2489 = vmatpush.bf16.msrb.mxu1 %v3798_v34  ;;  %v4314_v34 = vld [vmem:[#allocation3 + $0xf4] sm:$0xf0] }
 0x3d3   :  { %2516 = vmatpush.bf16.msrb.mxu3 %v3822_v41 }
 0x3d5   :  { %2474 = vmatpush.bf16.msrb.mxu0 %v3810_v53 }
 0x3d9   :  { %2475 = vmatpush.bf16.msrb.mxu0 %v3794_v27 }
 0x444   :  { %v2170_v15 = vpop.f32.mrf.mxu0  ;;  %v2184_v16 = vpop.f32.mrf.mxu1 }
 0x445   :  { %v2217_v11 = vadd.f32 %v2170_v15, %v4802_v31  ;;  %v2218_v12 = vadd.f32 %v2184_v16, %v4804_v32  ;;  %v3802_v31 = vor.u32 %v4254_v63, %v3801_v37  ;;  %v3806_v32 = vor.u32 %v4252_v0, %v3803_v5  ;;  %v4041_v37 = vld [vmem:[#allocation3 + $0xe8] sm:$0xf]  ;;  %v4312_v5 = vld [vmem:[#allocation3 + $0xec] sm:$0xf] }
 0x446   :  { %v4042_v0 = vor.u32 %v4314_v34, %v4041_v37 }
 0x447   :  { %v2225_v61 = vmul.f32 0.5, %v2217_v11  ;;  %v2233_v47 = vmul.f32 0.5, %v2218_v12  ;;  %2503 = vmatpush.bf16.msrb.mxu2 %v3802_v31  ;;  %2517 = vmatpush.bf16.msrb.mxu3 %v3806_v32  ;;  %v4043_v31 = vld [vmem:[#allocation3 + $0xf8] sm:$0xf0] }
 0x448   :  { %v4046_v32 = vor.u32 %v4312_v5, %v4043_v31  ;;  %v3937_v31 = vld [vmem:[#allocation3 + $0x20] sm:$0xf] }
 0x449   :  { %4423 = vtanh.f32 %v2225_v61  ;;  %v4313_v61 = vld [vmem:[#allocation3 + $0xec] sm:$0xf0] }
 0x44a   :  { %4425 = vtanh.f32 %v2233_v47  ;;  %v4311_v47 = vld [vmem:[#allocation3 + $0xe4] sm:$0xf] }
 0x44b   :  { %v2198_v17 = vpop.f32.mrf.mxu2  ;;  %v2212_v18 = vpop.f32.mrf.mxu3  ;;  %v4038_v63 = vor.u32 %v4311_v47, %v4035_v28  ;;  %2803 = vmatpush.bf16.msra.mxu2 %v4042_v0  ;;  %2817 = vmatpush.bf16.msra.mxu3 %v4046_v32  ;;  %v3955_v47 = vld [vmem:[#allocation3 + $0x50] sm:$0xf0]  ;;  %v4294_v28 = vld [vmem:[#allocation3 + $0x54] sm:$0xf0]  ;;  %v3963_v0 = vld [vmem:[#allocation3 + $0x58] sm:$0xf0] }
 0x44c   :  { %v2219_v13 = vadd.f32 %v2198_v17, %v4806_v33  ;;  %v2220_v19 = vadd.f32 %v2212_v18, %v5014_v6  ;;  %v2172_v29 = vpop.f32.mrf.mxu0  ;;  %v2186_v20 = vpop.f32.mrf.mxu1  ;;  %v4017_v17 = vld [vmem:[#allocation3 + $0xc0] sm:$0xf]  ;;  %v4309_v18 = vld [vmem:[#allocation3 + $0xcc] sm:$0xf0] }
 0x44d   :  { %v2221_v59 = vadd.f32 %v2172_v29, %v5015_v30  ;;  %v2222_v62 = vadd.f32 %v2186_v20, %v5016_v14  ;;  %2789 = vmatpush.bf16.msra.mxu1 %v4038_v63  ;;  %v4018_v6 = vor.u32 %v4309_v18, %v4017_v17  ;;  %v4025_v29 = vld [vmem:[#allocation3 + $0xc8] sm:$0xf]  ;;  %v4310_v20 = vld [vmem:[#allocation3 + $0xd4] sm:$0xf0]  ;;  %v4308_v14 = vld [vmem:[#allocation3 + $0xcc] sm:$0xf] }
 0x44e   :  { %4427 = vtanh.f32 %v2219_v13  ;;  %v2243_v48 = vmul.f32 0.5, %v2220_v19  ;;  %v4307_v13 = vld [vmem:[#allocation3 + $0xc4] sm:$0xf]  ;;  %v4019_v19 = vld [vmem:[#allocation3 + $0xd0] sm:$0xf0] }
 0x44f   :  { %v4424_v45 = vpop.eup %4423  ;;  %v2226_v7 = vmul.f32 0.5, %v2221_v59  ;;  %v2234_v8 = vmul.f32 0.5, %v2222_v62  ;;  %v4022_v30 = vor.u32 %v4307_v13, %v4019_v19  ;;  %v4026_v59 = vor.u32 %v4310_v20, %v4025_v29  ;;  %v4027_v62 = vld [vmem:[#allocation3 + $0xd8] sm:$0xf0]  ;;  %v4292_v63 = vld [vmem:[#allocation3 + $0x4c] sm:$0xf] }
 0x450   :  { %v4426_v35 = vpop.eup %4425  ;;  %v2229_v36 = vmul.f32 0.5, %v4424_v45  ;;  %4429 = vtanh.f32 %v2243_v48  ;;  %v4030_v48 = vor.u32 %v4308_v14, %v4027_v62  ;;  %v4001_v45 = vld [vmem:[#allocation3 + $0xa0] sm:$0xf]  ;;  %v3966_v5 = vor.u32 %v4292_v63, %v3963_v0  ;;  %v4289_v32 = vld [vmem:[#allocation3 + $0x2c] sm:$0xf0] }
 0x451   :  { %v2237_v60 = vmul.f32 0.5, %v4426_v35  ;;  %4431 = vtanh.f32 %v2226_v7  ;;  %2790 = vmatpush.bf16.msra.mxu1 %v4022_v30  ;;  %2804 = vmatpush.bf16.msra.mxu2 %v4026_v59  ;;  %v4305_v7 = vld [vmem:[#allocation3 + $0xac] sm:$0xf0]  ;;  %v4287_v17 = vld [vmem:[#allocation3 + $0x24] sm:$0xf]  ;;  %v3938_v18 = vor.u32 %v4289_v32, %v3937_v31 }
 0x452   :  { %v2231_v42 = vadd.f32 0.5, %v2229_v36  ;;  %4433 = vtanh.f32 %v2234_v8  ;;  %v4303_v8 = vld [vmem:[#allocation3 + $0xa4] sm:$0xf]  ;;  %2818 = vmatpush.bf16.msra.mxu3 %v4030_v48  ;;  %v4002_v35 = vor.u32 %v4305_v7, %v4001_v45  ;;  %v4003_v36 = vld [vmem:[#allocation3 + $0xb0] sm:$0xf0]  ;;  %v5019_v48 = vld [vmem:[#allocation18_spill] sm:$0xff] }
 0x453   :  { %v2239_v33 = vadd.f32 0.5, %v2237_v60  ;;  %v2200_v21 = vpop.f32.mrf.mxu2  ;;  %v2214_v58 = vpop.f32.mrf.mxu3  ;;  %v4009_v60 = vld [vmem:[#allocation3 + $0xa8] sm:$0xf]  ;;  %v3939_v13 = vld [vmem:[#allocation3 + $0x30] sm:$0xf0] }
 0x454   :  { %v4428_v22 = vpop.eup %4427  ;;  %v2223_v56 = vadd.f32 %v2200_v21, %v5017_v46  ;;  %v2224_v57 = vadd.f32 %v2214_v58, %v5018_v54  ;;  %v4304_v58 = vld [vmem:[#allocation3 + $0xac] sm:$0xf]  ;;  %v4301_v54 = vld [vmem:[#allocation3 + $0x8c] sm:$0xf0]  ;;  %v4290_v19 = vld [vmem:[#allocation3 + $0x34] sm:$0xf0]  ;;  %v3942_v30 = vor.u32 %v4287_v17, %v3939_v13 }
 0x455   :  { %v2251_v39 = vmul.f32 %v2239_v33, %v4927_v52  ;;  %v2253_v51 = vmul.f32 %v4428_v22, %v2231_v42  ;;  %v4306_v42 = vld [vmem:[#allocation3 + $0xb4] sm:$0xf0]  ;;  %v4006_v33 = vor.u32 %v4303_v8, %v4003_v36  ;;  %v4011_v22 = vld [vmem:[#allocation3 + $0xb8] sm:$0xf0]  ;;  %v4288_v14 = vld [vmem:[#allocation3 + $0x2c] sm:$0xf] }
 0x456   :  { %v4430_v50 = vpop.eup %4429  ;;  %4435 = vtanh.f32 %v2223_v56  ;;  %v2244_v43 = vmul.f32 0.5, %v2224_v57  ;;  %v4010_v21 = vor.u32 %v4306_v42, %v4009_v60  ;;  %v4014_v46 = vor.u32 %v4304_v58, %v4011_v22  ;;  %v3985_v56 = vld [vmem:[#allocation3 + $0x80] sm:$0xf]  ;;  %v4299_v57 = vld [vmem:[#allocation3 + $0x84] sm:$0xf]  ;;  %v5020_v7 = vld [vmem:[#allocation19_spill] sm:$0xff] }
 0x457   :  { %v4432_v23 = vpop.eup %4431  ;;  %v4943_v24 = vadd.f32 %v2253_v51, %v2251_v39  ;;  %v2247_v44 = vmul.f32 0.5, %v4430_v50  ;;  %2791 = vmatpush.bf16.msra.mxu1 %v4006_v33  ;;  %v3986_v39 = vor.u32 %v4301_v54, %v3985_v56  ;;  %v3987_v51 = vld [vmem:[#allocation3 + $0x90] sm:$0xf0]  ;;  %v3993_v50 = vld [vmem:[#allocation3 + $0x88] sm:$0xf] }
 0x458   :  { %v4434_v1 = vpop.eup %4433  ;;  %v2230_v2 = vmul.f32 0.5, %v4432_v23  ;;  %4437 = vtanh.f32 %v2244_v43  ;;  %2805 = vmatpush.bf16.msra.mxu2 %v4010_v21  ;;  %2819 = vmatpush.bf16.msra.mxu3 %v4014_v46  ;;  %v4302_v43 = vld [vmem:[#allocation3 + $0x94] sm:$0xf0]  ;;  %v3990_v23 = vor.u32 %v4299_v57, %v3987_v51  ;;  %v3947_v62 = vld [vmem:[#allocation3 + $0x38] sm:$0xf0] }
 0x459   :  { %4439 = vtanh.f32 %v4943_v24  ;;  %v2238_v53 = vmul.f32 0.5, %v4434_v1  ;;  %v2249_v10 = vadd.f32 0.5, %v2247_v44  ;;  %v3994_v1 = vor.u32 %v4302_v43, %v3993_v50  ;;  %v3921_v36 = vld [vmem:[#allocation3] sm:$0xf]  ;;  %v4285_v60 = vld [vmem:[#allocation3 + $0xc] sm:$0xf0] }
 0x45a   :  { %v2232_v40 = vadd.f32 0.5, %v2230_v2  ;;  %v4300_v2 = vld [vmem:[#allocation3 + $0x8c] sm:$0xf]  ;;  %v4283_v42 = vld [vmem:[#allocation3 + $0x4] sm:$0xf]  ;;  %v3922_v58 = vor.u32 %v4285_v60, %v3921_v36 }
 0x45b   :  { %v2240_v3 = vadd.f32 0.5, %v2238_v53  ;;  %v3995_v53 = vld [vmem:[#allocation3 + $0x98] sm:$0xf0]  ;;  %2792 = vmatpush.bf16.msra.mxu1 %v3990_v23  ;;  %v3923_v22 = vld [vmem:[#allocation3 + $0x10] sm:$0xf0] }
 0x45c   :  { %v4436_v15 = vpop.eup %4435  ;;  %v3998_v44 = vor.u32 %v4300_v2, %v3995_v53  ;;  %2806 = vmatpush.bf16.msra.mxu2 %v3994_v1  ;;  %v3929_v46 = vld [vmem:[#allocation3 + $0x8] sm:$0xf]  ;;  %v3926_v56 = vor.u32 %v4283_v42, %v3923_v22  ;;  %v4286_v54 = vld [vmem:[#allocation3 + $0x14] sm:$0xf0]  ;;  %v4284_v57 = vld [vmem:[#allocation3 + $0xc] sm:$0xf] }
 0x45d   :  { %v2252_v16 = vmul.f32 %v2240_v3, %v4931_v55  ;;  %v2254_v52 = vmul.f32 %v4436_v15, %v2232_v40  ;;  %v4033_v55 = vld [vmem:[#allocation3 + $0xe0] sm:$0xf]  ;;  %v4297_v3 = vld [vmem:[#allocation3 + $0x6c] sm:$0xf0]  ;;  %v4295_v15 = vld [vmem:[#allocation3 + $0x64] sm:$0xf]  ;;  %v3930_v51 = vor.u32 %v4286_v54, %v3929_v46 }
 0x45e   :  { %v4438_v9 = vpop.eup %4437  ;;  %v4034_v27 = vor.u32 %v4313_v61, %v4033_v55  ;;  %v3969_v40 = vld [vmem:[#allocation3 + $0x60] sm:$0xf]  ;;  %2820 = vmatpush.bf16.msra.mxu3 %v3998_v44  ;;  %v4291_v55 = vld [vmem:[#allocation3 + $0x44] sm:$0xf]  ;;  %v5021_v1 = vld [vmem:[#allocation20_spill] sm:$0xff] }
 0x45f   :  { %v4440_v4 = vpop.eup %4439  ;;  %v4947_v49 = vadd.f32 %v2254_v52, %v2252_v16  ;;  %v2248_v12 = vmul.f32 0.5, %v4438_v9  ;;  %v3970_v16 = vor.u32 %v4297_v3, %v3969_v40  ;;  %v3971_v52 = vld [vmem:[#allocation3 + $0x70] sm:$0xf0]  ;;  %v3977_v9 = vld [vmem:[#allocation3 + $0x68] sm:$0xf]  ;;  %v3958_v37 = vor.u32 %v4291_v55, %v3955_v47  ;;  %v5022_v53 = vld [vmem:[#allocation21_spill] sm:$0xff] }
 0x460   :  { %v2259_v11 = vmul.f32 %v4440_v4, %v2249_v10  ;;  %2775 = vmatpush.bf16.msra.mxu0 %v4034_v27  ;;  %v4298_v10 = vld [vmem:[#allocation3 + $0x74] sm:$0xf0]  ;;  %v3974_v4 = vor.u32 %v4295_v15, %v3971_v52  ;;  %v3961_v27 = vld [vmem:[#allocation3 + $0x48] sm:$0xf]  ;;  %v5024_v52 = vld [vmem:[#allocation23_spill] sm:$0xff] }
 0x461   :  { %4441 = vtanh.f32 %v4947_v49  ;;  %v2250_v41 = vadd.f32 0.5, %v2248_v12  ;;  %v4296_v12 = vld [vmem:[#allocation3 + $0x6c] sm:$0xf]  ;;  %v3962_v34 = vor.u32 %v4294_v28, %v3961_v27  ;;  %v5025_v28 = vld [vmem:[#allocation24_spill] sm:$0xff]  ;;  %v5028_v46 = vld [vmem:[#allocation27_spill] sm:$0xff] }
 0x462   :  { %2262 = vst [vmem:[#allocation6 + $0x50] sm:$0xff] %v2259_v11  ;;  %2793 = vmatpush.bf16.msra.mxu1 %v3974_v4  ;;  %v5023_v15 = vld [vmem:[#allocation22_spill] sm:$0xff] }
 0x464   :  { %2776 = vmatpush.bf16.msra.mxu0 %v4018_v6  ;;  %v3945_v6 = vld [vmem:[#allocation3 + $0x28] sm:$0xf] }
 0x465   :  { %v3946_v59 = vor.u32 %v4290_v19, %v3945_v6 }
 0x466   :  { %2794 = vmatpush.bf16.msra.mxu1 %v3958_v37 }
 0x467   :  { %v4442_v38 = vpop.eup %4441 }
 0x468   :  { %v2260_v25 = vmul.f32 %v4442_v38, %v2250_v41  ;;  %2777 = vmatpush.bf16.msra.mxu0 %v4002_v35  ;;  %v3979_v41 = vld [vmem:[#allocation3 + $0x78] sm:$0xf0]  ;;  %v3950_v35 = vor.u32 %v4288_v14, %v3947_v62 }
 0x469   :  { %v3982_v38 = vor.u32 %v4296_v12, %v3979_v41 }
 0x46a   :  { %2263 = vst [vmem:[#allocation6 + $0x58] sm:$0xff] %v2260_v25  ;;  %v2275_v26 = vpack.c.bf16 %v2260_v25, %v2259_v11  ;;  %v3978_v11 = vor.u32 %v4298_v10, %v3977_v9  ;;  %v3953_v25 = vld [vmem:[#allocation3 + $0x40] sm:$0xf]  ;;  %2795 = vmatpush.bf16.msra.mxu1 %v3942_v30 }
 0x46b   :  { %2821 = vmatpush.bf16.msra.mxu3 %v3982_v38 }
 0x46c   :  { %2476 = vmatmul.bf16.vlgmr.msrb.gmra.mxu0 %v2275_v26  ;;  %2490 = vmatmul.bf16.vlgmr.msrb.gmra.mxu1 %v2275_v26 }
 0x46d   :  { %2504 = vmatmul.bf16.vlgmr.msrb.gmra.mxu2 %v2275_v26  ;;  %2518 = vmatmul.bf16.vlgmr.msrb.gmra.mxu3 %v2275_v26  ;;  %v4293_v26 = vld [vmem:[#allocation3 + $0x4c] sm:$0xf0] }
 0x46e   :  { %2778 = vmatpush.bf16.msra.mxu0 %v3986_v39  ;;  %2807 = vmatpush.bf16.msra.mxu2 %v3978_v11  ;;  %v3954_v61 = vor.u32 %v4293_v26, %v3953_v25  ;;  %v3931_v39 = vld [vmem:[#allocation3 + $0x18] sm:$0xf0] }
 0x46f   :  { %2822 = vmatpush.bf16.msra.mxu3 %v3966_v5  ;;  %v3934_v50 = vor.u32 %v4284_v57, %v3931_v39  ;;  %2796 = vmatpush.bf16.msra.mxu1 %v3926_v56 }
 0x472   :  { %2779 = vmatpush.bf16.msra.mxu0 %v3970_v16  ;;  %2808 = vmatpush.bf16.msra.mxu2 %v3962_v34  ;;  %v5026_v34 = vld [vmem:[#allocation25_spill] sm:$0xff] }
 0x473   :  { %2823 = vmatpush.bf16.msra.mxu3 %v3950_v35 }
 0x476   :  { %2780 = vmatpush.bf16.msra.mxu0 %v3954_v61  ;;  %2809 = vmatpush.bf16.msra.mxu2 %v3946_v59 }
 0x477   :  { %2824 = vmatpush.bf16.msra.mxu3 %v3934_v50  ;;  %v5029_v50 = vld [vmem:[#allocation28_spill] sm:$0xff] }
 0x47a   :  { %2781 = vmatpush.bf16.msra.mxu0 %v3938_v18  ;;  %2810 = vmatpush.bf16.msra.mxu2 %v3930_v51 }
 0x47e   :  { %2782 = vmatpush.bf16.msra.mxu0 %v3922_v58  ;;  %v5027_v58 = vld [vmem:[#allocation26_spill] sm:$0xff] }
 0x4e9   :  { %v2477_v29 = vpop.f32.mrf.mxu0  ;;  %v2491_v20 = vpop.f32.mrf.mxu1 }
 0x4ea   :  { %v2524_v45 = vadd.f32 %v2477_v29, %v5019_v48  ;;  %v2525_v8 = vadd.f32 %v2491_v20, %v5020_v7 }
 0x4ec   :  { %v2532_v33 = vmul.f32 0.5, %v2524_v45  ;;  %v2540_v21 = vmul.f32 0.5, %v2525_v8 }
 0x4ee   :  { %4443 = vtanh.f32 %v2532_v33 }
 0x4ef   :  { %4445 = vtanh.f32 %v2540_v21 }
 0x4f0   :  { %v2505_v43 = vpop.f32.mrf.mxu2  ;;  %v2519_v23 = vpop.f32.mrf.mxu3 }
 0x4f1   :  { %v2526_v2 = vadd.f32 %v2505_v43, %v5021_v1  ;;  %v2527_v44 = vadd.f32 %v2519_v23, %v5022_v53  ;;  %v2479_v40 = vpop.f32.mrf.mxu0  ;;  %v2493_v3 = vpop.f32.mrf.mxu1  ;;  %v5030_v23 = vld [vmem:[#allocation29_spill] sm:$0xff] }
 0x4f2   :  { %v2528_v16 = vadd.f32 %v2479_v40, %v5023_v15  ;;  %v2529_v9 = vadd.f32 %v2493_v3, %v5024_v52  ;;  %v5032_v3 = vld [vmem:[#allocation31_spill] sm:$0xff] }
 0x4f3   :  { %4447 = vtanh.f32 %v2526_v2  ;;  %v2550_v10 = vmul.f32 0.5, %v2527_v44  ;;  %v5031_v44 = vld [vmem:[#allocation30_spill] sm:$0xff] }
 0x4f4   :  { %v4444_v4 = vpop.eup %4443  ;;  %v2533_v11 = vmul.f32 0.5, %v2528_v16  ;;  %v2541_v12 = vmul.f32 0.5, %v2529_v9 }
 0x4f5   :  { %v4446_v41 = vpop.eup %4445  ;;  %v2536_v38 = vmul.f32 0.5, %v4444_v4  ;;  %4449 = vtanh.f32 %v2550_v10 }
 0x4f6   :  { %v2544_v25 = vmul.f32 0.5, %v4446_v41  ;;  %4451 = vtanh.f32 %v2533_v11 }
 0x4f7   :  { %v2538_v26 = vadd.f32 0.5, %v2536_v38  ;;  %4453 = vtanh.f32 %v2541_v12 }
 0x4f8   :  { %v2546_v55 = vadd.f32 0.5, %v2544_v25  ;;  %v2507_v61 = vpop.f32.mrf.mxu2  ;;  %v2521_v47 = vpop.f32.mrf.mxu3 }
 0x4f9   :  { %v4448_v27 = vpop.eup %4447  ;;  %v2530_v37 = vadd.f32 %v2507_v61, %v5025_v28  ;;  %v2531_v63 = vadd.f32 %v2521_v47, %v5026_v34  ;;  %v5033_v61 = vld [vmem:[#allocation32_spill] sm:$0xff] }
 0x4fa   :  { %v2558_v0 = vmul.f32 %v2546_v55, %v4943_v24  ;;  %v2560_v5 = vmul.f32 %v4448_v27, %v2538_v26  ;;  %v5034_v27 = vld [vmem:[#allocation33_spill] sm:$0xff] }
 0x4fb   :  { %v4450_v31 = vpop.eup %4449  ;;  %4455 = vtanh.f32 %v2530_v37  ;;  %v2551_v32 = vmul.f32 0.5, %v2531_v63 }
 0x4fc   :  { %v4452_v17 = vpop.eup %4451  ;;  %v4959_v18 = vadd.f32 %v2560_v5, %v2558_v0  ;;  %v2554_v29 = vmul.f32 0.5, %v4450_v31 }
 0x4fd   :  { %v4454_v13 = vpop.eup %4453  ;;  %v2537_v6 = vmul.f32 0.5, %v4452_v17  ;;  %4457 = vtanh.f32 %v2551_v32 }
 0x4fe   :  { %4459 = vtanh.f32 %v4959_v18  ;;  %v2545_v19 = vmul.f32 0.5, %v4454_v13  ;;  %v2556_v48 = vadd.f32 0.5, %v2554_v29 }
 0x4ff   :  { %v2539_v20 = vadd.f32 0.5, %v2537_v6 }
 0x500   :  { %v2547_v30 = vadd.f32 0.5, %v2545_v19 }
 0x501   :  { %v4456_v59 = vpop.eup %4455 }
 0x502   :  { %v2559_v14 = vmul.f32 %v2547_v30, %v4947_v49  ;;  %v2561_v24 = vmul.f32 %v4456_v59, %v2539_v20 }
 0x503   :  { %v4458_v62 = vpop.eup %4457 }
 0x504   :  { %v4460_v45 = vpop.eup %4459  ;;  %v4963_v7 = vadd.f32 %v2561_v24, %v2559_v14  ;;  %v2555_v35 = vmul.f32 0.5, %v4458_v62 }
 0x505   :  { %v2566_v8 = vmul.f32 %v4460_v45, %v2556_v48 }
 0x506   :  { %4461 = vtanh.f32 %v4963_v7  ;;  %v2557_v36 = vadd.f32 0.5, %v2555_v35 }
 0x507   :  { %2569 = vst [vmem:[#allocation6 + $0x60] sm:$0xff] %v2566_v8 }
 0x50c   :  { %v4462_v60 = vpop.eup %4461 }
 0x50d   :  { %v2567_v42 = vmul.f32 %v4462_v60, %v2557_v36 }
 0x50f   :  { %2570 = vst [vmem:[#allocation6 + $0x68] sm:$0xff] %v2567_v42  ;;  %v2582_v33 = vpack.c.bf16 %v2567_v42, %v2566_v8 }
 0x511   :  { %2783 = vmatmul.bf16.vlgmr.msra.gmra.mxu0 %v2582_v33  ;;  %2797 = vmatmul.bf16.vlgmr.msra.gmra.mxu1 %v2582_v33 }
 0x512   :  { %2811 = vmatmul.bf16.vlgmr.msra.gmra.mxu2 %v2582_v33  ;;  %2825 = vmatmul.bf16.vlgmr.msra.gmra.mxu3 %v2582_v33 }
 0x58e   :  { %v2784_v49 = vpop.f32.mrf.mxu0  ;;  %v2798_v21 = vpop.f32.mrf.mxu1 }
 0x58f   :  { %v2831_v22 = vadd.f32 %v2784_v49, %v5027_v58  ;;  %v2832_v56 = vadd.f32 %v2798_v21, %v5028_v46 }
 0x591   :  { %v2839_v54 = vmul.f32 0.5, %v2831_v22  ;;  %v2847_v57 = vmul.f32 0.5, %v2832_v56 }
 0x593   :  { %4463 = vtanh.f32 %v2839_v54 }
 0x594   :  { %4465 = vtanh.f32 %v2847_v57 }
 0x595   :  { %v2812_v39 = vpop.f32.mrf.mxu2  ;;  %v2826_v51 = vpop.f32.mrf.mxu3 }
 0x596   :  { %v2833_v43 = vadd.f32 %v2812_v39, %v5029_v50  ;;  %v2834_v1 = vadd.f32 %v2826_v51, %v5030_v23  ;;  %v2786_v2 = vpop.f32.mrf.mxu0  ;;  %v2800_v53 = vpop.f32.mrf.mxu1 }
 0x597   :  { %v2835_v40 = vadd.f32 %v2786_v2, %v5031_v44  ;;  %v2836_v15 = vadd.f32 %v2800_v53, %v5032_v3 }
 0x598   :  { %4467 = vtanh.f32 %v2833_v43  ;;  %v2857_v16 = vmul.f32 0.5, %v2834_v1 }
 0x599   :  { %v4464_v52 = vpop.eup %4463  ;;  %v2840_v9 = vmul.f32 0.5, %v2835_v40  ;;  %v2848_v10 = vmul.f32 0.5, %v2836_v15 }
 0x59a   :  { %v4466_v4 = vpop.eup %4465  ;;  %v2843_v11 = vmul.f32 0.5, %v4464_v52  ;;  %4469 = vtanh.f32 %v2857_v16 }
 0x59b   :  { %v2851_v12 = vmul.f32 0.5, %v4466_v4  ;;  %4471 = vtanh.f32 %v2840_v9 }
 0x59c   :  { %v2845_v41 = vadd.f32 0.5, %v2843_v11  ;;  %4473 = vtanh.f32 %v2848_v10 }
 0x59d   :  { %v2853_v38 = vadd.f32 0.5, %v2851_v12  ;;  %v2814_v25 = vpop.f32.mrf.mxu2  ;;  %v2828_v26 = vpop.f32.mrf.mxu3 }
 0x59e   :  { %v4468_v55 = vpop.eup %4467  ;;  %v2837_v47 = vadd.f32 %v2814_v25, %v5033_v61  ;;  %v2838_v28 = vadd.f32 %v2828_v26, %v5034_v27 }
 0x59f   :  { %v2865_v37 = vmul.f32 %v2853_v38, %v4959_v18  ;;  %v2867_v34 = vmul.f32 %v4468_v55, %v2845_v41 }
 0x5a0   :  { %v4470_v63 = vpop.eup %4469  ;;  %4475 = vtanh.f32 %v2837_v47  ;;  %v2858_v0 = vmul.f32 0.5, %v2838_v28 }
 0x5a1   :  { %v4472_v5 = vpop.eup %4471  ;;  %v2869_v31 = vadd.f32 %v2867_v34, %v2865_v37  ;;  %v2861_v6 = vmul.f32 0.5, %v4470_v63 }
 0x5a2   :  { %v4474_v32 = vpop.eup %4473  ;;  %v2844_v17 = vmul.f32 0.5, %v4472_v5  ;;  %4477 = vtanh.f32 %v2858_v0 }
 0x5a3   :  { %4479 = vtanh.f32 %v2869_v31  ;;  %2880 = vst [vmem:[#allocation9] sm:$0xff] %v2869_v31  ;;  %v2852_v13 = vmul.f32 0.5, %v4474_v32  ;;  %v2863_v14 = vadd.f32 0.5, %v2861_v6 }
 0x5a4   :  { %v2846_v19 = vadd.f32 0.5, %v2844_v17 }
 0x5a5   :  { %v2854_v29 = vadd.f32 0.5, %v2852_v13 }
 0x5a6   :  { %v4476_v20 = vpop.eup %4475 }
 0x5a7   :  { %v2866_v30 = vmul.f32 %v2854_v29, %v4963_v7  ;;  %v2868_v59 = vmul.f32 %v4476_v20, %v2846_v19 }
 0x5a8   :  { %v4478_v18 = vpop.eup %4477 }
 0x5a9   :  { %v4480_v24 = vpop.eup %4479  ;;  %v2870_v62 = vadd.f32 %v2868_v59, %v2866_v30  ;;  %v2862_v45 = vmul.f32 0.5, %v4478_v18 }
 0x5aa   :  { %v2873_v48 = vmul.f32 %v4480_v24, %v2863_v14 }
 0x5ab   :  { %4481 = vtanh.f32 %v2870_v62  ;;  %2881 = vst [vmem:[#allocation9 + $0x8] sm:$0xff] %v2870_v62  ;;  %v2864_v7 = vadd.f32 0.5, %v2862_v45 }
 0x5ac   :  { %2876 = vst [vmem:[#allocation6 + $0x70] sm:$0xff] %v2873_v48 }
 0x5ad   :  { %2878 = vst [vmem:[#allocation7] sm:$0xff] %v2873_v48 }
 0x5b1   :  { %v4482_v8 = vpop.eup %4481 }
 0x5b2   :  { %v2874_v35 = vmul.f32 %v4482_v8, %v2864_v7 }
 0x5b4   :  { %2877 = vst [vmem:[#allocation6 + $0x78] sm:$0xff] %v2874_v35 }
 0x5b5   :  { %2879 = vst [vmem:[#allocation7 + $0x8] sm:$0xff] %v2874_v35  ;;  %2894 = dma.vmem_to_hbm [thread:$0]  %s2887_s1, 2048, %s2889_s27, [#allocation5], %s4591_s6, %s4591_s6, %s4592_s10  }
 0x5b6   :  { %2907 = dma.vmem_to_hbm [thread:$0]  %s2900_s20, 256, %s2902_s23, [#allocation8], %s4591_s6, %s4591_s6, %s4592_s10  }
 0x5b7   :  { %2920 = dma.vmem_to_hbm [thread:$0]  %s2913_s29, 256, %s2915_s9, [#allocation8], %s4591_s6, %s4591_s6, %s4592_s10  }
 0x5b8   :  { %4581 = dma.done.wait [#allocation5], 2048  }
 0x5b9   :  { %4582 = vsyncadd [#allocation5], 4294965248 }
 0x5ba   :  { %4583 = dma.done.wait [#allocation8], 512  }
 0x5bb   :  { %4584 = vsyncadd [#allocation8], 4294966784 }
 0x5bc   :  { %2933 = vsyncpa [#allocation4], 1 }
 0x5bd   :  { %2934 = vsyncpa [#allocation5], 1 }
 0x5be   :  { %2935 = vsyncpa [#allocation8], 1 }

</bundles_post_ra>
